<compile_context>
chip_gen: v6e
topology: v6e:2x2x1
jax: 0.10.0
libtpu: 0.0.40
codegen_flags: <defaults>
</compile_context>

<pallas_src>
import functools

import jax
import jax.numpy as jnp
from jax.experimental import pallas as pl
from jax.experimental.pallas import tpu as pltpu


# ----------------------------------------------------------------------------
# Fused kernel: GRU stack (PyTorch gate order [r, z, n]) -> last hidden -> KAN head.
# ----------------------------------------------------------------------------
def fused_kernel(*refs, num_gru, num_kan, T, B, spline_order, grid_h):
    f32 = jnp.float32

    # ---- unpack refs: inputs..., out, scratches ----
    idx = 0
    x_ref = refs[idx]; idx += 1                      # (T*B, D0)
    gru_refs = []
    for _ in range(num_gru):
        gru_refs.append(refs[idx:idx + 4]); idx += 4  # wih(3,D,H) whh(3,H,H) bih(3,1,H) bhh(3,1,H)
    kan_refs = []
    for _ in range(num_kan):
        kan_refs.append(refs[idx:idx + 3]); idx += 3  # grid(nk,1,I) base_w_t(I,O) spline_w_t(GK,I,O)
    out_ref = refs[idx]; idx += 1                     # (B, out_dim)
    gi_r_s, gi_z_s, gi_n_s, hseq_s = refs[idx:idx + 4]  # each (T*B, H) VMEM scratch

    H = hseq_s.shape[1]
    h_last = jnp.zeros((B, H), f32)

    # ---- GRU stack ----
    for l, (wih, whh, bih, bhh) in enumerate(gru_refs):
        xin = x_ref[...] if l == 0 else hseq_s[...]   # (T*B, D_l) — previous layer output

        # Hoisted input projections: one well-filled matmul per gate for all timesteps.
        gi_r_s[...] = jnp.dot(xin, wih[0], preferred_element_type=f32) + bih[0]
        gi_z_s[...] = jnp.dot(xin, wih[1], preferred_element_type=f32) + bih[1]
        gi_n_s[...] = jnp.dot(xin, wih[2], preferred_element_type=f32) + bih[2]

        # Hoist recurrent weights / biases out of the time loop.
        whh_r, whh_z, whh_n = whh[0], whh[1], whh[2]
        bhh_r, bhh_z, bhh_n = bhh[0], bhh[1], bhh[2]

        h = jnp.zeros((B, H), f32)
        write_seq = l < num_gru - 1   # last layer only needs the final hidden state
        for t in range(T):            # static, fully unrolled — T is small
            lo = t * B
            i_r = gi_r_s[lo:lo + B, :]
            i_z = gi_z_s[lo:lo + B, :]
            i_n = gi_n_s[lo:lo + B, :]
            h_r = jnp.dot(h, whh_r, preferred_element_type=f32) + bhh_r
            h_z = jnp.dot(h, whh_z, preferred_element_type=f32) + bhh_z
            h_n = jnp.dot(h, whh_n, preferred_element_type=f32) + bhh_n
            r = jax.nn.sigmoid(i_r + h_r)
            z = jax.nn.sigmoid(i_z + h_z)
            n = jnp.tanh(i_n + r * h_n)
            h = (1.0 - z) * n + z * h
            if write_seq:
                hseq_s[lo:lo + B, :] = h
        h_last = h

    # ---- KAN head on the last hidden state ----
    y = h_last                                        # (B, I0)
    for (g_ref, bw_ref, sw_ref) in kan_refs:
        gg = g_ref[...]                               # (nk, 1, I) — knot axis leading
        # base branch: SiLU then linear
        base = jnp.dot(y * jax.nn.sigmoid(y), bw_ref[...], preferred_element_type=f32)

        # B-spline bases (Cox-de Boor) in (knots, B, I) layout — leading-axis slices only.
        xx = y[None, :, :]                            # (1, B, I)
        bases = jnp.logical_and(xx >= gg[:-1], xx < gg[1:]).astype(f32)   # (nk-1, B, I)
        for k in range(1, spline_order + 1):
            inv_kh = 1.0 / (k * grid_h)               # uniform grid => denominators are k*h
            left = (xx - gg[:-(k + 1)]) * inv_kh
            right = (gg[k + 1:] - xx) * inv_kh
            bases = left * bases[:-1] + right * bases[1:]
        # bases: (GK, B, I)

        acc = base
        gk = bases.shape[0]
        for j in range(gk):                           # static unroll; leading-index tiles, no lane extracts
            acc = acc + jnp.dot(bases[j], sw_ref[j], preferred_element_type=f32)
        y = acc

    out_ref[...] = y.astype(out_ref.dtype)


# ----------------------------------------------------------------------------
# Wrapper: weight repacking + single pallas_call (no grid — everything VMEM resident).
# ----------------------------------------------------------------------------
def gru_ekan_forward(x_btd, gru_params, kan_params, spline_order, grid_h):
    B, T, D = x_btd.shape
    H = gru_params[0][1].shape[1]
    out_dim = kan_params[-1]["base_w"].shape[0]

    # time-major flattened input: row t*B + b is (t, b)
    x_flat = jnp.transpose(x_btd, (1, 0, 2)).reshape(T * B, D)

    inputs = [x_flat]
    for (wih, whh, bih, bhh) in gru_params:
        inputs += [
            jnp.transpose(wih.reshape(3, H, -1), (0, 2, 1)),   # (3, D_l, H)
            jnp.transpose(whh.reshape(3, H, H), (0, 2, 1)),    # (3, H, H)
            bih.reshape(3, 1, H),
            bhh.reshape(3, 1, H),
        ]
    for layer in kan_params:
        inputs += [
            jnp.transpose(layer["grid"])[:, None, :],              # (nk, 1, I)
            jnp.transpose(layer["base_w"]),                        # (I, O)
            jnp.transpose(layer["spline_w_scaled"], (2, 1, 0)),    # (GK, I, O)
        ]

    kern = functools.partial(
        fused_kernel,
        num_gru=len(gru_params), num_kan=len(kan_params),
        T=T, B=B, spline_order=spline_order, grid_h=grid_h)

    return pl.pallas_call(
        kern,
        out_shape=jax.ShapeDtypeStruct((B, out_dim), jnp.float32),
        scratch_shapes=[pltpu.VMEM((T * B, H), jnp.float32) for _ in range(4)],
    )(*inputs)


# ----------------------------------------------------------------------------
# Pure-JAX reference for a sanity check (matches PyTorch GRU + efficient-KAN forward).
# ----------------------------------------------------------------------------
def ref_forward(x_btd, gru_params, kan_params, spline_order):
    x = jnp.transpose(x_btd, (1, 0, 2))
    h_seq = x
    for (wih, whh, bih, bhh) in gru_params:
        T, B, _ = h_seq.shape
        H = whh.shape[1]

        def step(h, x_t, wih=wih, whh=whh, bih=bih, bhh=bhh):
            gi = x_t @ wih.T + bih
            gh = h @ whh.T + bhh
            i_r, i_z, i_n = jnp.split(gi, 3, axis=1)
            h_r, h_z, h_n = jnp.split(gh, 3, axis=1)
            r = jax.nn.sigmoid(i_r + h_r)
            z = jax.nn.sigmoid(i_z + h_z)
            n = jnp.tanh(i_n + r * h_n)
            h_new = (1.0 - z) * n + z * h
            return h_new, h_new

        _, h_seq = jax.lax.scan(step, jnp.zeros((B, H), jnp.float32), h_seq)
    y = h_seq[-1]
    for layer in kan_params:
        g = layer["grid"]
        xx = y[:, :, None]
        gg = g[None, :, :]
        bases = ((xx >= gg[:, :, :-1]) & (xx < gg[:, :, 1:])).astype(jnp.float32)
        for k in range(1, spline_order + 1):
            bases = ((xx - gg[:, :, :-(k + 1)]) / (gg[:, :, k:-1] - gg[:, :, :-(k + 1)])
                     * bases[:, :, :-1]
                     + (gg[:, :, k + 1:] - xx) / (gg[:, :, k + 1:] - gg[:, :, 1:-k])
                     * bases[:, :, 1:])
        base = jax.nn.silu(y) @ layer["base_w"].T
        sw = layer["spline_w_scaled"]
        spline = bases.reshape(y.shape[0], -1) @ sw.reshape(sw.shape[0], -1).T
        y = base + spline
    return y


# ----------------------------------------------------------------------------
# Deterministic parameter construction (PyTorch-style layouts).
# ----------------------------------------------------------------------------
def make_params(key, input_dim, hidden_dim, num_layers, output_dim,
                grid_size=5, spline_order=3, kan_hidden=10):
    keys = jax.random.split(key, 64)
    ki = iter(keys)

    gru_params = []
    k_scale = 1.0 / jnp.sqrt(hidden_dim)
    for layer in range(num_layers):
        in_dim = input_dim if layer == 0 else hidden_dim
        wih = jax.random.uniform(next(ki), (3 * hidden_dim, in_dim), jnp.float32,
                                 -k_scale, k_scale)
        whh = jax.random.uniform(next(ki), (3 * hidden_dim, hidden_dim), jnp.float32,
                                 -k_scale, k_scale)
        bih = jax.random.uniform(next(ki), (3 * hidden_dim,), jnp.float32,
                                 -k_scale, k_scale)
        bhh = jax.random.uniform(next(ki), (3 * hidden_dim,), jnp.float32,
                                 -k_scale, k_scale)
        gru_params.append((wih, whh, bih, bhh))

    layers_hidden = [hidden_dim, kan_hidden, output_dim]
    grid_range = (-1.0, 1.0)
    h = (grid_range[1] - grid_range[0]) / grid_size
    grid_row = (jnp.arange(-spline_order, grid_size + spline_order + 1,
                           dtype=jnp.float32) * h + grid_range[0])
    kan_params = []
    for in_f, out_f in zip(layers_hidden[:-1], layers_hidden[1:]):
        grid = jnp.tile(grid_row[None, :], (in_f, 1))                # (in, G+2k+1)
        base_w = jax.random.uniform(next(ki), (out_f, in_f), jnp.float32,
                                    -1.0, 1.0) / jnp.sqrt(in_f)
        spline_w = 0.1 * jax.random.normal(next(ki),
                                           (out_f, in_f, grid_size + spline_order),
                                           jnp.float32)
        spline_scaler = 1.0 + 0.1 * jax.random.normal(next(ki), (out_f, in_f),
                                                      jnp.float32)
        spline_w_scaled = spline_w * spline_scaler[:, :, None]
        kan_params.append({"grid": grid, "base_w": base_w,
                           "spline_w_scaled": spline_w_scaled})
    return gru_params, kan_params


if __name__ == "__main__":
    B, T = 8, 8
    input_dim, hidden_dim, num_layers, output_dim = 16, 32, 2, 4
    spline_order, grid_size = 3, 5
    grid_h = 2.0 / grid_size   # uniform knot spacing of the KAN grid (grid_range=[-1,1])

    key = jax.random.PRNGKey(0)
    k_x, k_p = jax.random.split(key)
    x = jax.random.normal(k_x, (B, T, input_dim), jnp.float32)
    gru_params, kan_params = make_params(k_p, input_dim, hidden_dim, num_layers,
                                         output_dim, grid_size=grid_size,
                                         spline_order=spline_order)

    fwd = jax.jit(functools.partial(gru_ekan_forward, spline_order=spline_order,
                                    grid_h=grid_h))
    out = jax.block_until_ready(fwd(x, gru_params, kan_params))
    ref = jax.block_until_ready(ref_forward(x, gru_params, kan_params, spline_order))

    assert out.shape == (B, output_dim), out.shape
    assert bool(jnp.all(jnp.isfinite(out)))
    assert bool(jnp.allclose(out, ref, rtol=1e-2, atol=1e-2)), (out, ref)
    print("KERNEL_OK")
</pallas_src>

<mosaic_0001>
module attributes {stable_mosaic.version = 11 : i64} {
  func.func @fused_kernel(%arg0: memref<64x16xf32, #tpu.memory_space<vmem>>, %arg1: memref<3x16x32xf32, #tpu.memory_space<vmem>>, %arg2: memref<3x32x32xf32, #tpu.memory_space<vmem>>, %arg3: memref<3x1x32xf32, #tpu.memory_space<vmem>>, %arg4: memref<3x1x32xf32, #tpu.memory_space<vmem>>, %arg5: memref<3x32x32xf32, #tpu.memory_space<vmem>>, %arg6: memref<3x32x32xf32, #tpu.memory_space<vmem>>, %arg7: memref<3x1x32xf32, #tpu.memory_space<vmem>>, %arg8: memref<3x1x32xf32, #tpu.memory_space<vmem>>, %arg9: memref<12x1x32xf32, #tpu.memory_space<vmem>>, %arg10: memref<32x10xf32, #tpu.memory_space<vmem>>, %arg11: memref<8x32x10xf32, #tpu.memory_space<vmem>>, %arg12: memref<12x1x10xf32, #tpu.memory_space<vmem>>, %arg13: memref<10x4xf32, #tpu.memory_space<vmem>>, %arg14: memref<8x10x4xf32, #tpu.memory_space<vmem>>, %arg15: memref<8x4xf32, #tpu.memory_space<vmem>>, %arg16: memref<64x32xf32, #tpu.memory_space<vmem>>, %arg17: memref<64x32xf32, #tpu.memory_space<vmem>>, %arg18: memref<64x32xf32, #tpu.memory_space<vmem>>, %arg19: memref<64x32xf32, #tpu.memory_space<vmem>>) attributes {dimension_semantics = [], scalar_prefetch = 0 : i64, scratch_operands = 4 : i64, tpu.core_type = #tpu.core_type<tc>} {
    %c0 = arith.constant 0 : index
    %c0_0 = arith.constant 0 : index
    %0 = vector.load %arg0[%c0, %c0_0] : memref<64x16xf32, #tpu.memory_space<vmem>>, vector<64x16xf32>
    %c0_1 = arith.constant 0 : index
    %c0_2 = arith.constant 0 : index
    %c0_3 = arith.constant 0 : index
    %1 = vector.load %arg1[%c0_1, %c0_2, %c0_3] : memref<3x16x32xf32, #tpu.memory_space<vmem>>, vector<1x16x32xf32>
    %2 = vector.shape_cast %1 : vector<1x16x32xf32> to vector<16x32xf32>
    %cst = arith.constant dense<0.000000e+00> : vector<64x32xf32>
    %3 = tpu.matmul %0, %2, %cst {dimension_numbers = #tpu.dot_dimension_numbers<[1], [0], [0], [1], [0, 0, 1, 1], [], []>} : vector<64x16xf32>, vector<16x32xf32>, vector<64x32xf32> -> vector<64x32xf32>
    %c0_4 = arith.constant 0 : index
    %c0_5 = arith.constant 0 : index
    %c0_6 = arith.constant 0 : index
    %4 = vector.load %arg3[%c0_4, %c0_5, %c0_6] : memref<3x1x32xf32, #tpu.memory_space<vmem>>, vector<1x1x32xf32>
    %5 = vector.shape_cast %4 : vector<1x1x32xf32> to vector<1x32xf32>
    %6 = vector.broadcast %5 : vector<1x32xf32> to vector<64x32xf32>
    %7 = arith.addf %3, %6 : vector<64x32xf32>
    %c0_7 = arith.constant 0 : index
    %c0_8 = arith.constant 0 : index
    %8 = vector.load %arg16[%c0_7, %c0_8] : memref<64x32xf32, #tpu.memory_space<vmem>>, vector<64x32xf32>
    tpu.vector_store %arg16[%c0_7, %c0_8], %7 {strides = array<i32>} : memref<64x32xf32, #tpu.memory_space<vmem>>, vector<64x32xf32>,
    %c1 = arith.constant 1 : index
    %c0_9 = arith.constant 0 : index
    %c0_10 = arith.constant 0 : index
    %9 = vector.load %arg1[%c1, %c0_9, %c0_10] : memref<3x16x32xf32, #tpu.memory_space<vmem>>, vector<1x16x32xf32>
    %10 = vector.shape_cast %9 : vector<1x16x32xf32> to vector<16x32xf32>
    %cst_11 = arith.constant dense<0.000000e+00> : vector<64x32xf32>
    %11 = tpu.matmul %0, %10, %cst_11 {dimension_numbers = #tpu.dot_dimension_numbers<[1], [0], [0], [1], [0, 0, 1, 1], [], []>} : vector<64x16xf32>, vector<16x32xf32>, vector<64x32xf32> -> vector<64x32xf32>
    %c1_12 = arith.constant 1 : index
    %c0_13 = arith.constant 0 : index
    %c0_14 = arith.constant 0 : index
    %12 = vector.load %arg3[%c1_12, %c0_13, %c0_14] : memref<3x1x32xf32, #tpu.memory_space<vmem>>, vector<1x1x32xf32>
    %13 = vector.shape_cast %12 : vector<1x1x32xf32> to vector<1x32xf32>
    %14 = vector.broadcast %13 : vector<1x32xf32> to vector<64x32xf32>
    %15 = arith.addf %11, %14 : vector<64x32xf32>
    %c0_15 = arith.constant 0 : index
    %c0_16 = arith.constant 0 : index
    %16 = vector.load %arg17[%c0_15, %c0_16] : memref<64x32xf32, #tpu.memory_space<vmem>>, vector<64x32xf32>
    tpu.vector_store %arg17[%c0_15, %c0_16], %15 {strides = array<i32>} : memref<64x32xf32, #tpu.memory_space<vmem>>, vector<64x32xf32>,
    %c2 = arith.constant 2 : index
    %c0_17 = arith.constant 0 : index
    %c0_18 = arith.constant 0 : index
    %17 = vector.load %arg1[%c2, %c0_17, %c0_18] : memref<3x16x32xf32, #tpu.memory_space<vmem>>, vector<1x16x32xf32>
    %18 = vector.shape_cast %17 : vector<1x16x32xf32> to vector<16x32xf32>
    %cst_19 = arith.constant dense<0.000000e+00> : vector<64x32xf32>
    %19 = tpu.matmul %0, %18, %cst_19 {dimension_numbers = #tpu.dot_dimension_numbers<[1], [0], [0], [1], [0, 0, 1, 1], [], []>} : vector<64x16xf32>, vector<16x32xf32>, vector<64x32xf32> -> vector<64x32xf32>
    %c2_20 = arith.constant 2 : index
    %c0_21 = arith.constant 0 : index
    %c0_22 = arith.constant 0 : index
    %20 = vector.load %arg3[%c2_20, %c0_21, %c0_22] : memref<3x1x32xf32, #tpu.memory_space<vmem>>, vector<1x1x32xf32>
    %21 = vector.shape_cast %20 : vector<1x1x32xf32> to vector<1x32xf32>
    %22 = vector.broadcast %21 : vector<1x32xf32> to vector<64x32xf32>
    %23 = arith.addf %19, %22 : vector<64x32xf32>
    %c0_23 = arith.constant 0 : index
    %c0_24 = arith.constant 0 : index
    %24 = vector.load %arg18[%c0_23, %c0_24] : memref<64x32xf32, #tpu.memory_space<vmem>>, vector<64x32xf32>
    tpu.vector_store %arg18[%c0_23, %c0_24], %23 {strides = array<i32>} : memref<64x32xf32, #tpu.memory_space<vmem>>, vector<64x32xf32>,
    %c0_25 = arith.constant 0 : index
    %c0_26 = arith.constant 0 : index
    %c0_27 = arith.constant 0 : index
    %25 = vector.load %arg2[%c0_25, %c0_26, %c0_27] : memref<3x32x32xf32, #tpu.memory_space<vmem>>, vector<1x32x32xf32>
    %26 = vector.shape_cast %25 : vector<1x32x32xf32> to vector<32x32xf32>
    %c1_28 = arith.constant 1 : index
    %c0_29 = arith.constant 0 : index
    %c0_30 = arith.constant 0 : index
    %27 = vector.load %arg2[%c1_28, %c0_29, %c0_30] : memref<3x32x32xf32, #tpu.memory_space<vmem>>, vector<1x32x32xf32>
    %28 = vector.shape_cast %27 : vector<1x32x32xf32> to vector<32x32xf32>
    %c2_31 = arith.constant 2 : index
    %c0_32 = arith.constant 0 : index
    %c0_33 = arith.constant 0 : index
    %29 = vector.load %arg2[%c2_31, %c0_32, %c0_33] : memref<3x32x32xf32, #tpu.memory_space<vmem>>, vector<1x32x32xf32>
    %30 = vector.shape_cast %29 : vector<1x32x32xf32> to vector<32x32xf32>
    %c0_34 = arith.constant 0 : index
    %c0_35 = arith.constant 0 : index
    %c0_36 = arith.constant 0 : index
    %31 = vector.load %arg4[%c0_34, %c0_35, %c0_36] : memref<3x1x32xf32, #tpu.memory_space<vmem>>, vector<1x1x32xf32>
    %32 = vector.shape_cast %31 : vector<1x1x32xf32> to vector<1x32xf32>
    %c1_37 = arith.constant 1 : index
    %c0_38 = arith.constant 0 : index
    %c0_39 = arith.constant 0 : index
    %33 = vector.load %arg4[%c1_37, %c0_38, %c0_39] : memref<3x1x32xf32, #tpu.memory_space<vmem>>, vector<1x1x32xf32>
    %34 = vector.shape_cast %33 : vector<1x1x32xf32> to vector<1x32xf32>
    %c2_40 = arith.constant 2 : index
    %c0_41 = arith.constant 0 : index
    %c0_42 = arith.constant 0 : index
    %35 = vector.load %arg4[%c2_40, %c0_41, %c0_42] : memref<3x1x32xf32, #tpu.memory_space<vmem>>, vector<1x1x32xf32>
    %36 = vector.shape_cast %35 : vector<1x1x32xf32> to vector<1x32xf32>
    %cst_43 = arith.constant 0.000000e+00 : f32
    %37 = vector.broadcast %cst_43 : f32 to vector<8x32xf32>
    %c0_44 = arith.constant 0 : index
    %c0_45 = arith.constant 0 : index
    %38 = vector.load %arg16[%c0_44, %c0_45] : memref<64x32xf32, #tpu.memory_space<vmem>>, vector<8x32xf32>
    %c0_46 = arith.constant 0 : index
    %c0_47 = arith.constant 0 : index
    %39 = vector.load %arg17[%c0_46, %c0_47] : memref<64x32xf32, #tpu.memory_space<vmem>>, vector<8x32xf32>
    %c0_48 = arith.constant 0 : index
    %c0_49 = arith.constant 0 : index
    %40 = vector.load %arg18[%c0_48, %c0_49] : memref<64x32xf32, #tpu.memory_space<vmem>>, vector<8x32xf32>
    %cst_50 = arith.constant dense<0.000000e+00> : vector<8x32xf32>
    %41 = tpu.matmul %37, %26, %cst_50 {dimension_numbers = #tpu.dot_dimension_numbers<[1], [0], [0], [1], [0, 0, 1, 1], [], []>} : vector<8x32xf32>, vector<32x32xf32>, vector<8x32xf32> -> vector<8x32xf32>
    %42 = vector.broadcast %32 : vector<1x32xf32> to vector<8x32xf32>
    %43 = arith.addf %41, %42 : vector<8x32xf32>
    %cst_51 = arith.constant dense<0.000000e+00> : vector<8x32xf32>
    %44 = tpu.matmul %37, %28, %cst_51 {dimension_numbers = #tpu.dot_dimension_numbers<[1], [0], [0], [1], [0, 0, 1, 1], [], []>} : vector<8x32xf32>, vector<32x32xf32>, vector<8x32xf32> -> vector<8x32xf32>
    %45 = vector.broadcast %34 : vector<1x32xf32> to vector<8x32xf32>
    %46 = arith.addf %44, %45 : vector<8x32xf32>
    %cst_52 = arith.constant dense<0.000000e+00> : vector<8x32xf32>
    %47 = tpu.matmul %37, %30, %cst_52 {dimension_numbers = #tpu.dot_dimension_numbers<[1], [0], [0], [1], [0, 0, 1, 1], [], []>} : vector<8x32xf32>, vector<32x32xf32>, vector<8x32xf32> -> vector<8x32xf32>
    %48 = vector.broadcast %36 : vector<1x32xf32> to vector<8x32xf32>
    %49 = arith.addf %47, %48 : vector<8x32xf32>
    %50 = arith.addf %38, %43 : vector<8x32xf32>
    %51 = arith.negf %50 : vector<8x32xf32>
    %52 = math.exp %51 : vector<8x32xf32>
    %cst_53 = arith.constant 1.000000e+00 : f32
    %53 = vector.broadcast %cst_53 : f32 to vector<8x32xf32>
    %54 = arith.addf %53, %52 : vector<8x32xf32>
    %55 = arith.divf %53, %54 : vector<8x32xf32>
    %56 = arith.addf %39, %46 : vector<8x32xf32>
    %57 = arith.negf %56 : vector<8x32xf32>
    %58 = math.exp %57 : vector<8x32xf32>
    %cst_54 = arith.constant 1.000000e+00 : f32
    %59 = vector.broadcast %cst_54 : f32 to vector<8x32xf32>
    %60 = arith.addf %59, %58 : vector<8x32xf32>
    %61 = arith.divf %59, %60 : vector<8x32xf32>
    %62 = arith.mulf %55, %49 : vector<8x32xf32>
    %63 = arith.addf %40, %62 : vector<8x32xf32>
    %64 = math.tanh %63 : vector<8x32xf32>
    %cst_55 = arith.constant 1.000000e+00 : f32
    %65 = vector.broadcast %cst_55 : f32 to vector<8x32xf32>
    %66 = arith.subf %65, %61 : vector<8x32xf32>
    %67 = arith.mulf %66, %64 : vector<8x32xf32>
    %68 = arith.mulf %61, %37 : vector<8x32xf32>
    %69 = arith.addf %67, %68 : vector<8x32xf32>
    %c0_56 = arith.constant 0 : index
    %c0_57 = arith.constant 0 : index
    %70 = vector.load %arg19[%c0_56, %c0_57] : memref<64x32xf32, #tpu.memory_space<vmem>>, vector<8x32xf32>
    tpu.vector_store %arg19[%c0_56, %c0_57], %69 {strides = array<i32>} : memref<64x32xf32, #tpu.memory_space<vmem>>, vector<8x32xf32>,
    %c8 = arith.constant 8 : index
    %c0_58 = arith.constant 0 : index
    %71 = vector.load %arg16[%c8, %c0_58] : memref<64x32xf32, #tpu.memory_space<vmem>>, vector<8x32xf32>
    %c8_59 = arith.constant 8 : index
    %c0_60 = arith.constant 0 : index
    %72 = vector.load %arg17[%c8_59, %c0_60] : memref<64x32xf32, #tpu.memory_space<vmem>>, vector<8x32xf32>
    %c8_61 = arith.constant 8 : index
    %c0_62 = arith.constant 0 : index
    %73 = vector.load %arg18[%c8_61, %c0_62] : memref<64x32xf32, #tpu.memory_space<vmem>>, vector<8x32xf32>
    %cst_63 = arith.constant dense<0.000000e+00> : vector<8x32xf32>
    %74 = tpu.matmul %69, %26, %cst_63 {dimension_numbers = #tpu.dot_dimension_numbers<[1], [0], [0], [1], [0, 0, 1, 1], [], []>} : vector<8x32xf32>, vector<32x32xf32>, vector<8x32xf32> -> vector<8x32xf32>
    %75 = vector.broadcast %32 : vector<1x32xf32> to vector<8x32xf32>
    %76 = arith.addf %74, %75 : vector<8x32xf32>
    %cst_64 = arith.constant dense<0.000000e+00> : vector<8x32xf32>
    %77 = tpu.matmul %69, %28, %cst_64 {dimension_numbers = #tpu.dot_dimension_numbers<[1], [0], [0], [1], [0, 0, 1, 1], [], []>} : vector<8x32xf32>, vector<32x32xf32>, vector<8x32xf32> -> vector<8x32xf32>
    %78 = vector.broadcast %34 : vector<1x32xf32> to vector<8x32xf32>
    %79 = arith.addf %77, %78 : vector<8x32xf32>
    %cst_65 = arith.constant dense<0.000000e+00> : vector<8x32xf32>
    %80 = tpu.matmul %69, %30, %cst_65 {dimension_numbers = #tpu.dot_dimension_numbers<[1], [0], [0], [1], [0, 0, 1, 1], [], []>} : vector<8x32xf32>, vector<32x32xf32>, vector<8x32xf32> -> vector<8x32xf32>
    %81 = vector.broadcast %36 : vector<1x32xf32> to vector<8x32xf32>
    %82 = arith.addf %80, %81 : vector<8x32xf32>
    %83 = arith.addf %71, %76 : vector<8x32xf32>
    %84 = arith.negf %83 : vector<8x32xf32>
    %85 = math.exp %84 : vector<8x32xf32>
    %cst_66 = arith.constant 1.000000e+00 : f32
    %86 = vector.broadcast %cst_66 : f32 to vector<8x32xf32>
    %87 = arith.addf %86, %85 : vector<8x32xf32>
    %88 = arith.divf %86, %87 : vector<8x32xf32>
    %89 = arith.addf %72, %79 : vector<8x32xf32>
    %90 = arith.negf %89 : vector<8x32xf32>
    %91 = math.exp %90 : vector<8x32xf32>
    %cst_67 = arith.constant 1.000000e+00 : f32
    %92 = vector.broadcast %cst_67 : f32 to vector<8x32xf32>
    %93 = arith.addf %92, %91 : vector<8x32xf32>
    %94 = arith.divf %92, %93 : vector<8x32xf32>
    %95 = arith.mulf %88, %82 : vector<8x32xf32>
    %96 = arith.addf %73, %95 : vector<8x32xf32>
    %97 = math.tanh %96 : vector<8x32xf32>
    %cst_68 = arith.constant 1.000000e+00 : f32
    %98 = vector.broadcast %cst_68 : f32 to vector<8x32xf32>
    %99 = arith.subf %98, %94 : vector<8x32xf32>
    %100 = arith.mulf %99, %97 : vector<8x32xf32>
    %101 = arith.mulf %94, %69 : vector<8x32xf32>
    %102 = arith.addf %100, %101 : vector<8x32xf32>
    %c8_69 = arith.constant 8 : index
    %c0_70 = arith.constant 0 : index
    %103 = vector.load %arg19[%c8_69, %c0_70] : memref<64x32xf32, #tpu.memory_space<vmem>>, vector<8x32xf32>
    tpu.vector_store %arg19[%c8_69, %c0_70], %102 {strides = array<i32>} : memref<64x32xf32, #tpu.memory_space<vmem>>, vector<8x32xf32>,
    %c16 = arith.constant 16 : index
    %c0_71 = arith.constant 0 : index
    %104 = vector.load %arg16[%c16, %c0_71] : memref<64x32xf32, #tpu.memory_space<vmem>>, vector<8x32xf32>
    %c16_72 = arith.constant 16 : index
    %c0_73 = arith.constant 0 : index
    %105 = vector.load %arg17[%c16_72, %c0_73] : memref<64x32xf32, #tpu.memory_space<vmem>>, vector<8x32xf32>
    %c16_74 = arith.constant 16 : index
    %c0_75 = arith.constant 0 : index
    %106 = vector.load %arg18[%c16_74, %c0_75] : memref<64x32xf32, #tpu.memory_space<vmem>>, vector<8x32xf32>
    %cst_76 = arith.constant dense<0.000000e+00> : vector<8x32xf32>
    %107 = tpu.matmul %102, %26, %cst_76 {dimension_numbers = #tpu.dot_dimension_numbers<[1], [0], [0], [1], [0, 0, 1, 1], [], []>} : vector<8x32xf32>, vector<32x32xf32>, vector<8x32xf32> -> vector<8x32xf32>
    %108 = vector.broadcast %32 : vector<1x32xf32> to vector<8x32xf32>
    %109 = arith.addf %107, %108 : vector<8x32xf32>
    %cst_77 = arith.constant dense<0.000000e+00> : vector<8x32xf32>
    %110 = tpu.matmul %102, %28, %cst_77 {dimension_numbers = #tpu.dot_dimension_numbers<[1], [0], [0], [1], [0, 0, 1, 1], [], []>} : vector<8x32xf32>, vector<32x32xf32>, vector<8x32xf32> -> vector<8x32xf32>
    %111 = vector.broadcast %34 : vector<1x32xf32> to vector<8x32xf32>
    %112 = arith.addf %110, %111 : vector<8x32xf32>
    %cst_78 = arith.constant dense<0.000000e+00> : vector<8x32xf32>
    %113 = tpu.matmul %102, %30, %cst_78 {dimension_numbers = #tpu.dot_dimension_numbers<[1], [0], [0], [1], [0, 0, 1, 1], [], []>} : vector<8x32xf32>, vector<32x32xf32>, vector<8x32xf32> -> vector<8x32xf32>
    %114 = vector.broadcast %36 : vector<1x32xf32> to vector<8x32xf32>
    %115 = arith.addf %113, %114 : vector<8x32xf32>
    %116 = arith.addf %104, %109 : vector<8x32xf32>
    %117 = arith.negf %116 : vector<8x32xf32>
    %118 = math.exp %117 : vector<8x32xf32>
    %cst_79 = arith.constant 1.000000e+00 : f32
    %119 = vector.broadcast %cst_79 : f32 to vector<8x32xf32>
    %120 = arith.addf %119, %118 : vector<8x32xf32>
    %121 = arith.divf %119, %120 : vector<8x32xf32>
    %122 = arith.addf %105, %112 : vector<8x32xf32>
    %123 = arith.negf %122 : vector<8x32xf32>
    %124 = math.exp %123 : vector<8x32xf32>
    %cst_80 = arith.constant 1.000000e+00 : f32
    %125 = vector.broadcast %cst_80 : f32 to vector<8x32xf32>
    %126 = arith.addf %125, %124 : vector<8x32xf32>
    %127 = arith.divf %125, %126 : vector<8x32xf32>
    %128 = arith.mulf %121, %115 : vector<8x32xf32>
    %129 = arith.addf %106, %128 : vector<8x32xf32>
    %130 = math.tanh %129 : vector<8x32xf32>
    %cst_81 = arith.constant 1.000000e+00 : f32
    %131 = vector.broadcast %cst_81 : f32 to vector<8x32xf32>
    %132 = arith.subf %131, %127 : vector<8x32xf32>
    %133 = arith.mulf %132, %130 : vector<8x32xf32>
    %134 = arith.mulf %127, %102 : vector<8x32xf32>
    %135 = arith.addf %133, %134 : vector<8x32xf32>
    %c16_82 = arith.constant 16 : index
    %c0_83 = arith.constant 0 : index
    %136 = vector.load %arg19[%c16_82, %c0_83] : memref<64x32xf32, #tpu.memory_space<vmem>>, vector<8x32xf32>
    tpu.vector_store %arg19[%c16_82, %c0_83], %135 {strides = array<i32>} : memref<64x32xf32, #tpu.memory_space<vmem>>, vector<8x32xf32>,
    %c24 = arith.constant 24 : index
    %c0_84 = arith.constant 0 : index
    %137 = vector.load %arg16[%c24, %c0_84] : memref<64x32xf32, #tpu.memory_space<vmem>>, vector<8x32xf32>
    %c24_85 = arith.constant 24 : index
    %c0_86 = arith.constant 0 : index
    %138 = vector.load %arg17[%c24_85, %c0_86] : memref<64x32xf32, #tpu.memory_space<vmem>>, vector<8x32xf32>
    %c24_87 = arith.constant 24 : index
    %c0_88 = arith.constant 0 : index
    %139 = vector.load %arg18[%c24_87, %c0_88] : memref<64x32xf32, #tpu.memory_space<vmem>>, vector<8x32xf32>
    %cst_89 = arith.constant dense<0.000000e+00> : vector<8x32xf32>
    %140 = tpu.matmul %135, %26, %cst_89 {dimension_numbers = #tpu.dot_dimension_numbers<[1], [0], [0], [1], [0, 0, 1, 1], [], []>} : vector<8x32xf32>, vector<32x32xf32>, vector<8x32xf32> -> vector<8x32xf32>
    %141 = vector.broadcast %32 : vector<1x32xf32> to vector<8x32xf32>
    %142 = arith.addf %140, %141 : vector<8x32xf32>
    %cst_90 = arith.constant dense<0.000000e+00> : vector<8x32xf32>
    %143 = tpu.matmul %135, %28, %cst_90 {dimension_numbers = #tpu.dot_dimension_numbers<[1], [0], [0], [1], [0, 0, 1, 1], [], []>} : vector<8x32xf32>, vector<32x32xf32>, vector<8x32xf32> -> vector<8x32xf32>
    %144 = vector.broadcast %34 : vector<1x32xf32> to vector<8x32xf32>
    %145 = arith.addf %143, %144 : vector<8x32xf32>
    %cst_91 = arith.constant dense<0.000000e+00> : vector<8x32xf32>
    %146 = tpu.matmul %135, %30, %cst_91 {dimension_numbers = #tpu.dot_dimension_numbers<[1], [0], [0], [1], [0, 0, 1, 1], [], []>} : vector<8x32xf32>, vector<32x32xf32>, vector<8x32xf32> -> vector<8x32xf32>
    %147 = vector.broadcast %36 : vector<1x32xf32> to vector<8x32xf32>
    %148 = arith.addf %146, %147 : vector<8x32xf32>
    %149 = arith.addf %137, %142 : vector<8x32xf32>
    %150 = arith.negf %149 : vector<8x32xf32>
    %151 = math.exp %150 : vector<8x32xf32>
    %cst_92 = arith.constant 1.000000e+00 : f32
    %152 = vector.broadcast %cst_92 : f32 to vector<8x32xf32>
    %153 = arith.addf %152, %151 : vector<8x32xf32>
    %154 = arith.divf %152, %153 : vector<8x32xf32>
    %155 = arith.addf %138, %145 : vector<8x32xf32>
    %156 = arith.negf %155 : vector<8x32xf32>
    %157 = math.exp %156 : vector<8x32xf32>
    %cst_93 = arith.constant 1.000000e+00 : f32
    %158 = vector.broadcast %cst_93 : f32 to vector<8x32xf32>
    %159 = arith.addf %158, %157 : vector<8x32xf32>
    %160 = arith.divf %158, %159 : vector<8x32xf32>
    %161 = arith.mulf %154, %148 : vector<8x32xf32>
    %162 = arith.addf %139, %161 : vector<8x32xf32>
    %163 = math.tanh %162 : vector<8x32xf32>
    %cst_94 = arith.constant 1.000000e+00 : f32
    %164 = vector.broadcast %cst_94 : f32 to vector<8x32xf32>
    %165 = arith.subf %164, %160 : vector<8x32xf32>
    %166 = arith.mulf %165, %163 : vector<8x32xf32>
    %167 = arith.mulf %160, %135 : vector<8x32xf32>
    %168 = arith.addf %166, %167 : vector<8x32xf32>
    %c24_95 = arith.constant 24 : index
    %c0_96 = arith.constant 0 : index
    %169 = vector.load %arg19[%c24_95, %c0_96] : memref<64x32xf32, #tpu.memory_space<vmem>>, vector<8x32xf32>
    tpu.vector_store %arg19[%c24_95, %c0_96], %168 {strides = array<i32>} : memref<64x32xf32, #tpu.memory_space<vmem>>, vector<8x32xf32>,
    %c32 = arith.constant 32 : index
    %c0_97 = arith.constant 0 : index
    %170 = vector.load %arg16[%c32, %c0_97] : memref<64x32xf32, #tpu.memory_space<vmem>>, vector<8x32xf32>
    %c32_98 = arith.constant 32 : index
    %c0_99 = arith.constant 0 : index
    %171 = vector.load %arg17[%c32_98, %c0_99] : memref<64x32xf32, #tpu.memory_space<vmem>>, vector<8x32xf32>
    %c32_100 = arith.constant 32 : index
    %c0_101 = arith.constant 0 : index
    %172 = vector.load %arg18[%c32_100, %c0_101] : memref<64x32xf32, #tpu.memory_space<vmem>>, vector<8x32xf32>
    %cst_102 = arith.constant dense<0.000000e+00> : vector<8x32xf32>
    %173 = tpu.matmul %168, %26, %cst_102 {dimension_numbers = #tpu.dot_dimension_numbers<[1], [0], [0], [1], [0, 0, 1, 1], [], []>} : vector<8x32xf32>, vector<32x32xf32>, vector<8x32xf32> -> vector<8x32xf32>
    %174 = vector.broadcast %32 : vector<1x32xf32> to vector<8x32xf32>
    %175 = arith.addf %173, %174 : vector<8x32xf32>
    %cst_103 = arith.constant dense<0.000000e+00> : vector<8x32xf32>
    %176 = tpu.matmul %168, %28, %cst_103 {dimension_numbers = #tpu.dot_dimension_numbers<[1], [0], [0], [1], [0, 0, 1, 1], [], []>} : vector<8x32xf32>, vector<32x32xf32>, vector<8x32xf32> -> vector<8x32xf32>
    %177 = vector.broadcast %34 : vector<1x32xf32> to vector<8x32xf32>
    %178 = arith.addf %176, %177 : vector<8x32xf32>
    %cst_104 = arith.constant dense<0.000000e+00> : vector<8x32xf32>
    %179 = tpu.matmul %168, %30, %cst_104 {dimension_numbers = #tpu.dot_dimension_numbers<[1], [0], [0], [1], [0, 0, 1, 1], [], []>} : vector<8x32xf32>, vector<32x32xf32>, vector<8x32xf32> -> vector<8x32xf32>
    %180 = vector.broadcast %36 : vector<1x32xf32> to vector<8x32xf32>
    %181 = arith.addf %179, %180 : vector<8x32xf32>
    %182 = arith.addf %170, %175 : vector<8x32xf32>
    %183 = arith.negf %182 : vector<8x32xf32>
    %184 = math.exp %183 : vector<8x32xf32>
    %cst_105 = arith.constant 1.000000e+00 : f32
    %185 = vector.broadcast %cst_105 : f32 to vector<8x32xf32>
    %186 = arith.addf %185, %184 : vector<8x32xf32>
    %187 = arith.divf %185, %186 : vector<8x32xf32>
    %188 = arith.addf %171, %178 : vector<8x32xf32>
    %189 = arith.negf %188 : vector<8x32xf32>
    %190 = math.exp %189 : vector<8x32xf32>
    %cst_106 = arith.constant 1.000000e+00 : f32
    %191 = vector.broadcast %cst_106 : f32 to vector<8x32xf32>
    %192 = arith.addf %191, %190 : vector<8x32xf32>
    %193 = arith.divf %191, %192 : vector<8x32xf32>
    %194 = arith.mulf %187, %181 : vector<8x32xf32>
    %195 = arith.addf %172, %194 : vector<8x32xf32>
    %196 = math.tanh %195 : vector<8x32xf32>
    %cst_107 = arith.constant 1.000000e+00 : f32
    %197 = vector.broadcast %cst_107 : f32 to vector<8x32xf32>
    %198 = arith.subf %197, %193 : vector<8x32xf32>
    %199 = arith.mulf %198, %196 : vector<8x32xf32>
    %200 = arith.mulf %193, %168 : vector<8x32xf32>
    %201 = arith.addf %199, %200 : vector<8x32xf32>
    %c32_108 = arith.constant 32 : index
    %c0_109 = arith.constant 0 : index
    %202 = vector.load %arg19[%c32_108, %c0_109] : memref<64x32xf32, #tpu.memory_space<vmem>>, vector<8x32xf32>
    tpu.vector_store %arg19[%c32_108, %c0_109], %201 {strides = array<i32>} : memref<64x32xf32, #tpu.memory_space<vmem>>, vector<8x32xf32>,
    %c40 = arith.constant 40 : index
    %c0_110 = arith.constant 0 : index
    %203 = vector.load %arg16[%c40, %c0_110] : memref<64x32xf32, #tpu.memory_space<vmem>>, vector<8x32xf32>
    %c40_111 = arith.constant 40 : index
    %c0_112 = arith.constant 0 : index
    %204 = vector.load %arg17[%c40_111, %c0_112] : memref<64x32xf32, #tpu.memory_space<vmem>>, vector<8x32xf32>
    %c40_113 = arith.constant 40 : index
    %c0_114 = arith.constant 0 : index
    %205 = vector.load %arg18[%c40_113, %c0_114] : memref<64x32xf32, #tpu.memory_space<vmem>>, vector<8x32xf32>
    %cst_115 = arith.constant dense<0.000000e+00> : vector<8x32xf32>
    %206 = tpu.matmul %201, %26, %cst_115 {dimension_numbers = #tpu.dot_dimension_numbers<[1], [0], [0], [1], [0, 0, 1, 1], [], []>} : vector<8x32xf32>, vector<32x32xf32>, vector<8x32xf32> -> vector<8x32xf32>
    %207 = vector.broadcast %32 : vector<1x32xf32> to vector<8x32xf32>
    %208 = arith.addf %206, %207 : vector<8x32xf32>
    %cst_116 = arith.constant dense<0.000000e+00> : vector<8x32xf32>
    %209 = tpu.matmul %201, %28, %cst_116 {dimension_numbers = #tpu.dot_dimension_numbers<[1], [0], [0], [1], [0, 0, 1, 1], [], []>} : vector<8x32xf32>, vector<32x32xf32>, vector<8x32xf32> -> vector<8x32xf32>
    %210 = vector.broadcast %34 : vector<1x32xf32> to vector<8x32xf32>
    %211 = arith.addf %209, %210 : vector<8x32xf32>
    %cst_117 = arith.constant dense<0.000000e+00> : vector<8x32xf32>
    %212 = tpu.matmul %201, %30, %cst_117 {dimension_numbers = #tpu.dot_dimension_numbers<[1], [0], [0], [1], [0, 0, 1, 1], [], []>} : vector<8x32xf32>, vector<32x32xf32>, vector<8x32xf32> -> vector<8x32xf32>
    %213 = vector.broadcast %36 : vector<1x32xf32> to vector<8x32xf32>
    %214 = arith.addf %212, %213 : vector<8x32xf32>
    %215 = arith.addf %203, %208 : vector<8x32xf32>
    %216 = arith.negf %215 : vector<8x32xf32>
    %217 = math.exp %216 : vector<8x32xf32>
    %cst_118 = arith.constant 1.000000e+00 : f32
    %218 = vector.broadcast %cst_118 : f32 to vector<8x32xf32>
    %219 = arith.addf %218, %217 : vector<8x32xf32>
    %220 = arith.divf %218, %219 : vector<8x32xf32>
    %221 = arith.addf %204, %211 : vector<8x32xf32>
    %222 = arith.negf %221 : vector<8x32xf32>
    %223 = math.exp %222 : vector<8x32xf32>
    %cst_119 = arith.constant 1.000000e+00 : f32
    %224 = vector.broadcast %cst_119 : f32 to vector<8x32xf32>
    %225 = arith.addf %224, %223 : vector<8x32xf32>
    %226 = arith.divf %224, %225 : vector<8x32xf32>
    %227 = arith.mulf %220, %214 : vector<8x32xf32>
    %228 = arith.addf %205, %227 : vector<8x32xf32>
    %229 = math.tanh %228 : vector<8x32xf32>
    %cst_120 = arith.constant 1.000000e+00 : f32
    %230 = vector.broadcast %cst_120 : f32 to vector<8x32xf32>
    %231 = arith.subf %230, %226 : vector<8x32xf32>
    %232 = arith.mulf %231, %229 : vector<8x32xf32>
    %233 = arith.mulf %226, %201 : vector<8x32xf32>
    %234 = arith.addf %232, %233 : vector<8x32xf32>
    %c40_121 = arith.constant 40 : index
    %c0_122 = arith.constant 0 : index
    %235 = vector.load %arg19[%c40_121, %c0_122] : memref<64x32xf32, #tpu.memory_space<vmem>>, vector<8x32xf32>
    tpu.vector_store %arg19[%c40_121, %c0_122], %234 {strides = array<i32>} : memref<64x32xf32, #tpu.memory_space<vmem>>, vector<8x32xf32>,
    %c48 = arith.constant 48 : index
    %c0_123 = arith.constant 0 : index
    %236 = vector.load %arg16[%c48, %c0_123] : memref<64x32xf32, #tpu.memory_space<vmem>>, vector<8x32xf32>
    %c48_124 = arith.constant 48 : index
    %c0_125 = arith.constant 0 : index
    %237 = vector.load %arg17[%c48_124, %c0_125] : memref<64x32xf32, #tpu.memory_space<vmem>>, vector<8x32xf32>
    %c48_126 = arith.constant 48 : index
    %c0_127 = arith.constant 0 : index
    %238 = vector.load %arg18[%c48_126, %c0_127] : memref<64x32xf32, #tpu.memory_space<vmem>>, vector<8x32xf32>
    %cst_128 = arith.constant dense<0.000000e+00> : vector<8x32xf32>
    %239 = tpu.matmul %234, %26, %cst_128 {dimension_numbers = #tpu.dot_dimension_numbers<[1], [0], [0], [1], [0, 0, 1, 1], [], []>} : vector<8x32xf32>, vector<32x32xf32>, vector<8x32xf32> -> vector<8x32xf32>
    %240 = vector.broadcast %32 : vector<1x32xf32> to vector<8x32xf32>
    %241 = arith.addf %239, %240 : vector<8x32xf32>
    %cst_129 = arith.constant dense<0.000000e+00> : vector<8x32xf32>
    %242 = tpu.matmul %234, %28, %cst_129 {dimension_numbers = #tpu.dot_dimension_numbers<[1], [0], [0], [1], [0, 0, 1, 1], [], []>} : vector<8x32xf32>, vector<32x32xf32>, vector<8x32xf32> -> vector<8x32xf32>
    %243 = vector.broadcast %34 : vector<1x32xf32> to vector<8x32xf32>
    %244 = arith.addf %242, %243 : vector<8x32xf32>
    %cst_130 = arith.constant dense<0.000000e+00> : vector<8x32xf32>
    %245 = tpu.matmul %234, %30, %cst_130 {dimension_numbers = #tpu.dot_dimension_numbers<[1], [0], [0], [1], [0, 0, 1, 1], [], []>} : vector<8x32xf32>, vector<32x32xf32>, vector<8x32xf32> -> vector<8x32xf32>
    %246 = vector.broadcast %36 : vector<1x32xf32> to vector<8x32xf32>
    %247 = arith.addf %245, %246 : vector<8x32xf32>
    %248 = arith.addf %236, %241 : vector<8x32xf32>
    %249 = arith.negf %248 : vector<8x32xf32>
    %250 = math.exp %249 : vector<8x32xf32>
    %cst_131 = arith.constant 1.000000e+00 : f32
    %251 = vector.broadcast %cst_131 : f32 to vector<8x32xf32>
    %252 = arith.addf %251, %250 : vector<8x32xf32>
    %253 = arith.divf %251, %252 : vector<8x32xf32>
    %254 = arith.addf %237, %244 : vector<8x32xf32>
    %255 = arith.negf %254 : vector<8x32xf32>
    %256 = math.exp %255 : vector<8x32xf32>
    %cst_132 = arith.constant 1.000000e+00 : f32
    %257 = vector.broadcast %cst_132 : f32 to vector<8x32xf32>
    %258 = arith.addf %257, %256 : vector<8x32xf32>
    %259 = arith.divf %257, %258 : vector<8x32xf32>
    %260 = arith.mulf %253, %247 : vector<8x32xf32>
    %261 = arith.addf %238, %260 : vector<8x32xf32>
    %262 = math.tanh %261 : vector<8x32xf32>
    %cst_133 = arith.constant 1.000000e+00 : f32
    %263 = vector.broadcast %cst_133 : f32 to vector<8x32xf32>
    %264 = arith.subf %263, %259 : vector<8x32xf32>
    %265 = arith.mulf %264, %262 : vector<8x32xf32>
    %266 = arith.mulf %259, %234 : vector<8x32xf32>
    %267 = arith.addf %265, %266 : vector<8x32xf32>
    %c48_134 = arith.constant 48 : index
    %c0_135 = arith.constant 0 : index
    %268 = vector.load %arg19[%c48_134, %c0_135] : memref<64x32xf32, #tpu.memory_space<vmem>>, vector<8x32xf32>
    tpu.vector_store %arg19[%c48_134, %c0_135], %267 {strides = array<i32>} : memref<64x32xf32, #tpu.memory_space<vmem>>, vector<8x32xf32>,
    %c56 = arith.constant 56 : index
    %c0_136 = arith.constant 0 : index
    %269 = vector.load %arg16[%c56, %c0_136] : memref<64x32xf32, #tpu.memory_space<vmem>>, vector<8x32xf32>
    %c56_137 = arith.constant 56 : index
    %c0_138 = arith.constant 0 : index
    %270 = vector.load %arg17[%c56_137, %c0_138] : memref<64x32xf32, #tpu.memory_space<vmem>>, vector<8x32xf32>
    %c56_139 = arith.constant 56 : index
    %c0_140 = arith.constant 0 : index
    %271 = vector.load %arg18[%c56_139, %c0_140] : memref<64x32xf32, #tpu.memory_space<vmem>>, vector<8x32xf32>
    %cst_141 = arith.constant dense<0.000000e+00> : vector<8x32xf32>
    %272 = tpu.matmul %267, %26, %cst_141 {dimension_numbers = #tpu.dot_dimension_numbers<[1], [0], [0], [1], [0, 0, 1, 1], [], []>} : vector<8x32xf32>, vector<32x32xf32>, vector<8x32xf32> -> vector<8x32xf32>
    %273 = vector.broadcast %32 : vector<1x32xf32> to vector<8x32xf32>
    %274 = arith.addf %272, %273 : vector<8x32xf32>
    %cst_142 = arith.constant dense<0.000000e+00> : vector<8x32xf32>
    %275 = tpu.matmul %267, %28, %cst_142 {dimension_numbers = #tpu.dot_dimension_numbers<[1], [0], [0], [1], [0, 0, 1, 1], [], []>} : vector<8x32xf32>, vector<32x32xf32>, vector<8x32xf32> -> vector<8x32xf32>
    %276 = vector.broadcast %34 : vector<1x32xf32> to vector<8x32xf32>
    %277 = arith.addf %275, %276 : vector<8x32xf32>
    %cst_143 = arith.constant dense<0.000000e+00> : vector<8x32xf32>
    %278 = tpu.matmul %267, %30, %cst_143 {dimension_numbers = #tpu.dot_dimension_numbers<[1], [0], [0], [1], [0, 0, 1, 1], [], []>} : vector<8x32xf32>, vector<32x32xf32>, vector<8x32xf32> -> vector<8x32xf32>
    %279 = vector.broadcast %36 : vector<1x32xf32> to vector<8x32xf32>
    %280 = arith.addf %278, %279 : vector<8x32xf32>
    %281 = arith.addf %269, %274 : vector<8x32xf32>
    %282 = arith.negf %281 : vector<8x32xf32>
    %283 = math.exp %282 : vector<8x32xf32>
    %cst_144 = arith.constant 1.000000e+00 : f32
    %284 = vector.broadcast %cst_144 : f32 to vector<8x32xf32>
    %285 = arith.addf %284, %283 : vector<8x32xf32>
    %286 = arith.divf %284, %285 : vector<8x32xf32>
    %287 = arith.addf %270, %277 : vector<8x32xf32>
    %288 = arith.negf %287 : vector<8x32xf32>
    %289 = math.exp %288 : vector<8x32xf32>
    %cst_145 = arith.constant 1.000000e+00 : f32
    %290 = vector.broadcast %cst_145 : f32 to vector<8x32xf32>
    %291 = arith.addf %290, %289 : vector<8x32xf32>
    %292 = arith.divf %290, %291 : vector<8x32xf32>
    %293 = arith.mulf %286, %280 : vector<8x32xf32>
    %294 = arith.addf %271, %293 : vector<8x32xf32>
    %295 = math.tanh %294 : vector<8x32xf32>
    %cst_146 = arith.constant 1.000000e+00 : f32
    %296 = vector.broadcast %cst_146 : f32 to vector<8x32xf32>
    %297 = arith.subf %296, %292 : vector<8x32xf32>
    %298 = arith.mulf %297, %295 : vector<8x32xf32>
    %299 = arith.mulf %292, %267 : vector<8x32xf32>
    %300 = arith.addf %298, %299 : vector<8x32xf32>
    %c56_147 = arith.constant 56 : index
    %c0_148 = arith.constant 0 : index
    %301 = vector.load %arg19[%c56_147, %c0_148] : memref<64x32xf32, #tpu.memory_space<vmem>>, vector<8x32xf32>
    tpu.vector_store %arg19[%c56_147, %c0_148], %300 {strides = array<i32>} : memref<64x32xf32, #tpu.memory_space<vmem>>, vector<8x32xf32>,
    %c0_149 = arith.constant 0 : index
    %c0_150 = arith.constant 0 : index
    %302 = vector.load %arg19[%c0_149, %c0_150] : memref<64x32xf32, #tpu.memory_space<vmem>>, vector<64x32xf32>
    %c0_151 = arith.constant 0 : index
    %c0_152 = arith.constant 0 : index
    %c0_153 = arith.constant 0 : index
    %303 = vector.load %arg5[%c0_151, %c0_152, %c0_153] : memref<3x32x32xf32, #tpu.memory_space<vmem>>, vector<1x32x32xf32>
    %304 = vector.shape_cast %303 : vector<1x32x32xf32> to vector<32x32xf32>
    %cst_154 = arith.constant dense<0.000000e+00> : vector<64x32xf32>
    %305 = tpu.matmul %302, %304, %cst_154 {dimension_numbers = #tpu.dot_dimension_numbers<[1], [0], [0], [1], [0, 0, 1, 1], [], []>} : vector<64x32xf32>, vector<32x32xf32>, vector<64x32xf32> -> vector<64x32xf32>
    %c0_155 = arith.constant 0 : index
    %c0_156 = arith.constant 0 : index
    %c0_157 = arith.constant 0 : index
    %306 = vector.load %arg7[%c0_155, %c0_156, %c0_157] : memref<3x1x32xf32, #tpu.memory_space<vmem>>, vector<1x1x32xf32>
    %307 = vector.shape_cast %306 : vector<1x1x32xf32> to vector<1x32xf32>
    %308 = vector.broadcast %307 : vector<1x32xf32> to vector<64x32xf32>
    %309 = arith.addf %305, %308 : vector<64x32xf32>
    %c0_158 = arith.constant 0 : index
    %c0_159 = arith.constant 0 : index
    %310 = vector.load %arg16[%c0_158, %c0_159] : memref<64x32xf32, #tpu.memory_space<vmem>>, vector<64x32xf32>
    tpu.vector_store %arg16[%c0_158, %c0_159], %309 {strides = array<i32>} : memref<64x32xf32, #tpu.memory_space<vmem>>, vector<64x32xf32>,
    %c1_160 = arith.constant 1 : index
    %c0_161 = arith.constant 0 : index
    %c0_162 = arith.constant 0 : index
    %311 = vector.load %arg5[%c1_160, %c0_161, %c0_162] : memref<3x32x32xf32, #tpu.memory_space<vmem>>, vector<1x32x32xf32>
    %312 = vector.shape_cast %311 : vector<1x32x32xf32> to vector<32x32xf32>
    %cst_163 = arith.constant dense<0.000000e+00> : vector<64x32xf32>
    %313 = tpu.matmul %302, %312, %cst_163 {dimension_numbers = #tpu.dot_dimension_numbers<[1], [0], [0], [1], [0, 0, 1, 1], [], []>} : vector<64x32xf32>, vector<32x32xf32>, vector<64x32xf32> -> vector<64x32xf32>
    %c1_164 = arith.constant 1 : index
    %c0_165 = arith.constant 0 : index
    %c0_166 = arith.constant 0 : index
    %314 = vector.load %arg7[%c1_164, %c0_165, %c0_166] : memref<3x1x32xf32, #tpu.memory_space<vmem>>, vector<1x1x32xf32>
    %315 = vector.shape_cast %314 : vector<1x1x32xf32> to vector<1x32xf32>
    %316 = vector.broadcast %315 : vector<1x32xf32> to vector<64x32xf32>
    %317 = arith.addf %313, %316 : vector<64x32xf32>
    %c0_167 = arith.constant 0 : index
    %c0_168 = arith.constant 0 : index
    %318 = vector.load %arg17[%c0_167, %c0_168] : memref<64x32xf32, #tpu.memory_space<vmem>>, vector<64x32xf32>
    tpu.vector_store %arg17[%c0_167, %c0_168], %317 {strides = array<i32>} : memref<64x32xf32, #tpu.memory_space<vmem>>, vector<64x32xf32>,
    %c2_169 = arith.constant 2 : index
    %c0_170 = arith.constant 0 : index
    %c0_171 = arith.constant 0 : index
    %319 = vector.load %arg5[%c2_169, %c0_170, %c0_171] : memref<3x32x32xf32, #tpu.memory_space<vmem>>, vector<1x32x32xf32>
    %320 = vector.shape_cast %319 : vector<1x32x32xf32> to vector<32x32xf32>
    %cst_172 = arith.constant dense<0.000000e+00> : vector<64x32xf32>
    %321 = tpu.matmul %302, %320, %cst_172 {dimension_numbers = #tpu.dot_dimension_numbers<[1], [0], [0], [1], [0, 0, 1, 1], [], []>} : vector<64x32xf32>, vector<32x32xf32>, vector<64x32xf32> -> vector<64x32xf32>
    %c2_173 = arith.constant 2 : index
    %c0_174 = arith.constant 0 : index
    %c0_175 = arith.constant 0 : index
    %322 = vector.load %arg7[%c2_173, %c0_174, %c0_175] : memref<3x1x32xf32, #tpu.memory_space<vmem>>, vector<1x1x32xf32>
    %323 = vector.shape_cast %322 : vector<1x1x32xf32> to vector<1x32xf32>
    %324 = vector.broadcast %323 : vector<1x32xf32> to vector<64x32xf32>
    %325 = arith.addf %321, %324 : vector<64x32xf32>
    %c0_176 = arith.constant 0 : index
    %c0_177 = arith.constant 0 : index
    %326 = vector.load %arg18[%c0_176, %c0_177] : memref<64x32xf32, #tpu.memory_space<vmem>>, vector<64x32xf32>
    tpu.vector_store %arg18[%c0_176, %c0_177], %325 {strides = array<i32>} : memref<64x32xf32, #tpu.memory_space<vmem>>, vector<64x32xf32>,
    %c0_178 = arith.constant 0 : index
    %c0_179 = arith.constant 0 : index
    %c0_180 = arith.constant 0 : index
    %327 = vector.load %arg6[%c0_178, %c0_179, %c0_180] : memref<3x32x32xf32, #tpu.memory_space<vmem>>, vector<1x32x32xf32>
    %328 = vector.shape_cast %327 : vector<1x32x32xf32> to vector<32x32xf32>
    %c1_181 = arith.constant 1 : index
    %c0_182 = arith.constant 0 : index
    %c0_183 = arith.constant 0 : index
    %329 = vector.load %arg6[%c1_181, %c0_182, %c0_183] : memref<3x32x32xf32, #tpu.memory_space<vmem>>, vector<1x32x32xf32>
    %330 = vector.shape_cast %329 : vector<1x32x32xf32> to vector<32x32xf32>
    %c2_184 = arith.constant 2 : index
    %c0_185 = arith.constant 0 : index
    %c0_186 = arith.constant 0 : index
    %331 = vector.load %arg6[%c2_184, %c0_185, %c0_186] : memref<3x32x32xf32, #tpu.memory_space<vmem>>, vector<1x32x32xf32>
    %332 = vector.shape_cast %331 : vector<1x32x32xf32> to vector<32x32xf32>
    %c0_187 = arith.constant 0 : index
    %c0_188 = arith.constant 0 : index
    %c0_189 = arith.constant 0 : index
    %333 = vector.load %arg8[%c0_187, %c0_188, %c0_189] : memref<3x1x32xf32, #tpu.memory_space<vmem>>, vector<1x1x32xf32>
    %334 = vector.shape_cast %333 : vector<1x1x32xf32> to vector<1x32xf32>
    %c1_190 = arith.constant 1 : index
    %c0_191 = arith.constant 0 : index
    %c0_192 = arith.constant 0 : index
    %335 = vector.load %arg8[%c1_190, %c0_191, %c0_192] : memref<3x1x32xf32, #tpu.memory_space<vmem>>, vector<1x1x32xf32>
    %336 = vector.shape_cast %335 : vector<1x1x32xf32> to vector<1x32xf32>
    %c2_193 = arith.constant 2 : index
    %c0_194 = arith.constant 0 : index
    %c0_195 = arith.constant 0 : index
    %337 = vector.load %arg8[%c2_193, %c0_194, %c0_195] : memref<3x1x32xf32, #tpu.memory_space<vmem>>, vector<1x1x32xf32>
    %338 = vector.shape_cast %337 : vector<1x1x32xf32> to vector<1x32xf32>
    %cst_196 = arith.constant 0.000000e+00 : f32
    %339 = vector.broadcast %cst_196 : f32 to vector<8x32xf32>
    %c0_197 = arith.constant 0 : index
    %c0_198 = arith.constant 0 : index
    %340 = vector.load %arg16[%c0_197, %c0_198] : memref<64x32xf32, #tpu.memory_space<vmem>>, vector<8x32xf32>
    %c0_199 = arith.constant 0 : index
    %c0_200 = arith.constant 0 : index
    %341 = vector.load %arg17[%c0_199, %c0_200] : memref<64x32xf32, #tpu.memory_space<vmem>>, vector<8x32xf32>
    %c0_201 = arith.constant 0 : index
    %c0_202 = arith.constant 0 : index
    %342 = vector.load %arg18[%c0_201, %c0_202] : memref<64x32xf32, #tpu.memory_space<vmem>>, vector<8x32xf32>
    %cst_203 = arith.constant dense<0.000000e+00> : vector<8x32xf32>
    %343 = tpu.matmul %339, %328, %cst_203 {dimension_numbers = #tpu.dot_dimension_numbers<[1], [0], [0], [1], [0, 0, 1, 1], [], []>} : vector<8x32xf32>, vector<32x32xf32>, vector<8x32xf32> -> vector<8x32xf32>
    %344 = vector.broadcast %334 : vector<1x32xf32> to vector<8x32xf32>
    %345 = arith.addf %343, %344 : vector<8x32xf32>
    %cst_204 = arith.constant dense<0.000000e+00> : vector<8x32xf32>
    %346 = tpu.matmul %339, %330, %cst_204 {dimension_numbers = #tpu.dot_dimension_numbers<[1], [0], [0], [1], [0, 0, 1, 1], [], []>} : vector<8x32xf32>, vector<32x32xf32>, vector<8x32xf32> -> vector<8x32xf32>
    %347 = vector.broadcast %336 : vector<1x32xf32> to vector<8x32xf32>
    %348 = arith.addf %346, %347 : vector<8x32xf32>
    %cst_205 = arith.constant dense<0.000000e+00> : vector<8x32xf32>
    %349 = tpu.matmul %339, %332, %cst_205 {dimension_numbers = #tpu.dot_dimension_numbers<[1], [0], [0], [1], [0, 0, 1, 1], [], []>} : vector<8x32xf32>, vector<32x32xf32>, vector<8x32xf32> -> vector<8x32xf32>
    %350 = vector.broadcast %338 : vector<1x32xf32> to vector<8x32xf32>
    %351 = arith.addf %349, %350 : vector<8x32xf32>
    %352 = arith.addf %340, %345 : vector<8x32xf32>
    %353 = arith.negf %352 : vector<8x32xf32>
    %354 = math.exp %353 : vector<8x32xf32>
    %cst_206 = arith.constant 1.000000e+00 : f32
    %355 = vector.broadcast %cst_206 : f32 to vector<8x32xf32>
    %356 = arith.addf %355, %354 : vector<8x32xf32>
    %357 = arith.divf %355, %356 : vector<8x32xf32>
    %358 = arith.addf %341, %348 : vector<8x32xf32>
    %359 = arith.negf %358 : vector<8x32xf32>
    %360 = math.exp %359 : vector<8x32xf32>
    %cst_207 = arith.constant 1.000000e+00 : f32
    %361 = vector.broadcast %cst_207 : f32 to vector<8x32xf32>
    %362 = arith.addf %361, %360 : vector<8x32xf32>
    %363 = arith.divf %361, %362 : vector<8x32xf32>
    %364 = arith.mulf %357, %351 : vector<8x32xf32>
    %365 = arith.addf %342, %364 : vector<8x32xf32>
    %366 = math.tanh %365 : vector<8x32xf32>
    %cst_208 = arith.constant 1.000000e+00 : f32
    %367 = vector.broadcast %cst_208 : f32 to vector<8x32xf32>
    %368 = arith.subf %367, %363 : vector<8x32xf32>
    %369 = arith.mulf %368, %366 : vector<8x32xf32>
    %370 = arith.mulf %363, %339 : vector<8x32xf32>
    %371 = arith.addf %369, %370 : vector<8x32xf32>
    %c8_209 = arith.constant 8 : index
    %c0_210 = arith.constant 0 : index
    %372 = vector.load %arg16[%c8_209, %c0_210] : memref<64x32xf32, #tpu.memory_space<vmem>>, vector<8x32xf32>
    %c8_211 = arith.constant 8 : index
    %c0_212 = arith.constant 0 : index
    %373 = vector.load %arg17[%c8_211, %c0_212] : memref<64x32xf32, #tpu.memory_space<vmem>>, vector<8x32xf32>
    %c8_213 = arith.constant 8 : index
    %c0_214 = arith.constant 0 : index
    %374 = vector.load %arg18[%c8_213, %c0_214] : memref<64x32xf32, #tpu.memory_space<vmem>>, vector<8x32xf32>
    %cst_215 = arith.constant dense<0.000000e+00> : vector<8x32xf32>
    %375 = tpu.matmul %371, %328, %cst_215 {dimension_numbers = #tpu.dot_dimension_numbers<[1], [0], [0], [1], [0, 0, 1, 1], [], []>} : vector<8x32xf32>, vector<32x32xf32>, vector<8x32xf32> -> vector<8x32xf32>
    %376 = vector.broadcast %334 : vector<1x32xf32> to vector<8x32xf32>
    %377 = arith.addf %375, %376 : vector<8x32xf32>
    %cst_216 = arith.constant dense<0.000000e+00> : vector<8x32xf32>
    %378 = tpu.matmul %371, %330, %cst_216 {dimension_numbers = #tpu.dot_dimension_numbers<[1], [0], [0], [1], [0, 0, 1, 1], [], []>} : vector<8x32xf32>, vector<32x32xf32>, vector<8x32xf32> -> vector<8x32xf32>
    %379 = vector.broadcast %336 : vector<1x32xf32> to vector<8x32xf32>
    %380 = arith.addf %378, %379 : vector<8x32xf32>
    %cst_217 = arith.constant dense<0.000000e+00> : vector<8x32xf32>
    %381 = tpu.matmul %371, %332, %cst_217 {dimension_numbers = #tpu.dot_dimension_numbers<[1], [0], [0], [1], [0, 0, 1, 1], [], []>} : vector<8x32xf32>, vector<32x32xf32>, vector<8x32xf32> -> vector<8x32xf32>
    %382 = vector.broadcast %338 : vector<1x32xf32> to vector<8x32xf32>
    %383 = arith.addf %381, %382 : vector<8x32xf32>
    %384 = arith.addf %372, %377 : vector<8x32xf32>
    %385 = arith.negf %384 : vector<8x32xf32>
    %386 = math.exp %385 : vector<8x32xf32>
    %cst_218 = arith.constant 1.000000e+00 : f32
    %387 = vector.broadcast %cst_218 : f32 to vector<8x32xf32>
    %388 = arith.addf %387, %386 : vector<8x32xf32>
    %389 = arith.divf %387, %388 : vector<8x32xf32>
    %390 = arith.addf %373, %380 : vector<8x32xf32>
    %391 = arith.negf %390 : vector<8x32xf32>
    %392 = math.exp %391 : vector<8x32xf32>
    %cst_219 = arith.constant 1.000000e+00 : f32
    %393 = vector.broadcast %cst_219 : f32 to vector<8x32xf32>
    %394 = arith.addf %393, %392 : vector<8x32xf32>
    %395 = arith.divf %393, %394 : vector<8x32xf32>
    %396 = arith.mulf %389, %383 : vector<8x32xf32>
    %397 = arith.addf %374, %396 : vector<8x32xf32>
    %398 = math.tanh %397 : vector<8x32xf32>
    %cst_220 = arith.constant 1.000000e+00 : f32
    %399 = vector.broadcast %cst_220 : f32 to vector<8x32xf32>
    %400 = arith.subf %399, %395 : vector<8x32xf32>
    %401 = arith.mulf %400, %398 : vector<8x32xf32>
    %402 = arith.mulf %395, %371 : vector<8x32xf32>
    %403 = arith.addf %401, %402 : vector<8x32xf32>
    %c16_221 = arith.constant 16 : index
    %c0_222 = arith.constant 0 : index
    %404 = vector.load %arg16[%c16_221, %c0_222] : memref<64x32xf32, #tpu.memory_space<vmem>>, vector<8x32xf32>
    %c16_223 = arith.constant 16 : index
    %c0_224 = arith.constant 0 : index
    %405 = vector.load %arg17[%c16_223, %c0_224] : memref<64x32xf32, #tpu.memory_space<vmem>>, vector<8x32xf32>
    %c16_225 = arith.constant 16 : index
    %c0_226 = arith.constant 0 : index
    %406 = vector.load %arg18[%c16_225, %c0_226] : memref<64x32xf32, #tpu.memory_space<vmem>>, vector<8x32xf32>
    %cst_227 = arith.constant dense<0.000000e+00> : vector<8x32xf32>
    %407 = tpu.matmul %403, %328, %cst_227 {dimension_numbers = #tpu.dot_dimension_numbers<[1], [0], [0], [1], [0, 0, 1, 1], [], []>} : vector<8x32xf32>, vector<32x32xf32>, vector<8x32xf32> -> vector<8x32xf32>
    %408 = vector.broadcast %334 : vector<1x32xf32> to vector<8x32xf32>
    %409 = arith.addf %407, %408 : vector<8x32xf32>
    %cst_228 = arith.constant dense<0.000000e+00> : vector<8x32xf32>
    %410 = tpu.matmul %403, %330, %cst_228 {dimension_numbers = #tpu.dot_dimension_numbers<[1], [0], [0], [1], [0, 0, 1, 1], [], []>} : vector<8x32xf32>, vector<32x32xf32>, vector<8x32xf32> -> vector<8x32xf32>
    %411 = vector.broadcast %336 : vector<1x32xf32> to vector<8x32xf32>
    %412 = arith.addf %410, %411 : vector<8x32xf32>
    %cst_229 = arith.constant dense<0.000000e+00> : vector<8x32xf32>
    %413 = tpu.matmul %403, %332, %cst_229 {dimension_numbers = #tpu.dot_dimension_numbers<[1], [0], [0], [1], [0, 0, 1, 1], [], []>} : vector<8x32xf32>, vector<32x32xf32>, vector<8x32xf32> -> vector<8x32xf32>
    %414 = vector.broadcast %338 : vector<1x32xf32> to vector<8x32xf32>
    %415 = arith.addf %413, %414 : vector<8x32xf32>
    %416 = arith.addf %404, %409 : vector<8x32xf32>
    %417 = arith.negf %416 : vector<8x32xf32>
    %418 = math.exp %417 : vector<8x32xf32>
    %cst_230 = arith.constant 1.000000e+00 : f32
    %419 = vector.broadcast %cst_230 : f32 to vector<8x32xf32>
    %420 = arith.addf %419, %418 : vector<8x32xf32>
    %421 = arith.divf %419, %420 : vector<8x32xf32>
    %422 = arith.addf %405, %412 : vector<8x32xf32>
    %423 = arith.negf %422 : vector<8x32xf32>
    %424 = math.exp %423 : vector<8x32xf32>
    %cst_231 = arith.constant 1.000000e+00 : f32
    %425 = vector.broadcast %cst_231 : f32 to vector<8x32xf32>
    %426 = arith.addf %425, %424 : vector<8x32xf32>
    %427 = arith.divf %425, %426 : vector<8x32xf32>
    %428 = arith.mulf %421, %415 : vector<8x32xf32>
    %429 = arith.addf %406, %428 : vector<8x32xf32>
    %430 = math.tanh %429 : vector<8x32xf32>
    %cst_232 = arith.constant 1.000000e+00 : f32
    %431 = vector.broadcast %cst_232 : f32 to vector<8x32xf32>
    %432 = arith.subf %431, %427 : vector<8x32xf32>
    %433 = arith.mulf %432, %430 : vector<8x32xf32>
    %434 = arith.mulf %427, %403 : vector<8x32xf32>
    %435 = arith.addf %433, %434 : vector<8x32xf32>
    %c24_233 = arith.constant 24 : index
    %c0_234 = arith.constant 0 : index
    %436 = vector.load %arg16[%c24_233, %c0_234] : memref<64x32xf32, #tpu.memory_space<vmem>>, vector<8x32xf32>
    %c24_235 = arith.constant 24 : index
    %c0_236 = arith.constant 0 : index
    %437 = vector.load %arg17[%c24_235, %c0_236] : memref<64x32xf32, #tpu.memory_space<vmem>>, vector<8x32xf32>
    %c24_237 = arith.constant 24 : index
    %c0_238 = arith.constant 0 : index
    %438 = vector.load %arg18[%c24_237, %c0_238] : memref<64x32xf32, #tpu.memory_space<vmem>>, vector<8x32xf32>
    %cst_239 = arith.constant dense<0.000000e+00> : vector<8x32xf32>
    %439 = tpu.matmul %435, %328, %cst_239 {dimension_numbers = #tpu.dot_dimension_numbers<[1], [0], [0], [1], [0, 0, 1, 1], [], []>} : vector<8x32xf32>, vector<32x32xf32>, vector<8x32xf32> -> vector<8x32xf32>
    %440 = vector.broadcast %334 : vector<1x32xf32> to vector<8x32xf32>
    %441 = arith.addf %439, %440 : vector<8x32xf32>
    %cst_240 = arith.constant dense<0.000000e+00> : vector<8x32xf32>
    %442 = tpu.matmul %435, %330, %cst_240 {dimension_numbers = #tpu.dot_dimension_numbers<[1], [0], [0], [1], [0, 0, 1, 1], [], []>} : vector<8x32xf32>, vector<32x32xf32>, vector<8x32xf32> -> vector<8x32xf32>
    %443 = vector.broadcast %336 : vector<1x32xf32> to vector<8x32xf32>
    %444 = arith.addf %442, %443 : vector<8x32xf32>
    %cst_241 = arith.constant dense<0.000000e+00> : vector<8x32xf32>
    %445 = tpu.matmul %435, %332, %cst_241 {dimension_numbers = #tpu.dot_dimension_numbers<[1], [0], [0], [1], [0, 0, 1, 1], [], []>} : vector<8x32xf32>, vector<32x32xf32>, vector<8x32xf32> -> vector<8x32xf32>
    %446 = vector.broadcast %338 : vector<1x32xf32> to vector<8x32xf32>
    %447 = arith.addf %445, %446 : vector<8x32xf32>
    %448 = arith.addf %436, %441 : vector<8x32xf32>
    %449 = arith.negf %448 : vector<8x32xf32>
    %450 = math.exp %449 : vector<8x32xf32>
    %cst_242 = arith.constant 1.000000e+00 : f32
    %451 = vector.broadcast %cst_242 : f32 to vector<8x32xf32>
    %452 = arith.addf %451, %450 : vector<8x32xf32>
    %453 = arith.divf %451, %452 : vector<8x32xf32>
    %454 = arith.addf %437, %444 : vector<8x32xf32>
    %455 = arith.negf %454 : vector<8x32xf32>
    %456 = math.exp %455 : vector<8x32xf32>
    %cst_243 = arith.constant 1.000000e+00 : f32
    %457 = vector.broadcast %cst_243 : f32 to vector<8x32xf32>
    %458 = arith.addf %457, %456 : vector<8x32xf32>
    %459 = arith.divf %457, %458 : vector<8x32xf32>
    %460 = arith.mulf %453, %447 : vector<8x32xf32>
    %461 = arith.addf %438, %460 : vector<8x32xf32>
    %462 = math.tanh %461 : vector<8x32xf32>
    %cst_244 = arith.constant 1.000000e+00 : f32
    %463 = vector.broadcast %cst_244 : f32 to vector<8x32xf32>
    %464 = arith.subf %463, %459 : vector<8x32xf32>
    %465 = arith.mulf %464, %462 : vector<8x32xf32>
    %466 = arith.mulf %459, %435 : vector<8x32xf32>
    %467 = arith.addf %465, %466 : vector<8x32xf32>
    %c32_245 = arith.constant 32 : index
    %c0_246 = arith.constant 0 : index
    %468 = vector.load %arg16[%c32_245, %c0_246] : memref<64x32xf32, #tpu.memory_space<vmem>>, vector<8x32xf32>
    %c32_247 = arith.constant 32 : index
    %c0_248 = arith.constant 0 : index
    %469 = vector.load %arg17[%c32_247, %c0_248] : memref<64x32xf32, #tpu.memory_space<vmem>>, vector<8x32xf32>
    %c32_249 = arith.constant 32 : index
    %c0_250 = arith.constant 0 : index
    %470 = vector.load %arg18[%c32_249, %c0_250] : memref<64x32xf32, #tpu.memory_space<vmem>>, vector<8x32xf32>
    %cst_251 = arith.constant dense<0.000000e+00> : vector<8x32xf32>
    %471 = tpu.matmul %467, %328, %cst_251 {dimension_numbers = #tpu.dot_dimension_numbers<[1], [0], [0], [1], [0, 0, 1, 1], [], []>} : vector<8x32xf32>, vector<32x32xf32>, vector<8x32xf32> -> vector<8x32xf32>
    %472 = vector.broadcast %334 : vector<1x32xf32> to vector<8x32xf32>
    %473 = arith.addf %471, %472 : vector<8x32xf32>
    %cst_252 = arith.constant dense<0.000000e+00> : vector<8x32xf32>
    %474 = tpu.matmul %467, %330, %cst_252 {dimension_numbers = #tpu.dot_dimension_numbers<[1], [0], [0], [1], [0, 0, 1, 1], [], []>} : vector<8x32xf32>, vector<32x32xf32>, vector<8x32xf32> -> vector<8x32xf32>
    %475 = vector.broadcast %336 : vector<1x32xf32> to vector<8x32xf32>
    %476 = arith.addf %474, %475 : vector<8x32xf32>
    %cst_253 = arith.constant dense<0.000000e+00> : vector<8x32xf32>
    %477 = tpu.matmul %467, %332, %cst_253 {dimension_numbers = #tpu.dot_dimension_numbers<[1], [0], [0], [1], [0, 0, 1, 1], [], []>} : vector<8x32xf32>, vector<32x32xf32>, vector<8x32xf32> -> vector<8x32xf32>
    %478 = vector.broadcast %338 : vector<1x32xf32> to vector<8x32xf32>
    %479 = arith.addf %477, %478 : vector<8x32xf32>
    %480 = arith.addf %468, %473 : vector<8x32xf32>
    %481 = arith.negf %480 : vector<8x32xf32>
    %482 = math.exp %481 : vector<8x32xf32>
    %cst_254 = arith.constant 1.000000e+00 : f32
    %483 = vector.broadcast %cst_254 : f32 to vector<8x32xf32>
    %484 = arith.addf %483, %482 : vector<8x32xf32>
    %485 = arith.divf %483, %484 : vector<8x32xf32>
    %486 = arith.addf %469, %476 : vector<8x32xf32>
    %487 = arith.negf %486 : vector<8x32xf32>
    %488 = math.exp %487 : vector<8x32xf32>
    %cst_255 = arith.constant 1.000000e+00 : f32
    %489 = vector.broadcast %cst_255 : f32 to vector<8x32xf32>
    %490 = arith.addf %489, %488 : vector<8x32xf32>
    %491 = arith.divf %489, %490 : vector<8x32xf32>
    %492 = arith.mulf %485, %479 : vector<8x32xf32>
    %493 = arith.addf %470, %492 : vector<8x32xf32>
    %494 = math.tanh %493 : vector<8x32xf32>
    %cst_256 = arith.constant 1.000000e+00 : f32
    %495 = vector.broadcast %cst_256 : f32 to vector<8x32xf32>
    %496 = arith.subf %495, %491 : vector<8x32xf32>
    %497 = arith.mulf %496, %494 : vector<8x32xf32>
    %498 = arith.mulf %491, %467 : vector<8x32xf32>
    %499 = arith.addf %497, %498 : vector<8x32xf32>
    %c40_257 = arith.constant 40 : index
    %c0_258 = arith.constant 0 : index
    %500 = vector.load %arg16[%c40_257, %c0_258] : memref<64x32xf32, #tpu.memory_space<vmem>>, vector<8x32xf32>
    %c40_259 = arith.constant 40 : index
    %c0_260 = arith.constant 0 : index
    %501 = vector.load %arg17[%c40_259, %c0_260] : memref<64x32xf32, #tpu.memory_space<vmem>>, vector<8x32xf32>
    %c40_261 = arith.constant 40 : index
    %c0_262 = arith.constant 0 : index
    %502 = vector.load %arg18[%c40_261, %c0_262] : memref<64x32xf32, #tpu.memory_space<vmem>>, vector<8x32xf32>
    %cst_263 = arith.constant dense<0.000000e+00> : vector<8x32xf32>
    %503 = tpu.matmul %499, %328, %cst_263 {dimension_numbers = #tpu.dot_dimension_numbers<[1], [0], [0], [1], [0, 0, 1, 1], [], []>} : vector<8x32xf32>, vector<32x32xf32>, vector<8x32xf32> -> vector<8x32xf32>
    %504 = vector.broadcast %334 : vector<1x32xf32> to vector<8x32xf32>
    %505 = arith.addf %503, %504 : vector<8x32xf32>
    %cst_264 = arith.constant dense<0.000000e+00> : vector<8x32xf32>
    %506 = tpu.matmul %499, %330, %cst_264 {dimension_numbers = #tpu.dot_dimension_numbers<[1], [0], [0], [1], [0, 0, 1, 1], [], []>} : vector<8x32xf32>, vector<32x32xf32>, vector<8x32xf32> -> vector<8x32xf32>
    %507 = vector.broadcast %336 : vector<1x32xf32> to vector<8x32xf32>
    %508 = arith.addf %506, %507 : vector<8x32xf32>
    %cst_265 = arith.constant dense<0.000000e+00> : vector<8x32xf32>
    %509 = tpu.matmul %499, %332, %cst_265 {dimension_numbers = #tpu.dot_dimension_numbers<[1], [0], [0], [1], [0, 0, 1, 1], [], []>} : vector<8x32xf32>, vector<32x32xf32>, vector<8x32xf32> -> vector<8x32xf32>
    %510 = vector.broadcast %338 : vector<1x32xf32> to vector<8x32xf32>
    %511 = arith.addf %509, %510 : vector<8x32xf32>
    %512 = arith.addf %500, %505 : vector<8x32xf32>
    %513 = arith.negf %512 : vector<8x32xf32>
    %514 = math.exp %513 : vector<8x32xf32>
    %cst_266 = arith.constant 1.000000e+00 : f32
    %515 = vector.broadcast %cst_266 : f32 to vector<8x32xf32>
    %516 = arith.addf %515, %514 : vector<8x32xf32>
    %517 = arith.divf %515, %516 : vector<8x32xf32>
    %518 = arith.addf %501, %508 : vector<8x32xf32>
    %519 = arith.negf %518 : vector<8x32xf32>
    %520 = math.exp %519 : vector<8x32xf32>
    %cst_267 = arith.constant 1.000000e+00 : f32
    %521 = vector.broadcast %cst_267 : f32 to vector<8x32xf32>
    %522 = arith.addf %521, %520 : vector<8x32xf32>
    %523 = arith.divf %521, %522 : vector<8x32xf32>
    %524 = arith.mulf %517, %511 : vector<8x32xf32>
    %525 = arith.addf %502, %524 : vector<8x32xf32>
    %526 = math.tanh %525 : vector<8x32xf32>
    %cst_268 = arith.constant 1.000000e+00 : f32
    %527 = vector.broadcast %cst_268 : f32 to vector<8x32xf32>
    %528 = arith.subf %527, %523 : vector<8x32xf32>
    %529 = arith.mulf %528, %526 : vector<8x32xf32>
    %530 = arith.mulf %523, %499 : vector<8x32xf32>
    %531 = arith.addf %529, %530 : vector<8x32xf32>
    %c48_269 = arith.constant 48 : index
    %c0_270 = arith.constant 0 : index
    %532 = vector.load %arg16[%c48_269, %c0_270] : memref<64x32xf32, #tpu.memory_space<vmem>>, vector<8x32xf32>
    %c48_271 = arith.constant 48 : index
    %c0_272 = arith.constant 0 : index
    %533 = vector.load %arg17[%c48_271, %c0_272] : memref<64x32xf32, #tpu.memory_space<vmem>>, vector<8x32xf32>
    %c48_273 = arith.constant 48 : index
    %c0_274 = arith.constant 0 : index
    %534 = vector.load %arg18[%c48_273, %c0_274] : memref<64x32xf32, #tpu.memory_space<vmem>>, vector<8x32xf32>
    %cst_275 = arith.constant dense<0.000000e+00> : vector<8x32xf32>
    %535 = tpu.matmul %531, %328, %cst_275 {dimension_numbers = #tpu.dot_dimension_numbers<[1], [0], [0], [1], [0, 0, 1, 1], [], []>} : vector<8x32xf32>, vector<32x32xf32>, vector<8x32xf32> -> vector<8x32xf32>
    %536 = vector.broadcast %334 : vector<1x32xf32> to vector<8x32xf32>
    %537 = arith.addf %535, %536 : vector<8x32xf32>
    %cst_276 = arith.constant dense<0.000000e+00> : vector<8x32xf32>
    %538 = tpu.matmul %531, %330, %cst_276 {dimension_numbers = #tpu.dot_dimension_numbers<[1], [0], [0], [1], [0, 0, 1, 1], [], []>} : vector<8x32xf32>, vector<32x32xf32>, vector<8x32xf32> -> vector<8x32xf32>
    %539 = vector.broadcast %336 : vector<1x32xf32> to vector<8x32xf32>
    %540 = arith.addf %538, %539 : vector<8x32xf32>
    %cst_277 = arith.constant dense<0.000000e+00> : vector<8x32xf32>
    %541 = tpu.matmul %531, %332, %cst_277 {dimension_numbers = #tpu.dot_dimension_numbers<[1], [0], [0], [1], [0, 0, 1, 1], [], []>} : vector<8x32xf32>, vector<32x32xf32>, vector<8x32xf32> -> vector<8x32xf32>
    %542 = vector.broadcast %338 : vector<1x32xf32> to vector<8x32xf32>
    %543 = arith.addf %541, %542 : vector<8x32xf32>
    %544 = arith.addf %532, %537 : vector<8x32xf32>
    %545 = arith.negf %544 : vector<8x32xf32>
    %546 = math.exp %545 : vector<8x32xf32>
    %cst_278 = arith.constant 1.000000e+00 : f32
    %547 = vector.broadcast %cst_278 : f32 to vector<8x32xf32>
    %548 = arith.addf %547, %546 : vector<8x32xf32>
    %549 = arith.divf %547, %548 : vector<8x32xf32>
    %550 = arith.addf %533, %540 : vector<8x32xf32>
    %551 = arith.negf %550 : vector<8x32xf32>
    %552 = math.exp %551 : vector<8x32xf32>
    %cst_279 = arith.constant 1.000000e+00 : f32
    %553 = vector.broadcast %cst_279 : f32 to vector<8x32xf32>
    %554 = arith.addf %553, %552 : vector<8x32xf32>
    %555 = arith.divf %553, %554 : vector<8x32xf32>
    %556 = arith.mulf %549, %543 : vector<8x32xf32>
    %557 = arith.addf %534, %556 : vector<8x32xf32>
    %558 = math.tanh %557 : vector<8x32xf32>
    %cst_280 = arith.constant 1.000000e+00 : f32
    %559 = vector.broadcast %cst_280 : f32 to vector<8x32xf32>
    %560 = arith.subf %559, %555 : vector<8x32xf32>
    %561 = arith.mulf %560, %558 : vector<8x32xf32>
    %562 = arith.mulf %555, %531 : vector<8x32xf32>
    %563 = arith.addf %561, %562 : vector<8x32xf32>
    %c56_281 = arith.constant 56 : index
    %c0_282 = arith.constant 0 : index
    %564 = vector.load %arg16[%c56_281, %c0_282] : memref<64x32xf32, #tpu.memory_space<vmem>>, vector<8x32xf32>
    %c56_283 = arith.constant 56 : index
    %c0_284 = arith.constant 0 : index
    %565 = vector.load %arg17[%c56_283, %c0_284] : memref<64x32xf32, #tpu.memory_space<vmem>>, vector<8x32xf32>
    %c56_285 = arith.constant 56 : index
    %c0_286 = arith.constant 0 : index
    %566 = vector.load %arg18[%c56_285, %c0_286] : memref<64x32xf32, #tpu.memory_space<vmem>>, vector<8x32xf32>
    %cst_287 = arith.constant dense<0.000000e+00> : vector<8x32xf32>
    %567 = tpu.matmul %563, %328, %cst_287 {dimension_numbers = #tpu.dot_dimension_numbers<[1], [0], [0], [1], [0, 0, 1, 1], [], []>} : vector<8x32xf32>, vector<32x32xf32>, vector<8x32xf32> -> vector<8x32xf32>
    %568 = vector.broadcast %334 : vector<1x32xf32> to vector<8x32xf32>
    %569 = arith.addf %567, %568 : vector<8x32xf32>
    %cst_288 = arith.constant dense<0.000000e+00> : vector<8x32xf32>
    %570 = tpu.matmul %563, %330, %cst_288 {dimension_numbers = #tpu.dot_dimension_numbers<[1], [0], [0], [1], [0, 0, 1, 1], [], []>} : vector<8x32xf32>, vector<32x32xf32>, vector<8x32xf32> -> vector<8x32xf32>
    %571 = vector.broadcast %336 : vector<1x32xf32> to vector<8x32xf32>
    %572 = arith.addf %570, %571 : vector<8x32xf32>
    %cst_289 = arith.constant dense<0.000000e+00> : vector<8x32xf32>
    %573 = tpu.matmul %563, %332, %cst_289 {dimension_numbers = #tpu.dot_dimension_numbers<[1], [0], [0], [1], [0, 0, 1, 1], [], []>} : vector<8x32xf32>, vector<32x32xf32>, vector<8x32xf32> -> vector<8x32xf32>
    %574 = vector.broadcast %338 : vector<1x32xf32> to vector<8x32xf32>
    %575 = arith.addf %573, %574 : vector<8x32xf32>
    %576 = arith.addf %564, %569 : vector<8x32xf32>
    %577 = arith.negf %576 : vector<8x32xf32>
    %578 = math.exp %577 : vector<8x32xf32>
    %cst_290 = arith.constant 1.000000e+00 : f32
    %579 = vector.broadcast %cst_290 : f32 to vector<8x32xf32>
    %580 = arith.addf %579, %578 : vector<8x32xf32>
    %581 = arith.divf %579, %580 : vector<8x32xf32>
    %582 = arith.addf %565, %572 : vector<8x32xf32>
    %583 = arith.negf %582 : vector<8x32xf32>
    %584 = math.exp %583 : vector<8x32xf32>
    %cst_291 = arith.constant 1.000000e+00 : f32
    %585 = vector.broadcast %cst_291 : f32 to vector<8x32xf32>
    %586 = arith.addf %585, %584 : vector<8x32xf32>
    %587 = arith.divf %585, %586 : vector<8x32xf32>
    %588 = arith.mulf %581, %575 : vector<8x32xf32>
    %589 = arith.addf %566, %588 : vector<8x32xf32>
    %590 = math.tanh %589 : vector<8x32xf32>
    %cst_292 = arith.constant 1.000000e+00 : f32
    %591 = vector.broadcast %cst_292 : f32 to vector<8x32xf32>
    %592 = arith.subf %591, %587 : vector<8x32xf32>
    %593 = arith.mulf %592, %590 : vector<8x32xf32>
    %594 = arith.mulf %587, %563 : vector<8x32xf32>
    %595 = arith.addf %593, %594 : vector<8x32xf32>
    %c0_293 = arith.constant 0 : index
    %c0_294 = arith.constant 0 : index
    %c0_295 = arith.constant 0 : index
    %596 = vector.load %arg9[%c0_293, %c0_294, %c0_295] : memref<12x1x32xf32, #tpu.memory_space<vmem>>, vector<12x1x32xf32>
    %597 = arith.negf %595 : vector<8x32xf32>
    %598 = math.exp %597 : vector<8x32xf32>
    %cst_296 = arith.constant 1.000000e+00 : f32
    %599 = vector.broadcast %cst_296 : f32 to vector<8x32xf32>
    %600 = arith.addf %599, %598 : vector<8x32xf32>
    %601 = arith.divf %599, %600 : vector<8x32xf32>
    %602 = arith.mulf %595, %601 : vector<8x32xf32>
    %c0_297 = arith.constant 0 : index
    %c0_298 = arith.constant 0 : index
    %603 = vector.load %arg10[%c0_297, %c0_298] : memref<32x10xf32, #tpu.memory_space<vmem>>, vector<32x10xf32>
    %cst_299 = arith.constant dense<0.000000e+00> : vector<8x10xf32>
    %604 = tpu.matmul %602, %603, %cst_299 {dimension_numbers = #tpu.dot_dimension_numbers<[1], [0], [0], [1], [0, 0, 1, 1], [], []>} : vector<8x32xf32>, vector<32x10xf32>, vector<8x10xf32> -> vector<8x10xf32>
    %605 = vector.shape_cast %595 : vector<8x32xf32> to vector<1x8x32xf32>
    %606 = vector.extract_strided_slice %596 {offsets = [0, 0, 0], sizes = [11, 1, 32], strides = [1, 1, 1]} : vector<12x1x32xf32> to vector<11x1x32xf32>
    %607 = vector.broadcast %605 : vector<1x8x32xf32> to vector<11x8x32xf32>
    %608 = vector.broadcast %606 : vector<11x1x32xf32> to vector<11x8x32xf32>
    %609 = arith.cmpf oge, %607, %608 : vector<11x8x32xf32>
    %610 = vector.extract_strided_slice %596 {offsets = [1, 0, 0], sizes = [11, 1, 32], strides = [1, 1, 1]} : vector<12x1x32xf32> to vector<11x1x32xf32>
    %611 = vector.broadcast %605 : vector<1x8x32xf32> to vector<11x8x32xf32>
    %612 = vector.broadcast %610 : vector<11x1x32xf32> to vector<11x8x32xf32>
    %613 = arith.cmpf olt, %611, %612 : vector<11x8x32xf32>
    %614 = arith.andi %609, %613 : vector<11x8x32xi1>
    %615 = arith.extui %614 : vector<11x8x32xi1> to vector<11x8x32xi32>
    %616 = arith.sitofp %615 : vector<11x8x32xi32> to vector<11x8x32xf32>
    %617 = vector.extract_strided_slice %596 {offsets = [0, 0, 0], sizes = [10, 1, 32], strides = [1, 1, 1]} : vector<12x1x32xf32> to vector<10x1x32xf32>
    %618 = vector.broadcast %605 : vector<1x8x32xf32> to vector<10x8x32xf32>
    %619 = vector.broadcast %617 : vector<10x1x32xf32> to vector<10x8x32xf32>
    %620 = arith.subf %618, %619 : vector<10x8x32xf32>
    %cst_300 = arith.constant 2.500000e+00 : f32
    %621 = vector.broadcast %cst_300 : f32 to vector<10x8x32xf32>
    %622 = arith.mulf %620, %621 : vector<10x8x32xf32>
    %623 = vector.extract_strided_slice %596 {offsets = [2, 0, 0], sizes = [10, 1, 32], strides = [1, 1, 1]} : vector<12x1x32xf32> to vector<10x1x32xf32>
    %624 = vector.broadcast %623 : vector<10x1x32xf32> to vector<10x8x32xf32>
    %625 = vector.broadcast %605 : vector<1x8x32xf32> to vector<10x8x32xf32>
    %626 = arith.subf %624, %625 : vector<10x8x32xf32>
    %cst_301 = arith.constant 2.500000e+00 : f32
    %627 = vector.broadcast %cst_301 : f32 to vector<10x8x32xf32>
    %628 = arith.mulf %626, %627 : vector<10x8x32xf32>
    %629 = vector.extract_strided_slice %616 {offsets = [0, 0, 0], sizes = [10, 8, 32], strides = [1, 1, 1]} : vector<11x8x32xf32> to vector<10x8x32xf32>
    %630 = arith.mulf %622, %629 : vector<10x8x32xf32>
    %631 = vector.extract_strided_slice %616 {offsets = [1, 0, 0], sizes = [10, 8, 32], strides = [1, 1, 1]} : vector<11x8x32xf32> to vector<10x8x32xf32>
    %632 = arith.mulf %628, %631 : vector<10x8x32xf32>
    %633 = arith.addf %630, %632 : vector<10x8x32xf32>
    %634 = vector.extract_strided_slice %596 {offsets = [0, 0, 0], sizes = [9, 1, 32], strides = [1, 1, 1]} : vector<12x1x32xf32> to vector<9x1x32xf32>
    %635 = vector.broadcast %605 : vector<1x8x32xf32> to vector<9x8x32xf32>
    %636 = vector.broadcast %634 : vector<9x1x32xf32> to vector<9x8x32xf32>
    %637 = arith.subf %635, %636 : vector<9x8x32xf32>
    %cst_302 = arith.constant 1.250000e+00 : f32
    %638 = vector.broadcast %cst_302 : f32 to vector<9x8x32xf32>
    %639 = arith.mulf %637, %638 : vector<9x8x32xf32>
    %640 = vector.extract_strided_slice %596 {offsets = [3, 0, 0], sizes = [9, 1, 32], strides = [1, 1, 1]} : vector<12x1x32xf32> to vector<9x1x32xf32>
    %641 = vector.broadcast %640 : vector<9x1x32xf32> to vector<9x8x32xf32>
    %642 = vector.broadcast %605 : vector<1x8x32xf32> to vector<9x8x32xf32>
    %643 = arith.subf %641, %642 : vector<9x8x32xf32>
    %cst_303 = arith.constant 1.250000e+00 : f32
    %644 = vector.broadcast %cst_303 : f32 to vector<9x8x32xf32>
    %645 = arith.mulf %643, %644 : vector<9x8x32xf32>
    %646 = vector.extract_strided_slice %633 {offsets = [0, 0, 0], sizes = [9, 8, 32], strides = [1, 1, 1]} : vector<10x8x32xf32> to vector<9x8x32xf32>
    %647 = arith.mulf %639, %646 : vector<9x8x32xf32>
    %648 = vector.extract_strided_slice %633 {offsets = [1, 0, 0], sizes = [9, 8, 32], strides = [1, 1, 1]} : vector<10x8x32xf32> to vector<9x8x32xf32>
    %649 = arith.mulf %645, %648 : vector<9x8x32xf32>
    %650 = arith.addf %647, %649 : vector<9x8x32xf32>
    %651 = vector.extract_strided_slice %596 {offsets = [0, 0, 0], sizes = [8, 1, 32], strides = [1, 1, 1]} : vector<12x1x32xf32> to vector<8x1x32xf32>
    %652 = vector.broadcast %605 : vector<1x8x32xf32> to vector<8x8x32xf32>
    %653 = vector.broadcast %651 : vector<8x1x32xf32> to vector<8x8x32xf32>
    %654 = arith.subf %652, %653 : vector<8x8x32xf32>
    %cst_304 = arith.constant 0.833333313 : f32
    %655 = vector.broadcast %cst_304 : f32 to vector<8x8x32xf32>
    %656 = arith.mulf %654, %655 : vector<8x8x32xf32>
    %657 = vector.extract_strided_slice %596 {offsets = [4, 0, 0], sizes = [8, 1, 32], strides = [1, 1, 1]} : vector<12x1x32xf32> to vector<8x1x32xf32>
    %658 = vector.broadcast %657 : vector<8x1x32xf32> to vector<8x8x32xf32>
    %659 = vector.broadcast %605 : vector<1x8x32xf32> to vector<8x8x32xf32>
    %660 = arith.subf %658, %659 : vector<8x8x32xf32>
    %cst_305 = arith.constant 0.833333313 : f32
    %661 = vector.broadcast %cst_305 : f32 to vector<8x8x32xf32>
    %662 = arith.mulf %660, %661 : vector<8x8x32xf32>
    %663 = vector.extract_strided_slice %650 {offsets = [0, 0, 0], sizes = [8, 8, 32], strides = [1, 1, 1]} : vector<9x8x32xf32> to vector<8x8x32xf32>
    %664 = arith.mulf %656, %663 : vector<8x8x32xf32>
    %665 = vector.extract_strided_slice %650 {offsets = [1, 0, 0], sizes = [8, 8, 32], strides = [1, 1, 1]} : vector<9x8x32xf32> to vector<8x8x32xf32>
    %666 = arith.mulf %662, %665 : vector<8x8x32xf32>
    %667 = arith.addf %664, %666 : vector<8x8x32xf32>
    %668 = vector.extract_strided_slice %667 {offsets = [0, 0, 0], sizes = [1, 8, 32], strides = [1, 1, 1]} : vector<8x8x32xf32> to vector<1x8x32xf32>
    %669 = vector.shape_cast %668 : vector<1x8x32xf32> to vector<8x32xf32>
    %c0_306 = arith.constant 0 : index
    %c0_307 = arith.constant 0 : index
    %c0_308 = arith.constant 0 : index
    %670 = vector.load %arg11[%c0_306, %c0_307, %c0_308] : memref<8x32x10xf32, #tpu.memory_space<vmem>>, vector<1x32x10xf32>
    %671 = vector.shape_cast %670 : vector<1x32x10xf32> to vector<32x10xf32>
    %cst_309 = arith.constant dense<0.000000e+00> : vector<8x10xf32>
    %672 = tpu.matmul %669, %671, %cst_309 {dimension_numbers = #tpu.dot_dimension_numbers<[1], [0], [0], [1], [0, 0, 1, 1], [], []>} : vector<8x32xf32>, vector<32x10xf32>, vector<8x10xf32> -> vector<8x10xf32>
    %673 = arith.addf %604, %672 : vector<8x10xf32>
    %674 = vector.extract_strided_slice %667 {offsets = [1, 0, 0], sizes = [1, 8, 32], strides = [1, 1, 1]} : vector<8x8x32xf32> to vector<1x8x32xf32>
    %675 = vector.shape_cast %674 : vector<1x8x32xf32> to vector<8x32xf32>
    %c1_310 = arith.constant 1 : index
    %c0_311 = arith.constant 0 : index
    %c0_312 = arith.constant 0 : index
    %676 = vector.load %arg11[%c1_310, %c0_311, %c0_312] : memref<8x32x10xf32, #tpu.memory_space<vmem>>, vector<1x32x10xf32>
    %677 = vector.shape_cast %676 : vector<1x32x10xf32> to vector<32x10xf32>
    %cst_313 = arith.constant dense<0.000000e+00> : vector<8x10xf32>
    %678 = tpu.matmul %675, %677, %cst_313 {dimension_numbers = #tpu.dot_dimension_numbers<[1], [0], [0], [1], [0, 0, 1, 1], [], []>} : vector<8x32xf32>, vector<32x10xf32>, vector<8x10xf32> -> vector<8x10xf32>
    %679 = arith.addf %673, %678 : vector<8x10xf32>
    %680 = vector.extract_strided_slice %667 {offsets = [2, 0, 0], sizes = [1, 8, 32], strides = [1, 1, 1]} : vector<8x8x32xf32> to vector<1x8x32xf32>
    %681 = vector.shape_cast %680 : vector<1x8x32xf32> to vector<8x32xf32>
    %c2_314 = arith.constant 2 : index
    %c0_315 = arith.constant 0 : index
    %c0_316 = arith.constant 0 : index
    %682 = vector.load %arg11[%c2_314, %c0_315, %c0_316] : memref<8x32x10xf32, #tpu.memory_space<vmem>>, vector<1x32x10xf32>
    %683 = vector.shape_cast %682 : vector<1x32x10xf32> to vector<32x10xf32>
    %cst_317 = arith.constant dense<0.000000e+00> : vector<8x10xf32>
    %684 = tpu.matmul %681, %683, %cst_317 {dimension_numbers = #tpu.dot_dimension_numbers<[1], [0], [0], [1], [0, 0, 1, 1], [], []>} : vector<8x32xf32>, vector<32x10xf32>, vector<8x10xf32> -> vector<8x10xf32>
    %685 = arith.addf %679, %684 : vector<8x10xf32>
    %686 = vector.extract_strided_slice %667 {offsets = [3, 0, 0], sizes = [1, 8, 32], strides = [1, 1, 1]} : vector<8x8x32xf32> to vector<1x8x32xf32>
    %687 = vector.shape_cast %686 : vector<1x8x32xf32> to vector<8x32xf32>
    %c3 = arith.constant 3 : index
    %c0_318 = arith.constant 0 : index
    %c0_319 = arith.constant 0 : index
    %688 = vector.load %arg11[%c3, %c0_318, %c0_319] : memref<8x32x10xf32, #tpu.memory_space<vmem>>, vector<1x32x10xf32>
    %689 = vector.shape_cast %688 : vector<1x32x10xf32> to vector<32x10xf32>
    %cst_320 = arith.constant dense<0.000000e+00> : vector<8x10xf32>
    %690 = tpu.matmul %687, %689, %cst_320 {dimension_numbers = #tpu.dot_dimension_numbers<[1], [0], [0], [1], [0, 0, 1, 1], [], []>} : vector<8x32xf32>, vector<32x10xf32>, vector<8x10xf32> -> vector<8x10xf32>
    %691 = arith.addf %685, %690 : vector<8x10xf32>
    %692 = vector.extract_strided_slice %667 {offsets = [4, 0, 0], sizes = [1, 8, 32], strides = [1, 1, 1]} : vector<8x8x32xf32> to vector<1x8x32xf32>
    %693 = vector.shape_cast %692 : vector<1x8x32xf32> to vector<8x32xf32>
    %c4 = arith.constant 4 : index
    %c0_321 = arith.constant 0 : index
    %c0_322 = arith.constant 0 : index
    %694 = vector.load %arg11[%c4, %c0_321, %c0_322] : memref<8x32x10xf32, #tpu.memory_space<vmem>>, vector<1x32x10xf32>
    %695 = vector.shape_cast %694 : vector<1x32x10xf32> to vector<32x10xf32>
    %cst_323 = arith.constant dense<0.000000e+00> : vector<8x10xf32>
    %696 = tpu.matmul %693, %695, %cst_323 {dimension_numbers = #tpu.dot_dimension_numbers<[1], [0], [0], [1], [0, 0, 1, 1], [], []>} : vector<8x32xf32>, vector<32x10xf32>, vector<8x10xf32> -> vector<8x10xf32>
    %697 = arith.addf %691, %696 : vector<8x10xf32>
    %698 = vector.extract_strided_slice %667 {offsets = [5, 0, 0], sizes = [1, 8, 32], strides = [1, 1, 1]} : vector<8x8x32xf32> to vector<1x8x32xf32>
    %699 = vector.shape_cast %698 : vector<1x8x32xf32> to vector<8x32xf32>
    %c5 = arith.constant 5 : index
    %c0_324 = arith.constant 0 : index
    %c0_325 = arith.constant 0 : index
    %700 = vector.load %arg11[%c5, %c0_324, %c0_325] : memref<8x32x10xf32, #tpu.memory_space<vmem>>, vector<1x32x10xf32>
    %701 = vector.shape_cast %700 : vector<1x32x10xf32> to vector<32x10xf32>
    %cst_326 = arith.constant dense<0.000000e+00> : vector<8x10xf32>
    %702 = tpu.matmul %699, %701, %cst_326 {dimension_numbers = #tpu.dot_dimension_numbers<[1], [0], [0], [1], [0, 0, 1, 1], [], []>} : vector<8x32xf32>, vector<32x10xf32>, vector<8x10xf32> -> vector<8x10xf32>
    %703 = arith.addf %697, %702 : vector<8x10xf32>
    %704 = vector.extract_strided_slice %667 {offsets = [6, 0, 0], sizes = [1, 8, 32], strides = [1, 1, 1]} : vector<8x8x32xf32> to vector<1x8x32xf32>
    %705 = vector.shape_cast %704 : vector<1x8x32xf32> to vector<8x32xf32>
    %c6 = arith.constant 6 : index
    %c0_327 = arith.constant 0 : index
    %c0_328 = arith.constant 0 : index
    %706 = vector.load %arg11[%c6, %c0_327, %c0_328] : memref<8x32x10xf32, #tpu.memory_space<vmem>>, vector<1x32x10xf32>
    %707 = vector.shape_cast %706 : vector<1x32x10xf32> to vector<32x10xf32>
    %cst_329 = arith.constant dense<0.000000e+00> : vector<8x10xf32>
    %708 = tpu.matmul %705, %707, %cst_329 {dimension_numbers = #tpu.dot_dimension_numbers<[1], [0], [0], [1], [0, 0, 1, 1], [], []>} : vector<8x32xf32>, vector<32x10xf32>, vector<8x10xf32> -> vector<8x10xf32>
    %709 = arith.addf %703, %708 : vector<8x10xf32>
    %710 = vector.extract_strided_slice %667 {offsets = [7, 0, 0], sizes = [1, 8, 32], strides = [1, 1, 1]} : vector<8x8x32xf32> to vector<1x8x32xf32>
    %711 = vector.shape_cast %710 : vector<1x8x32xf32> to vector<8x32xf32>
    %c7 = arith.constant 7 : index
    %c0_330 = arith.constant 0 : index
    %c0_331 = arith.constant 0 : index
    %712 = vector.load %arg11[%c7, %c0_330, %c0_331] : memref<8x32x10xf32, #tpu.memory_space<vmem>>, vector<1x32x10xf32>
    %713 = vector.shape_cast %712 : vector<1x32x10xf32> to vector<32x10xf32>
    %cst_332 = arith.constant dense<0.000000e+00> : vector<8x10xf32>
    %714 = tpu.matmul %711, %713, %cst_332 {dimension_numbers = #tpu.dot_dimension_numbers<[1], [0], [0], [1], [0, 0, 1, 1], [], []>} : vector<8x32xf32>, vector<32x10xf32>, vector<8x10xf32> -> vector<8x10xf32>
    %715 = arith.addf %709, %714 : vector<8x10xf32>
    %c0_333 = arith.constant 0 : index
    %c0_334 = arith.constant 0 : index
    %c0_335 = arith.constant 0 : index
    %716 = vector.load %arg12[%c0_333, %c0_334, %c0_335] : memref<12x1x10xf32, #tpu.memory_space<vmem>>, vector<12x1x10xf32>
    %717 = arith.negf %715 : vector<8x10xf32>
    %718 = math.exp %717 : vector<8x10xf32>
    %cst_336 = arith.constant 1.000000e+00 : f32
    %719 = vector.broadcast %cst_336 : f32 to vector<8x10xf32>
    %720 = arith.addf %719, %718 : vector<8x10xf32>
    %721 = arith.divf %719, %720 : vector<8x10xf32>
    %722 = arith.mulf %715, %721 : vector<8x10xf32>
    %c0_337 = arith.constant 0 : index
    %c0_338 = arith.constant 0 : index
    %723 = vector.load %arg13[%c0_337, %c0_338] : memref<10x4xf32, #tpu.memory_space<vmem>>, vector<10x4xf32>
    %cst_339 = arith.constant dense<0.000000e+00> : vector<8x4xf32>
    %724 = tpu.matmul %722, %723, %cst_339 {dimension_numbers = #tpu.dot_dimension_numbers<[1], [0], [0], [1], [0, 0, 1, 1], [], []>} : vector<8x10xf32>, vector<10x4xf32>, vector<8x4xf32> -> vector<8x4xf32>
    %725 = vector.shape_cast %715 : vector<8x10xf32> to vector<1x8x10xf32>
    %726 = vector.extract_strided_slice %716 {offsets = [0, 0, 0], sizes = [11, 1, 10], strides = [1, 1, 1]} : vector<12x1x10xf32> to vector<11x1x10xf32>
    %727 = vector.broadcast %725 : vector<1x8x10xf32> to vector<11x8x10xf32>
    %728 = vector.broadcast %726 : vector<11x1x10xf32> to vector<11x8x10xf32>
    %729 = arith.cmpf oge, %727, %728 : vector<11x8x10xf32>
    %730 = vector.extract_strided_slice %716 {offsets = [1, 0, 0], sizes = [11, 1, 10], strides = [1, 1, 1]} : vector<12x1x10xf32> to vector<11x1x10xf32>
    %731 = vector.broadcast %725 : vector<1x8x10xf32> to vector<11x8x10xf32>
    %732 = vector.broadcast %730 : vector<11x1x10xf32> to vector<11x8x10xf32>
    %733 = arith.cmpf olt, %731, %732 : vector<11x8x10xf32>
    %734 = arith.andi %729, %733 : vector<11x8x10xi1>
    %735 = arith.extui %734 : vector<11x8x10xi1> to vector<11x8x10xi32>
    %736 = arith.sitofp %735 : vector<11x8x10xi32> to vector<11x8x10xf32>
    %737 = vector.extract_strided_slice %716 {offsets = [0, 0, 0], sizes = [10, 1, 10], strides = [1, 1, 1]} : vector<12x1x10xf32> to vector<10x1x10xf32>
    %738 = vector.broadcast %725 : vector<1x8x10xf32> to vector<10x8x10xf32>
    %739 = vector.broadcast %737 : vector<10x1x10xf32> to vector<10x8x10xf32>
    %740 = arith.subf %738, %739 : vector<10x8x10xf32>
    %cst_340 = arith.constant 2.500000e+00 : f32
    %741 = vector.broadcast %cst_340 : f32 to vector<10x8x10xf32>
    %742 = arith.mulf %740, %741 : vector<10x8x10xf32>
    %743 = vector.extract_strided_slice %716 {offsets = [2, 0, 0], sizes = [10, 1, 10], strides = [1, 1, 1]} : vector<12x1x10xf32> to vector<10x1x10xf32>
    %744 = vector.broadcast %743 : vector<10x1x10xf32> to vector<10x8x10xf32>
    %745 = vector.broadcast %725 : vector<1x8x10xf32> to vector<10x8x10xf32>
    %746 = arith.subf %744, %745 : vector<10x8x10xf32>
    %cst_341 = arith.constant 2.500000e+00 : f32
    %747 = vector.broadcast %cst_341 : f32 to vector<10x8x10xf32>
    %748 = arith.mulf %746, %747 : vector<10x8x10xf32>
    %749 = vector.extract_strided_slice %736 {offsets = [0, 0, 0], sizes = [10, 8, 10], strides = [1, 1, 1]} : vector<11x8x10xf32> to vector<10x8x10xf32>
    %750 = arith.mulf %742, %749 : vector<10x8x10xf32>
    %751 = vector.extract_strided_slice %736 {offsets = [1, 0, 0], sizes = [10, 8, 10], strides = [1, 1, 1]} : vector<11x8x10xf32> to vector<10x8x10xf32>
    %752 = arith.mulf %748, %751 : vector<10x8x10xf32>
    %753 = arith.addf %750, %752 : vector<10x8x10xf32>
    %754 = vector.extract_strided_slice %716 {offsets = [0, 0, 0], sizes = [9, 1, 10], strides = [1, 1, 1]} : vector<12x1x10xf32> to vector<9x1x10xf32>
    %755 = vector.broadcast %725 : vector<1x8x10xf32> to vector<9x8x10xf32>
    %756 = vector.broadcast %754 : vector<9x1x10xf32> to vector<9x8x10xf32>
    %757 = arith.subf %755, %756 : vector<9x8x10xf32>
    %cst_342 = arith.constant 1.250000e+00 : f32
    %758 = vector.broadcast %cst_342 : f32 to vector<9x8x10xf32>
    %759 = arith.mulf %757, %758 : vector<9x8x10xf32>
    %760 = vector.extract_strided_slice %716 {offsets = [3, 0, 0], sizes = [9, 1, 10], strides = [1, 1, 1]} : vector<12x1x10xf32> to vector<9x1x10xf32>
    %761 = vector.broadcast %760 : vector<9x1x10xf32> to vector<9x8x10xf32>
    %762 = vector.broadcast %725 : vector<1x8x10xf32> to vector<9x8x10xf32>
    %763 = arith.subf %761, %762 : vector<9x8x10xf32>
    %cst_343 = arith.constant 1.250000e+00 : f32
    %764 = vector.broadcast %cst_343 : f32 to vector<9x8x10xf32>
    %765 = arith.mulf %763, %764 : vector<9x8x10xf32>
    %766 = vector.extract_strided_slice %753 {offsets = [0, 0, 0], sizes = [9, 8, 10], strides = [1, 1, 1]} : vector<10x8x10xf32> to vector<9x8x10xf32>
    %767 = arith.mulf %759, %766 : vector<9x8x10xf32>
    %768 = vector.extract_strided_slice %753 {offsets = [1, 0, 0], sizes = [9, 8, 10], strides = [1, 1, 1]} : vector<10x8x10xf32> to vector<9x8x10xf32>
    %769 = arith.mulf %765, %768 : vector<9x8x10xf32>
    %770 = arith.addf %767, %769 : vector<9x8x10xf32>
    %771 = vector.extract_strided_slice %716 {offsets = [0, 0, 0], sizes = [8, 1, 10], strides = [1, 1, 1]} : vector<12x1x10xf32> to vector<8x1x10xf32>
    %772 = vector.broadcast %725 : vector<1x8x10xf32> to vector<8x8x10xf32>
    %773 = vector.broadcast %771 : vector<8x1x10xf32> to vector<8x8x10xf32>
    %774 = arith.subf %772, %773 : vector<8x8x10xf32>
    %cst_344 = arith.constant 0.833333313 : f32
    %775 = vector.broadcast %cst_344 : f32 to vector<8x8x10xf32>
    %776 = arith.mulf %774, %775 : vector<8x8x10xf32>
    %777 = vector.extract_strided_slice %716 {offsets = [4, 0, 0], sizes = [8, 1, 10], strides = [1, 1, 1]} : vector<12x1x10xf32> to vector<8x1x10xf32>
    %778 = vector.broadcast %777 : vector<8x1x10xf32> to vector<8x8x10xf32>
    %779 = vector.broadcast %725 : vector<1x8x10xf32> to vector<8x8x10xf32>
    %780 = arith.subf %778, %779 : vector<8x8x10xf32>
    %cst_345 = arith.constant 0.833333313 : f32
    %781 = vector.broadcast %cst_345 : f32 to vector<8x8x10xf32>
    %782 = arith.mulf %780, %781 : vector<8x8x10xf32>
    %783 = vector.extract_strided_slice %770 {offsets = [0, 0, 0], sizes = [8, 8, 10], strides = [1, 1, 1]} : vector<9x8x10xf32> to vector<8x8x10xf32>
    %784 = arith.mulf %776, %783 : vector<8x8x10xf32>
    %785 = vector.extract_strided_slice %770 {offsets = [1, 0, 0], sizes = [8, 8, 10], strides = [1, 1, 1]} : vector<9x8x10xf32> to vector<8x8x10xf32>
    %786 = arith.mulf %782, %785 : vector<8x8x10xf32>
    %787 = arith.addf %784, %786 : vector<8x8x10xf32>
    %788 = vector.extract_strided_slice %787 {offsets = [0, 0, 0], sizes = [1, 8, 10], strides = [1, 1, 1]} : vector<8x8x10xf32> to vector<1x8x10xf32>
    %789 = vector.shape_cast %788 : vector<1x8x10xf32> to vector<8x10xf32>
    %c0_346 = arith.constant 0 : index
    %c0_347 = arith.constant 0 : index
    %c0_348 = arith.constant 0 : index
    %790 = vector.load %arg14[%c0_346, %c0_347, %c0_348] : memref<8x10x4xf32, #tpu.memory_space<vmem>>, vector<1x10x4xf32>
    %791 = vector.shape_cast %790 : vector<1x10x4xf32> to vector<10x4xf32>
    %cst_349 = arith.constant dense<0.000000e+00> : vector<8x4xf32>
    %792 = tpu.matmul %789, %791, %cst_349 {dimension_numbers = #tpu.dot_dimension_numbers<[1], [0], [0], [1], [0, 0, 1, 1], [], []>} : vector<8x10xf32>, vector<10x4xf32>, vector<8x4xf32> -> vector<8x4xf32>
    %793 = arith.addf %724, %792 : vector<8x4xf32>
    %794 = vector.extract_strided_slice %787 {offsets = [1, 0, 0], sizes = [1, 8, 10], strides = [1, 1, 1]} : vector<8x8x10xf32> to vector<1x8x10xf32>
    %795 = vector.shape_cast %794 : vector<1x8x10xf32> to vector<8x10xf32>
    %c1_350 = arith.constant 1 : index
    %c0_351 = arith.constant 0 : index
    %c0_352 = arith.constant 0 : index
    %796 = vector.load %arg14[%c1_350, %c0_351, %c0_352] : memref<8x10x4xf32, #tpu.memory_space<vmem>>, vector<1x10x4xf32>
    %797 = vector.shape_cast %796 : vector<1x10x4xf32> to vector<10x4xf32>
    %cst_353 = arith.constant dense<0.000000e+00> : vector<8x4xf32>
    %798 = tpu.matmul %795, %797, %cst_353 {dimension_numbers = #tpu.dot_dimension_numbers<[1], [0], [0], [1], [0, 0, 1, 1], [], []>} : vector<8x10xf32>, vector<10x4xf32>, vector<8x4xf32> -> vector<8x4xf32>
    %799 = arith.addf %793, %798 : vector<8x4xf32>
    %800 = vector.extract_strided_slice %787 {offsets = [2, 0, 0], sizes = [1, 8, 10], strides = [1, 1, 1]} : vector<8x8x10xf32> to vector<1x8x10xf32>
    %801 = vector.shape_cast %800 : vector<1x8x10xf32> to vector<8x10xf32>
    %c2_354 = arith.constant 2 : index
    %c0_355 = arith.constant 0 : index
    %c0_356 = arith.constant 0 : index
    %802 = vector.load %arg14[%c2_354, %c0_355, %c0_356] : memref<8x10x4xf32, #tpu.memory_space<vmem>>, vector<1x10x4xf32>
    %803 = vector.shape_cast %802 : vector<1x10x4xf32> to vector<10x4xf32>
    %cst_357 = arith.constant dense<0.000000e+00> : vector<8x4xf32>
    %804 = tpu.matmul %801, %803, %cst_357 {dimension_numbers = #tpu.dot_dimension_numbers<[1], [0], [0], [1], [0, 0, 1, 1], [], []>} : vector<8x10xf32>, vector<10x4xf32>, vector<8x4xf32> -> vector<8x4xf32>
    %805 = arith.addf %799, %804 : vector<8x4xf32>
    %806 = vector.extract_strided_slice %787 {offsets = [3, 0, 0], sizes = [1, 8, 10], strides = [1, 1, 1]} : vector<8x8x10xf32> to vector<1x8x10xf32>
    %807 = vector.shape_cast %806 : vector<1x8x10xf32> to vector<8x10xf32>
    %c3_358 = arith.constant 3 : index
    %c0_359 = arith.constant 0 : index
    %c0_360 = arith.constant 0 : index
    %808 = vector.load %arg14[%c3_358, %c0_359, %c0_360] : memref<8x10x4xf32, #tpu.memory_space<vmem>>, vector<1x10x4xf32>
    %809 = vector.shape_cast %808 : vector<1x10x4xf32> to vector<10x4xf32>
    %cst_361 = arith.constant dense<0.000000e+00> : vector<8x4xf32>
    %810 = tpu.matmul %807, %809, %cst_361 {dimension_numbers = #tpu.dot_dimension_numbers<[1], [0], [0], [1], [0, 0, 1, 1], [], []>} : vector<8x10xf32>, vector<10x4xf32>, vector<8x4xf32> -> vector<8x4xf32>
    %811 = arith.addf %805, %810 : vector<8x4xf32>
    %812 = vector.extract_strided_slice %787 {offsets = [4, 0, 0], sizes = [1, 8, 10], strides = [1, 1, 1]} : vector<8x8x10xf32> to vector<1x8x10xf32>
    %813 = vector.shape_cast %812 : vector<1x8x10xf32> to vector<8x10xf32>
    %c4_362 = arith.constant 4 : index
    %c0_363 = arith.constant 0 : index
    %c0_364 = arith.constant 0 : index
    %814 = vector.load %arg14[%c4_362, %c0_363, %c0_364] : memref<8x10x4xf32, #tpu.memory_space<vmem>>, vector<1x10x4xf32>
    %815 = vector.shape_cast %814 : vector<1x10x4xf32> to vector<10x4xf32>
    %cst_365 = arith.constant dense<0.000000e+00> : vector<8x4xf32>
    %816 = tpu.matmul %813, %815, %cst_365 {dimension_numbers = #tpu.dot_dimension_numbers<[1], [0], [0], [1], [0, 0, 1, 1], [], []>} : vector<8x10xf32>, vector<10x4xf32>, vector<8x4xf32> -> vector<8x4xf32>
    %817 = arith.addf %811, %816 : vector<8x4xf32>
    %818 = vector.extract_strided_slice %787 {offsets = [5, 0, 0], sizes = [1, 8, 10], strides = [1, 1, 1]} : vector<8x8x10xf32> to vector<1x8x10xf32>
    %819 = vector.shape_cast %818 : vector<1x8x10xf32> to vector<8x10xf32>
    %c5_366 = arith.constant 5 : index
    %c0_367 = arith.constant 0 : index
    %c0_368 = arith.constant 0 : index
    %820 = vector.load %arg14[%c5_366, %c0_367, %c0_368] : memref<8x10x4xf32, #tpu.memory_space<vmem>>, vector<1x10x4xf32>
    %821 = vector.shape_cast %820 : vector<1x10x4xf32> to vector<10x4xf32>
    %cst_369 = arith.constant dense<0.000000e+00> : vector<8x4xf32>
    %822 = tpu.matmul %819, %821, %cst_369 {dimension_numbers = #tpu.dot_dimension_numbers<[1], [0], [0], [1], [0, 0, 1, 1], [], []>} : vector<8x10xf32>, vector<10x4xf32>, vector<8x4xf32> -> vector<8x4xf32>
    %823 = arith.addf %817, %822 : vector<8x4xf32>
    %824 = vector.extract_strided_slice %787 {offsets = [6, 0, 0], sizes = [1, 8, 10], strides = [1, 1, 1]} : vector<8x8x10xf32> to vector<1x8x10xf32>
    %825 = vector.shape_cast %824 : vector<1x8x10xf32> to vector<8x10xf32>
    %c6_370 = arith.constant 6 : index
    %c0_371 = arith.constant 0 : index
    %c0_372 = arith.constant 0 : index
    %826 = vector.load %arg14[%c6_370, %c0_371, %c0_372] : memref<8x10x4xf32, #tpu.memory_space<vmem>>, vector<1x10x4xf32>
    %827 = vector.shape_cast %826 : vector<1x10x4xf32> to vector<10x4xf32>
    %cst_373 = arith.constant dense<0.000000e+00> : vector<8x4xf32>
    %828 = tpu.matmul %825, %827, %cst_373 {dimension_numbers = #tpu.dot_dimension_numbers<[1], [0], [0], [1], [0, 0, 1, 1], [], []>} : vector<8x10xf32>, vector<10x4xf32>, vector<8x4xf32> -> vector<8x4xf32>
    %829 = arith.addf %823, %828 : vector<8x4xf32>
    %830 = vector.extract_strided_slice %787 {offsets = [7, 0, 0], sizes = [1, 8, 10], strides = [1, 1, 1]} : vector<8x8x10xf32> to vector<1x8x10xf32>
    %831 = vector.shape_cast %830 : vector<1x8x10xf32> to vector<8x10xf32>
    %c7_374 = arith.constant 7 : index
    %c0_375 = arith.constant 0 : index
    %c0_376 = arith.constant 0 : index
    %832 = vector.load %arg14[%c7_374, %c0_375, %c0_376] : memref<8x10x4xf32, #tpu.memory_space<vmem>>, vector<1x10x4xf32>
    %833 = vector.shape_cast %832 : vector<1x10x4xf32> to vector<10x4xf32>
    %cst_377 = arith.constant dense<0.000000e+00> : vector<8x4xf32>
    %834 = tpu.matmul %831, %833, %cst_377 {dimension_numbers = #tpu.dot_dimension_numbers<[1], [0], [0], [1], [0, 0, 1, 1], [], []>} : vector<8x10xf32>, vector<10x4xf32>, vector<8x4xf32> -> vector<8x4xf32>
    %835 = arith.addf %829, %834 : vector<8x4xf32>
    %c0_378 = arith.constant 0 : index
    %c0_379 = arith.constant 0 : index
    %836 = vector.load %arg15[%c0_378, %c0_379] : memref<8x4xf32, #tpu.memory_space<vmem>>, vector<8x4xf32>
    tpu.vector_store %arg15[%c0_378, %c0_379], %835 {strides = array<i32>} : memref<8x4xf32, #tpu.memory_space<vmem>>, vector<8x4xf32>,
    return
  }
}

</mosaic_0001>

<bundles_post_ra>
// kernel: gru_ekan_forward.1
= control target key start
LH: loop header
LB: loop body
LE: loop exit
PB: predicated region body
PF: predicated region fallthrough
CT: control target
= control target key end

     0   :  { %vm67_vm0 = vcmask 130048   ;;  %v8418_v8 = vmov 0.0   ;;  %vm8419_vm1 = vmmov 0   ;;  %vm197_vm2 = vcmask 261120   ;;  %s10321_s1 = inlined_call_operand.vmem [shape: f32[3,16,32], index: 1, kind: input, shape index: {}]   ;;  %s10322_s0 = inlined_call_operand.vmem [shape: f32[64,16], index: 0, kind: input, shape index: {}]   ;;  %s10323_s2 = inlined_call_operand.vmem [shape: f32[3,32,32], index: 2, kind: input, shape index: {}]   ;;  %s10324_s3 = inlined_call_operand.vmem [shape: f32[3,1,32], index: 3, kind: input, shape index: {}]   ;;  %s10325_s4 = inlined_call_operand.vmem [shape: f32[3,1,32], index: 4, kind: input, shape index: {}]   ;;  %s10326_s5 = inlined_call_operand.vmem [shape: f32[3,32,32], index: 5, kind: input, shape index: {}]   ;;  %s10327_s6 = inlined_call_operand.vmem [shape: f32[3,32,32], index: 6, kind: input, shape index: {}]   ;;  %s10328_s7 = inlined_call_operand.vmem [shape: f32[3,1,32], index: 7, kind: input, shape index: {}]   ;;  %s10329_s8 = inlined_call_operand.vmem [shape: f32[3,1,32], index: 8, kind: input, shape index: {}]   ;;  %s10330_s11 = inlined_call_operand.vmem [shape: f32[8,32,10], index: 11, kind: input, shape index: {}]   ;;  %s10331_s10 = inlined_call_operand.vmem [shape: f32[32,10], index: 10, kind: input, shape index: {}]   ;;  %s10332_s9 = inlined_call_operand.vmem [shape: f32[12,1,32], index: 9, kind: input, shape index: {}]   ;;  %s10333_s14 = inlined_call_operand.vmem [shape: f32[8,10,4], index: 14, kind: input, shape index: {}]   ;;  %s10334_s12 = inlined_call_operand.vmem [shape: f32[12,1,10], index: 12, kind: input, shape index: {}]   ;;  %s10335_s13 = inlined_call_operand.vmem [shape: f32[10,4], index: 13, kind: input, shape index: {}]   ;;  %s10336_s15 = inlined_call_operand.vmem [shape: f32[8,4], index: 15, kind: output, shape index: {}]  }
   0x1   :  { %v6776_v0 = vld [vmem:[%s10321_s1 + $0x18] sm:$0xff]  ;;  %v6775_v1 = vld [vmem:[%s10321_s1 + $0x10] sm:$0xff]  ;;  %v8509_v2 = vld [vmem:[%s10322_s0] sm:$0xff] }
   0x2   :  { %7447 = vmatprep.subr.mxu1 %v6776_v0  ;;  %7451 = vmatprep.mubr.msk.f32.mxu1 %vm67_vm0, %v8509_v2  ;;  %v59_v3 = vld [vmem:[%s10321_s1 + $0x8] sm:$0xff]  ;;  %v58_v5 = vld [vmem:[%s10321_s1] sm:$0xff]  ;;  %v8527_v6 = vld [vmem:[%s10323_s2 + $0x18] sm:$0xff] }
   0x3   :  { %7448 = vmatpush3.msra.mxu1 %v6776_v0  ;;  %v8519_v4 = vld [vmem:[%s10322_s0 + $0x8] sm:$0xff]  ;;  %7431 = vmatprep.subr.mxu0 %v59_v3  ;;  %v8532_v7 = vld [vmem:[%s10322_s0 + $0x10] sm:$0xff]  ;;  %v53_v9 = vld [vmem:[%s10322_s0 + $0x18] sm:$0xff] }
   0x4   :  { %7449 = vmatprep.subr.mxu1 %v6775_v1  ;;  %7432 = vmatpush3.msra.mxu0 %v59_v3  ;;  %v6788_v10 = vld [vmem:[%s10321_s1 + $0x28] sm:$0xff]  ;;  %v8551_v11 = vld [vmem:[%s10323_s2 + $0x10] sm:$0xff]  ;;  %v54_v12 = vld [vmem:[%s10322_s0 + $0x20] sm:$0xff] }
   0x5   :  { %7450 = vmatpush3.msra.mxu1 %v6775_v1  ;;  %7433 = vmatprep.subr.mxu0 %v58_v5  ;;  %v8563_v13 = vld [vmem:[%s10323_s2 + $0x8] sm:$0xff]  ;;  %v56_v15 = vld [vmem:[%s10322_s0 + $0x30] sm:$0xff]  ;;  %v8577_v16 = vld [vmem:[%s10323_s2] sm:$0xff] }
   0x6   :  { %7452 = vmatmul.mubr.msk.f32.vlgmr.msra.gmra.mxu1 %vm67_vm0, %v8519_v4  ;;  %7479 = vmatprep.subr.mxu1 %v8418_v8  ;;  %v55_v14 = vld [vmem:[%s10322_s0 + $0x28] sm:$0xff]  ;;  %v6787_v17 = vld [vmem:[%s10321_s1 + $0x20] sm:$0xff]  ;;  %v57_v18 = vld [vmem:[%s10322_s0 + $0x38] sm:$0xff] }
   0x7   :  { %7480 = vmatpush3.msra.mxu1 %v8527_v6  ;;  %7454 = vmatprep.mubr.msk.f32.mxu1 %vm67_vm0, %v8532_v7  ;;  %v8602_v19 = vld [vmem:[%s10323_s2 + $0x38] sm:$0xff]  ;;  %v8610_v20 = vld [vmem:[%s10323_s2 + $0x30] sm:$0xff]  ;;  %v8619_v21 = vld [vmem:[%s10323_s2 + $0x28] sm:$0xff] }
   0x8   :  { %7434 = vmatpush3.msra.mxu0 %v58_v5  ;;  %7435 = vmatprep.mubr.msk.f32.mxu0 %vm67_vm0, %v8509_v2  ;;  %v8629_v22 = vld [vmem:[%s10323_s2 + $0x20] sm:$0xff]  ;;  %v8634_v23 = vld [vmem:[%s10323_s2 + $0x58] sm:$0xff]  ;;  %v8648_v24 = vld [vmem:[%s10323_s2 + $0x50] sm:$0xff] }
   0x9   :  { %7481 = vmatprep.subr.mxu1 %v8418_v8  ;;  %7436 = vmatmul.mubr.msk.f32.vlgmr.msra.gmra.mxu0 %vm67_vm0, %v8519_v4  ;;  %v8656_v25 = vld [vmem:[%s10323_s2 + $0x48] sm:$0xff]  ;;  %v8665_v26 = vld [vmem:[%s10323_s2 + $0x40] sm:$0xff] }
   0xa   :  { %7455 = vmatmul.mubr.msk.f32.gmra.mxu1 %vm67_vm0, %v53_v9  ;;  %7463 = vmatprep.subr.mxu0 %v6788_v10  ;;  %v6778_v27 = vld [vmem:[%s10324_s3 + $0x1] ss:$0 sm:$0xff]  ;;  %v6766_v30 = vld [vmem:[%s10324_s3] ss:$0 sm:$0xff] }
   0xb   :  { %7482 = vmatpush3.msra.mxu1 %v8551_v11  ;;  %7457 = vmatprep.mubr.msk.f32.mxu1 %vm67_vm0, %v54_v12  ;;  %v8714_v52 = vld [vmem:[%s10325_s4] ss:$0 sm:$0xff]  ;;  %v8729_v5 = vld [vmem:[%s10325_s4 + $0x1] ss:$0 sm:$0xff] }
   0xc   :  { %7483 = vmatprep.subr.mxu1 %v8418_v8  ;;  %7464 = vmatpush3.msra.mxu0 %v6788_v10 }
   0xd   :  { %7484 = vmatpush3.msra.mxu1 %v8563_v13  ;;  %7438 = vmatprep.mubr.msk.f32.mxu0 %vm67_vm0, %v8532_v7 }
   0xe   :  { %7458 = vmatmul.mubr.msk.f32.gmra.mxu1 %vm67_vm0, %v55_v14  ;;  %7485 = vmatprep.subr.mxu1 %v8418_v8 }
   0xf   :  { %7460 = vmatprep.mubr.msk.f32.mxu1 %vm67_vm0, %v56_v15  ;;  %7486 = vmatpush3.msra.mxu1 %v8577_v16 }
  0x10   :  { %7490 = vmatprep.subr.mxu1 %v8418_v8  ;;  %7439 = vmatmul.mubr.msk.f32.gmra.mxu0 %vm67_vm0, %v53_v9 }
  0x11   :  { %7441 = vmatprep.mubr.msk.f32.mxu0 %vm67_vm0, %v54_v12  ;;  %7465 = vmatprep.subr.mxu0 %v6787_v17 }
  0x12   :  { %7461 = vmatmul.mubr.msk.f32.gmra.mxu1 %vm67_vm0, %v57_v18  ;;  %7466 = vmatpush3.msra.mxu0 %v6787_v17 }
  0x13   :  { %7487 = vmatprep.mubr.msk.f32.mxu1 %vm8419_vm1, %v8418_v8  ;;  %7501 = vmatprep.subr.mxu0 %v8418_v8 }
  0x14   :  { %7442 = vmatmul.mubr.msk.f32.gmra.mxu0 %vm67_vm0, %v55_v14 }
  0x15   :  { %7444 = vmatprep.mubr.msk.f32.mxu0 %vm67_vm0, %v56_v15 }
  0x16   :  { %7488 = vmatmul.mubr.f32.vlgmr.msra.gmra.mxu1 %v8418_v8 }
  0x17   :  { %7491 = vmatpush3.msra.mxu1 %v8602_v19  ;;  %7498 = vmatprep.mubr.msk.f32.mxu1 %vm8419_vm1, %v8418_v8 }
  0x18   :  { %7492 = vmatprep.subr.mxu1 %v8418_v8  ;;  %7445 = vmatmul.mubr.msk.f32.gmra.mxu0 %vm67_vm0, %v57_v18 }
  0x19   :  { %7493 = vmatpush3.msra.mxu1 %v8610_v20  ;;  %7467 = vmatprep.mubr.msk.f32.mxu0 %vm67_vm0, %v8509_v2  ;;  %v6790_v2 = vld [vmem:[%s10324_s3 + $0x2] ss:$0 sm:$0xff] }
  0x1a   :  { %7494 = vmatprep.subr.mxu1 %v8418_v8 }
  0x1b   :  { %7495 = vmatpush3.msra.mxu1 %v8619_v21 }
  0x1c   :  { %7496 = vmatprep.subr.mxu1 %v8418_v8  ;;  %7468 = vmatmul.mubr.msk.f32.vlgmr.msra.gmra.mxu0 %vm67_vm0, %v8519_v4 }
  0x1d   :  { %7497 = vmatpush3.msra.mxu1 %v8629_v22  ;;  %7502 = vmatpush3.msra.mxu0 %v8634_v23 }
  0x1e   :  { %7499 = vmatmul.mubr.f32.vlgmr.msra.gmra.mxu1 %v8418_v8  ;;  %7470 = vmatprep.mubr.msk.f32.mxu0 %vm67_vm0, %v8532_v7 }
  0x1f   :  { %7503 = vmatprep.subr.mxu0 %v8418_v8  ;;  %7512 = vmatprep.subr.mxu1 %v8418_v8 }
  0x20   :  { %7471 = vmatmul.mubr.msk.f32.gmra.mxu0 %vm67_vm0, %v53_v9  ;;  %7513 = vmatpush3.msra.mxu1 %v8527_v6 }
  0x21   :  { %7504 = vmatpush3.msra.mxu0 %v8648_v24  ;;  %7473 = vmatprep.mubr.msk.f32.mxu0 %vm67_vm0, %v54_v12 }
  0x22   :  { %7505 = vmatprep.subr.mxu0 %v8418_v8  ;;  %7514 = vmatprep.subr.mxu1 %v8418_v8 }
  0x23   :  { %7506 = vmatpush3.msra.mxu0 %v8656_v25  ;;  %7515 = vmatpush3.msra.mxu1 %v8551_v11 }
  0x24   :  { %7474 = vmatmul.mubr.msk.f32.gmra.mxu0 %vm67_vm0, %v55_v14  ;;  %7507 = vmatprep.subr.mxu0 %v8418_v8 }
  0x25   :  { %7476 = vmatprep.mubr.msk.f32.mxu0 %vm67_vm0, %v56_v15  ;;  %7508 = vmatpush3.msra.mxu0 %v8665_v26 }
  0x26   :  { %7523 = vmatprep.subr.mxu0 %v8418_v8  ;;  %7516 = vmatprep.subr.mxu1 %v8418_v8 }
  0x27   :  { %7517 = vmatpush3.msra.mxu1 %v8563_v13  ;;  %7520 = vmatprep.mubr.msk.f32.mxu1 %vm8419_vm1, %v8418_v8 }
  0x28   :  { %7477 = vmatmul.mubr.msk.f32.gmra.mxu0 %vm67_vm0, %v57_v18  ;;  %7518 = vmatprep.subr.mxu1 %v8418_v8 }
  0x29   :  { %7509 = vmatprep.mubr.msk.f32.mxu0 %vm8419_vm1, %v8418_v8  ;;  %7519 = vmatpush3.msra.mxu1 %v8577_v16 }
  0x2a   :  { %7534 = vmatprep.subr.mxu1 %v8418_v8 }
  0x2c   :  { %7510 = vmatmul.mubr.f32.vlgmr.msra.gmra.mxu0 %v8418_v8 }
  0x2d   :  { %7524 = vmatpush3.msra.mxu0 %v8602_v19  ;;  %7531 = vmatprep.mubr.msk.f32.mxu0 %vm8419_vm1, %v8418_v8 }
  0x2e   :  { %7525 = vmatprep.subr.mxu0 %v8418_v8 }
  0x2f   :  { %7526 = vmatpush3.msra.mxu0 %v8610_v20 }
  0x30   :  { %7527 = vmatprep.subr.mxu0 %v8418_v8 }
  0x31   :  { %7528 = vmatpush3.msra.mxu0 %v8619_v21 }
  0x32   :  { %7529 = vmatprep.subr.mxu0 %v8418_v8 }
  0x33   :  { %7530 = vmatpush3.msra.mxu0 %v8629_v22 }
  0x34   :  { %7545 = vmatprep.subr.mxu0 %v8418_v8 }
  0xc6   :  { %v7453_v28 = vpop.f32.mrf.mxu1 }
  0xc7   :  { %v289_v29 = vadd.f32 %v7453_v28, %v6778_v27 }
  0xc8   :  { %v283_v31 = vpop.f32.mrf.mxu1 }
  0xc9   :  { %323 = vst.msk [vmem:[#allocation3 + $0x8] sm:$0xff] %vm197_vm2, %v289_v29  ;;  %v284_v32 = vadd.f32 %v6778_v27, %v283_v31  ;;  %v7437_v33 = vpop.f32.mrf.mxu0 }
  0xca   :  { %v7456_v34 = vpop.f32.mrf.mxu1  ;;  %v164_v35 = vadd.f32 %v7437_v33, %v6766_v30 }
  0xcb   :  { %322 = vst.msk [vmem:[#allocation3] sm:$0xff] %vm197_vm2, %v284_v32  ;;  %v299_v36 = vadd.f32 %v7456_v34, %v6778_v27  ;;  %v158_v37 = vpop.f32.mrf.mxu0 }
  0xcc   :  { %199 = vst.msk [vmem:[#allocation2 + $0x8] sm:$0xff] %vm197_vm2, %v164_v35  ;;  %v293_v38 = vpop.f32.mrf.mxu1  ;;  %v159_v39 = vadd.f32 %v6766_v30, %v158_v37 }
  0xcd   :  { %325 = vst.msk [vmem:[#allocation3 + $0x18] sm:$0xff] %vm197_vm2, %v299_v36  ;;  %v294_v40 = vadd.f32 %v6778_v27, %v293_v38 }
  0xce   :  { %198 = vst.msk [vmem:[#allocation2] sm:$0xff] %vm197_vm2, %v159_v39  ;;  %v7459_v41 = vpop.f32.mrf.mxu1 }
  0xcf   :  { %324 = vst.msk [vmem:[#allocation3 + $0x10] sm:$0xff] %vm197_vm2, %v294_v40  ;;  %v309_v42 = vadd.f32 %v7459_v41, %v6778_v27 }
  0xd0   :  { %v303_v43 = vpop.f32.mrf.mxu1  ;;  %v7440_v44 = vpop.f32.mrf.mxu0 }
  0xd1   :  { %327 = vst.msk [vmem:[#allocation3 + $0x28] sm:$0xff] %vm197_vm2, %v309_v42  ;;  %v304_v45 = vadd.f32 %v6778_v27, %v303_v43  ;;  %v174_v46 = vadd.f32 %v7440_v44, %v6766_v30 }
  0xd2   :  { %v7462_v47 = vpop.f32.mrf.mxu1  ;;  %v168_v48 = vpop.f32.mrf.mxu0  ;;  %v474_v17 = vld [vmem:[#allocation3] sm:$0xff] }
  0xd3   :  { %326 = vst.msk [vmem:[#allocation3 + $0x20] sm:$0xff] %vm197_vm2, %v304_v45  ;;  %v319_v49 = vadd.f32 %v7462_v47, %v6778_v27  ;;  %201 = vst.msk [vmem:[#allocation2 + $0x18] sm:$0xff] %vm197_vm2, %v174_v46  ;;  %v169_v50 = vadd.f32 %v6766_v30, %v168_v48  ;;  %v8744_v46 = vld [vmem:[%s10325_s4 + $0x2] ss:$0 sm:$0xff] }
  0xd4   :  { %v313_v51 = vpop.f32.mrf.mxu1  ;;  %v7443_v53 = vpop.f32.mrf.mxu0 }
  0xd5   :  { %329 = vst.msk [vmem:[#allocation3 + $0x38] sm:$0xff] %vm197_vm2, %v319_v49  ;;  %v314_v54 = vadd.f32 %v6778_v27, %v313_v51  ;;  %200 = vst.msk [vmem:[#allocation2 + $0x10] sm:$0xff] %vm197_vm2, %v169_v50  ;;  %v184_v55 = vadd.f32 %v7443_v53, %v6766_v30  ;;  %v473_v60 = vld [vmem:[#allocation2] sm:$0xff] }
  0xd6   :  { %v551_v56 = vpop.f32.mrf.mxu1  ;;  %v178_v57 = vpop.f32.mrf.mxu0 }
  0xd7   :  { %328 = vst.msk [vmem:[#allocation3 + $0x30] sm:$0xff] %vm197_vm2, %v314_v54  ;;  %v552_v58 = vadd.f32 %v8714_v52, %v551_v56  ;;  %203 = vst.msk [vmem:[#allocation2 + $0x28] sm:$0xff] %vm197_vm2, %v184_v55  ;;  %v179_v59 = vadd.f32 %v6766_v30, %v178_v57 }
  0xd8   :  { %v7489_v61 = vpop.f32.mrf.mxu1  ;;  %v7446_v62 = vpop.f32.mrf.mxu0 }
  0xd9   :  { %v707_v63 = vadd.f32 %v552_v58, %v473_v60  ;;  %202 = vst.msk [vmem:[#allocation2 + $0x20] sm:$0xff] %vm197_vm2, %v179_v59  ;;  %v194_v0 = vadd.f32 %v7446_v62, %v6766_v30 }
  0xda   :  { %v188_v1 = vpop.f32.mrf.mxu0 }
  0xdb   :  { %v6812_v3 = vmul.f32 -1.442695, %v707_v63  ;;  %205 = vst.msk [vmem:[#allocation2 + $0x38] sm:$0xff] %vm197_vm2, %v194_v0  ;;  %v189_v4 = vadd.f32 %v6766_v30, %v188_v1  ;;  %v729_v63 = vld [vmem:[#allocation2 + $0x8] sm:$0xff] }
  0xdc   :  { %v7469_v7 = vpop.f32.mrf.mxu0 }
  0xdd   :  { %8231 = vpow2.f32 %v6812_v3  ;;  %204 = vst.msk [vmem:[#allocation2 + $0x30] sm:$0xff] %vm197_vm2, %v189_v4  ;;  %v413_v9 = vadd.f32 %v7469_v7, %v6790_v2  ;;  %v730_v7 = vld [vmem:[#allocation3 + $0x8] sm:$0xff] }
  0xde   :  { %v627_v10 = vpop.f32.mrf.mxu1  ;;  %v407_v12 = vpop.f32.mrf.mxu0 }
  0xdf   :  { %v628_v14 = vadd.f32 %v8729_v5, %v627_v10  ;;  %447 = vst.msk [vmem:[#allocation4 + $0x8] sm:$0xff] %vm197_vm2, %v413_v9  ;;  %v408_v15 = vadd.f32 %v6790_v2, %v407_v12 }
  0xe0   :  { %v7500_v18 = vpop.f32.mrf.mxu1  ;;  %v7472_v27 = vpop.f32.mrf.mxu0 }
  0xe1   :  { %v714_v28 = vadd.f32 %v628_v14, %v474_v17  ;;  %446 = vst.msk [vmem:[#allocation4] sm:$0xff] %vm197_vm2, %v408_v15  ;;  %v423_v29 = vadd.f32 %v7472_v27, %v6790_v2 }
  0xe2   :  { %v417_v30 = vpop.f32.mrf.mxu0 }
  0xe3   :  { %v6813_v31 = vmul.f32 -1.442695, %v714_v28  ;;  %449 = vst.msk [vmem:[#allocation4 + $0x18] sm:$0xff] %vm197_vm2, %v423_v29  ;;  %v418_v32 = vadd.f32 %v6790_v2, %v417_v30 }
  0xe4   :  { %v7475_v33 = vpop.f32.mrf.mxu0 }
  0xe5   :  { %448 = vst.msk [vmem:[#allocation4 + $0x10] sm:$0xff] %vm197_vm2, %v418_v32  ;;  %v433_v34 = vadd.f32 %v7475_v33, %v6790_v2  ;;  %8233 = vpow2.f32 %v6813_v31 }
  0xe6   :  { %v427_v35 = vpop.f32.mrf.mxu0  ;;  %v731_v31 = vld [vmem:[#allocation4 + $0x8] sm:$0xff] }
  0xe7   :  { %451 = vst.msk [vmem:[#allocation4 + $0x28] sm:$0xff] %vm197_vm2, %v433_v34  ;;  %v428_v36 = vadd.f32 %v6790_v2, %v427_v35 }
  0xe8   :  { %v7478_v37 = vpop.f32.mrf.mxu0  ;;  %v475_v51 = vld [vmem:[#allocation4] sm:$0xff] }
  0xe9   :  { %450 = vst.msk [vmem:[#allocation4 + $0x20] sm:$0xff] %vm197_vm2, %v428_v36  ;;  %v443_v38 = vadd.f32 %v7478_v37, %v6790_v2 }
  0xea   :  { %v8232_v39 = vpop.eup %8231  ;;  %v437_v40 = vpop.f32.mrf.mxu0 }
  0xeb   :  { %v711_v41 = vadd.f32 1.0, %v8232_v39  ;;  %453 = vst.msk [vmem:[#allocation4 + $0x38] sm:$0xff] %vm197_vm2, %v443_v38  ;;  %v438_v42 = vadd.f32 %v6790_v2, %v437_v40 }
  0xec   :  { %v703_v43 = vpop.f32.mrf.mxu0 }
  0xed   :  { %8235 = vrcp.f32 %v711_v41  ;;  %452 = vst.msk [vmem:[#allocation4 + $0x30] sm:$0xff] %vm197_vm2, %v438_v42  ;;  %v704_v48 = vadd.f32 %v8744_v46, %v703_v43  ;;  %v967_v42 = vld [vmem:[#allocation2 + $0x10] sm:$0xff] }
  0xee   :  { %v7511_v44 = vpop.f32.mrf.mxu0 }
  0xf2   :  { %v8234_v45 = vpop.eup %8233 }
  0xf3   :  { %v718_v47 = vadd.f32 1.0, %v8234_v45 }
  0xf5   :  { %8237 = vrcp.f32 %v718_v47 }
  0xfa   :  { %v8236_v49 = vpop.eup %8235 }
  0xfb   :  { %v721_v50 = vmul.f32 %v8236_v49, %v704_v48  ;;  %v968_v49 = vld [vmem:[#allocation3 + $0x10] sm:$0xff] }
  0xfd   :  { %v722_v53 = vadd.f32 %v721_v50, %v475_v51 }
  0xff   :  { %8239 = vtanh.f32 %v722_v53 }
 0x102   :  { %v8238_v54 = vpop.eup %8237 }
 0x103   :  { %v724_v55 = vsub.f32 1.0, %v8238_v54  ;;  %v726_v58 = vmul.f32 0.0, %v8238_v54 }
 0x10c   :  { %v8240_v56 = vpop.eup %8239 }
 0x10d   :  { %v725_v57 = vmul.f32 %v8240_v56, %v724_v55 }
 0x10f   :  { %v8747_v59 = vadd.f32 %v726_v58, %v725_v57 }
 0x111   :  { %728 = vst.msk [vmem:[#allocation5] sm:$0xff] %vm197_vm2, %v8747_v59  ;;  %7521 = vmatmul.mubr.msk.f32.vlgmr.msra.gmra.mxu1 %vm197_vm2, %v8747_v59  ;;  %7532 = vmatmul.mubr.msk.f32.vlgmr.msra.gmra.mxu0 %vm197_vm2, %v8747_v59 }
 0x112   :  { %7535 = vmatpush3.msra.mxu1 %v8634_v23  ;;  %7542 = vmatprep.mubr.msk.f32.mxu1 %vm8419_vm1, %v8418_v8 }
 0x113   :  { %7536 = vmatprep.subr.mxu1 %v8418_v8  ;;  %7546 = vmatpush3.msra.mxu0 %v8527_v6 }
 0x114   :  { %7537 = vmatpush3.msra.mxu1 %v8648_v24  ;;  %7547 = vmatprep.subr.mxu0 %v8418_v8 }
 0x115   :  { %7538 = vmatprep.subr.mxu1 %v8418_v8  ;;  %7548 = vmatpush3.msra.mxu0 %v8551_v11 }
 0x116   :  { %7539 = vmatpush3.msra.mxu1 %v8656_v25  ;;  %7549 = vmatprep.subr.mxu0 %v8418_v8 }
 0x117   :  { %7540 = vmatprep.subr.mxu1 %v8418_v8  ;;  %7550 = vmatpush3.msra.mxu0 %v8563_v13 }
 0x118   :  { %7541 = vmatpush3.msra.mxu1 %v8665_v26  ;;  %7551 = vmatprep.subr.mxu0 %v8418_v8 }
 0x119   :  { %7543 = vmatmul.mubr.msk.f32.vlgmr.msra.gmra.mxu1 %vm197_vm2, %v8747_v59  ;;  %7556 = vmatprep.subr.mxu1 %v8418_v8 }
 0x11a   :  { %7557 = vmatpush3.msra.mxu1 %v8602_v19  ;;  %7552 = vmatpush3.msra.mxu0 %v8577_v16 }
 0x11b   :  { %7558 = vmatprep.subr.mxu1 %v8418_v8  ;;  %7553 = vmatprep.mubr.msk.f32.mxu0 %vm8419_vm1, %v8418_v8 }
 0x11c   :  { %7559 = vmatpush3.msra.mxu1 %v8610_v20  ;;  %7564 = vmatprep.mubr.msk.f32.mxu1 %vm8419_vm1, %v8418_v8 }
 0x11d   :  { %7560 = vmatprep.subr.mxu1 %v8418_v8  ;;  %7567 = vmatprep.subr.mxu0 %v8418_v8 }
 0x11e   :  { %7561 = vmatpush3.msra.mxu1 %v8619_v21 }
 0x11f   :  { %7562 = vmatprep.subr.mxu1 %v8418_v8 }
 0x120   :  { %7563 = vmatpush3.msra.mxu1 %v8629_v22 }
 0x121   :  { %7578 = vmatprep.subr.mxu1 %v8418_v8 }
 0x1d1   :  { %v801_v60 = vpop.f32.mrf.mxu1  ;;  %v871_v61 = vpop.f32.mrf.mxu0 }
 0x1d2   :  { %v802_v62 = vadd.f32 %v8714_v52, %v801_v60  ;;  %v872_v4 = vadd.f32 %v8729_v5, %v871_v61 }
 0x1d3   :  { %v7522_v0 = vpop.f32.mrf.mxu1  ;;  %v7533_v1 = vpop.f32.mrf.mxu0 }
 0x1d4   :  { %v945_v2 = vadd.f32 %v802_v62, %v729_v63  ;;  %v952_v10 = vadd.f32 %v872_v4, %v730_v7  ;;  %v969_v62 = vld [vmem:[#allocation4 + $0x10] sm:$0xff] }
 0x1d6   :  { %v6817_v3 = vmul.f32 -1.442695, %v945_v2  ;;  %v6818_v14 = vmul.f32 -1.442695, %v952_v10 }
 0x1d8   :  { %8241 = vpow2.f32 %v6817_v3 }
 0x1d9   :  { %v941_v9 = vpop.f32.mrf.mxu1  ;;  %8243 = vpow2.f32 %v6818_v14  ;;  %v1205_v14 = vld [vmem:[#allocation2 + $0x18] sm:$0xff] }
 0x1da   :  { %v942_v28 = vadd.f32 %v8744_v46, %v941_v9 }
 0x1db   :  { %v7544_v12 = vpop.f32.mrf.mxu1 }
 0x1e5   :  { %v8242_v15 = vpop.eup %8241 }
 0x1e6   :  { %v949_v17 = vadd.f32 1.0, %v8242_v15  ;;  %v8244_v18 = vpop.eup %8243 }
 0x1e7   :  { %v956_v27 = vadd.f32 1.0, %v8244_v18 }
 0x1e8   :  { %8245 = vrcp.f32 %v949_v17 }
 0x1e9   :  { %8247 = vrcp.f32 %v956_v27 }
 0x1f5   :  { %v8246_v29 = vpop.eup %8245 }
 0x1f6   :  { %v959_v30 = vmul.f32 %v8246_v29, %v942_v28  ;;  %v8248_v33 = vpop.eup %8247  ;;  %v1206_v29 = vld [vmem:[#allocation3 + $0x18] sm:$0xff] }
 0x1f7   :  { %v962_v34 = vsub.f32 1.0, %v8248_v33  ;;  %v964_v37 = vmul.f32 %v8248_v33, %v8747_v59 }
 0x1f8   :  { %v960_v32 = vadd.f32 %v959_v30, %v731_v31 }
 0x1fa   :  { %8249 = vtanh.f32 %v960_v32 }
 0x207   :  { %v8250_v35 = vpop.eup %8249 }
 0x208   :  { %v963_v36 = vmul.f32 %v8250_v35, %v962_v34 }
 0x20a   :  { %v8791_v38 = vadd.f32 %v964_v37, %v963_v36 }
 0x20c   :  { %966 = vst.msk [vmem:[#allocation5 + $0x8] sm:$0xff] %vm197_vm2, %v8791_v38  ;;  %7554 = vmatmul.mubr.msk.f32.vlgmr.msra.gmra.mxu0 %vm197_vm2, %v8791_v38  ;;  %7565 = vmatmul.mubr.msk.f32.vlgmr.msra.gmra.mxu1 %vm197_vm2, %v8791_v38 }
 0x20d   :  { %7568 = vmatpush3.msra.mxu0 %v8634_v23  ;;  %7575 = vmatprep.mubr.msk.f32.mxu0 %vm8419_vm1, %v8418_v8 }
 0x20e   :  { %7569 = vmatprep.subr.mxu0 %v8418_v8  ;;  %7579 = vmatpush3.msra.mxu1 %v8527_v6 }
 0x20f   :  { %7570 = vmatpush3.msra.mxu0 %v8648_v24  ;;  %7580 = vmatprep.subr.mxu1 %v8418_v8 }
 0x210   :  { %7571 = vmatprep.subr.mxu0 %v8418_v8  ;;  %7581 = vmatpush3.msra.mxu1 %v8551_v11 }
 0x211   :  { %7572 = vmatpush3.msra.mxu0 %v8656_v25  ;;  %7582 = vmatprep.subr.mxu1 %v8418_v8 }
 0x212   :  { %7573 = vmatprep.subr.mxu0 %v8418_v8  ;;  %7583 = vmatpush3.msra.mxu1 %v8563_v13 }
 0x213   :  { %7574 = vmatpush3.msra.mxu0 %v8665_v26  ;;  %7584 = vmatprep.subr.mxu1 %v8418_v8 }
 0x214   :  { %7576 = vmatmul.mubr.msk.f32.vlgmr.msra.gmra.mxu0 %vm197_vm2, %v8791_v38  ;;  %7589 = vmatprep.subr.mxu0 %v8418_v8 }
 0x215   :  { %7590 = vmatpush3.msra.mxu0 %v8602_v19  ;;  %7585 = vmatpush3.msra.mxu1 %v8577_v16 }
 0x216   :  { %7591 = vmatprep.subr.mxu0 %v8418_v8  ;;  %7586 = vmatprep.mubr.msk.f32.mxu1 %vm8419_vm1, %v8418_v8 }
 0x217   :  { %7592 = vmatpush3.msra.mxu0 %v8610_v20  ;;  %7597 = vmatprep.mubr.msk.f32.mxu0 %vm8419_vm1, %v8418_v8 }
 0x218   :  { %7593 = vmatprep.subr.mxu0 %v8418_v8  ;;  %7600 = vmatprep.subr.mxu1 %v8418_v8 }
 0x219   :  { %7594 = vmatpush3.msra.mxu0 %v8619_v21 }
 0x21a   :  { %7595 = vmatprep.subr.mxu0 %v8418_v8 }
 0x21b   :  { %7596 = vmatpush3.msra.mxu0 %v8629_v22 }
 0x21c   :  { %7611 = vmatprep.subr.mxu0 %v8418_v8 }
 0x2cc   :  { %v1039_v39 = vpop.f32.mrf.mxu0  ;;  %v1109_v40 = vpop.f32.mrf.mxu1 }
 0x2cd   :  { %v1040_v41 = vadd.f32 %v8714_v52, %v1039_v39  ;;  %v1110_v48 = vadd.f32 %v8729_v5, %v1109_v40 }
 0x2ce   :  { %v7555_v43 = vpop.f32.mrf.mxu0  ;;  %v7566_v44 = vpop.f32.mrf.mxu1 }
 0x2cf   :  { %v1183_v45 = vadd.f32 %v1040_v41, %v967_v42  ;;  %v1190_v51 = vadd.f32 %v1110_v48, %v968_v49  ;;  %v1207_v41 = vld [vmem:[#allocation4 + $0x18] sm:$0xff] }
 0x2d1   :  { %v6822_v47 = vmul.f32 -1.442695, %v1183_v45  ;;  %v6823_v54 = vmul.f32 -1.442695, %v1190_v51 }
 0x2d3   :  { %8251 = vpow2.f32 %v6822_v47 }
 0x2d4   :  { %v1179_v50 = vpop.f32.mrf.mxu0  ;;  %8253 = vpow2.f32 %v6823_v54  ;;  %v1443_v54 = vld [vmem:[#allocation2 + $0x20] sm:$0xff] }
 0x2d5   :  { %v1180_v59 = vadd.f32 %v8744_v46, %v1179_v50 }
 0x2d6   :  { %v7577_v53 = vpop.f32.mrf.mxu0 }
 0x2e0   :  { %v8252_v55 = vpop.eup %8251 }
 0x2e1   :  { %v1187_v56 = vadd.f32 1.0, %v8252_v55  ;;  %v8254_v57 = vpop.eup %8253 }
 0x2e2   :  { %v1194_v58 = vadd.f32 1.0, %v8254_v57 }
 0x2e3   :  { %8255 = vrcp.f32 %v1187_v56 }
 0x2e4   :  { %8257 = vrcp.f32 %v1194_v58 }
 0x2f0   :  { %v8256_v60 = vpop.eup %8255 }
 0x2f1   :  { %v1197_v61 = vmul.f32 %v8256_v60, %v1180_v59  ;;  %v8258_v0 = vpop.eup %8257  ;;  %v1444_v60 = vld [vmem:[#allocation3 + $0x20] sm:$0xff] }
 0x2f2   :  { %v1200_v1 = vsub.f32 1.0, %v8258_v0  ;;  %v1202_v4 = vmul.f32 %v8258_v0, %v8791_v38 }
 0x2f3   :  { %v1198_v63 = vadd.f32 %v1197_v61, %v969_v62 }
 0x2f5   :  { %8259 = vtanh.f32 %v1198_v63 }
 0x302   :  { %v8260_v2 = vpop.eup %8259 }
 0x303   :  { %v1201_v3 = vmul.f32 %v8260_v2, %v1200_v1 }
 0x305   :  { %v8835_v7 = vadd.f32 %v1202_v4, %v1201_v3 }
 0x307   :  { %1204 = vst.msk [vmem:[#allocation5 + $0x10] sm:$0xff] %vm197_vm2, %v8835_v7  ;;  %7587 = vmatmul.mubr.msk.f32.vlgmr.msra.gmra.mxu1 %vm197_vm2, %v8835_v7  ;;  %7598 = vmatmul.mubr.msk.f32.vlgmr.msra.gmra.mxu0 %vm197_vm2, %v8835_v7 }
 0x308   :  { %7601 = vmatpush3.msra.mxu1 %v8634_v23  ;;  %7608 = vmatprep.mubr.msk.f32.mxu1 %vm8419_vm1, %v8418_v8 }
 0x309   :  { %7602 = vmatprep.subr.mxu1 %v8418_v8  ;;  %7612 = vmatpush3.msra.mxu0 %v8527_v6 }
 0x30a   :  { %7603 = vmatpush3.msra.mxu1 %v8648_v24  ;;  %7613 = vmatprep.subr.mxu0 %v8418_v8 }
 0x30b   :  { %7604 = vmatprep.subr.mxu1 %v8418_v8  ;;  %7614 = vmatpush3.msra.mxu0 %v8551_v11 }
 0x30c   :  { %7605 = vmatpush3.msra.mxu1 %v8656_v25  ;;  %7615 = vmatprep.subr.mxu0 %v8418_v8 }
 0x30d   :  { %7606 = vmatprep.subr.mxu1 %v8418_v8  ;;  %7616 = vmatpush3.msra.mxu0 %v8563_v13 }
 0x30e   :  { %7607 = vmatpush3.msra.mxu1 %v8665_v26  ;;  %7617 = vmatprep.subr.mxu0 %v8418_v8 }
 0x30f   :  { %7609 = vmatmul.mubr.msk.f32.vlgmr.msra.gmra.mxu1 %vm197_vm2, %v8835_v7  ;;  %7622 = vmatprep.subr.mxu1 %v8418_v8 }
 0x310   :  { %7623 = vmatpush3.msra.mxu1 %v8602_v19  ;;  %7618 = vmatpush3.msra.mxu0 %v8577_v16 }
 0x311   :  { %7624 = vmatprep.subr.mxu1 %v8418_v8  ;;  %7619 = vmatprep.mubr.msk.f32.mxu0 %vm8419_vm1, %v8418_v8 }
 0x312   :  { %7625 = vmatpush3.msra.mxu1 %v8610_v20  ;;  %7630 = vmatprep.mubr.msk.f32.mxu1 %vm8419_vm1, %v8418_v8 }
 0x313   :  { %7626 = vmatprep.subr.mxu1 %v8418_v8  ;;  %7633 = vmatprep.subr.mxu0 %v8418_v8 }
 0x314   :  { %7627 = vmatpush3.msra.mxu1 %v8619_v21 }
 0x315   :  { %7628 = vmatprep.subr.mxu1 %v8418_v8 }
 0x316   :  { %7629 = vmatpush3.msra.mxu1 %v8629_v22 }
 0x317   :  { %7644 = vmatprep.subr.mxu1 %v8418_v8 }
 0x3c7   :  { %v1277_v9 = vpop.f32.mrf.mxu1  ;;  %v1347_v10 = vpop.f32.mrf.mxu0 }
 0x3c8   :  { %v1278_v12 = vadd.f32 %v8714_v52, %v1277_v9  ;;  %v1348_v28 = vadd.f32 %v8729_v5, %v1347_v10 }
 0x3c9   :  { %v7588_v15 = vpop.f32.mrf.mxu1  ;;  %v7599_v17 = vpop.f32.mrf.mxu0 }
 0x3ca   :  { %v1421_v18 = vadd.f32 %v1278_v12, %v1205_v14  ;;  %v1428_v31 = vadd.f32 %v1348_v28, %v1206_v29  ;;  %v1445_v12 = vld [vmem:[#allocation4 + $0x20] sm:$0xff] }
 0x3cc   :  { %v6827_v27 = vmul.f32 -1.442695, %v1421_v18  ;;  %v6828_v33 = vmul.f32 -1.442695, %v1428_v31 }
 0x3ce   :  { %8261 = vpow2.f32 %v6827_v27 }
 0x3cf   :  { %v1417_v30 = vpop.f32.mrf.mxu1  ;;  %8263 = vpow2.f32 %v6828_v33  ;;  %v1682_v33 = vld [vmem:[#allocation3 + $0x28] sm:$0xff] }
 0x3d0   :  { %v1418_v38 = vadd.f32 %v8744_v46, %v1417_v30 }
 0x3d1   :  { %v7610_v32 = vpop.f32.mrf.mxu1 }
 0x3db   :  { %v8262_v34 = vpop.eup %8261 }
 0x3dc   :  { %v1425_v35 = vadd.f32 1.0, %v8262_v34  ;;  %v8264_v36 = vpop.eup %8263 }
 0x3dd   :  { %v1432_v37 = vadd.f32 1.0, %v8264_v36 }
 0x3de   :  { %8265 = vrcp.f32 %v1425_v35 }
 0x3df   :  { %8267 = vrcp.f32 %v1432_v37 }
 0x3eb   :  { %v8266_v39 = vpop.eup %8265 }
 0x3ec   :  { %v1435_v40 = vmul.f32 %v8266_v39, %v1418_v38  ;;  %v8268_v43 = vpop.eup %8267 }
 0x3ed   :  { %v1438_v44 = vsub.f32 1.0, %v8268_v43  ;;  %v1440_v48 = vmul.f32 %v8268_v43, %v8835_v7  ;;  %v1683_v43 = vld [vmem:[#allocation4 + $0x28] sm:$0xff] }
 0x3ee   :  { %v1436_v42 = vadd.f32 %v1435_v40, %v1207_v41 }
 0x3f0   :  { %8269 = vtanh.f32 %v1436_v42 }
 0x3fd   :  { %v8270_v45 = vpop.eup %8269 }
 0x3fe   :  { %v1439_v47 = vmul.f32 %v8270_v45, %v1438_v44 }
 0x400   :  { %v8879_v49 = vadd.f32 %v1440_v48, %v1439_v47 }
 0x402   :  { %1442 = vst.msk [vmem:[#allocation5 + $0x18] sm:$0xff] %vm197_vm2, %v8879_v49  ;;  %7620 = vmatmul.mubr.msk.f32.vlgmr.msra.gmra.mxu0 %vm197_vm2, %v8879_v49  ;;  %7631 = vmatmul.mubr.msk.f32.vlgmr.msra.gmra.mxu1 %vm197_vm2, %v8879_v49 }
 0x403   :  { %7634 = vmatpush3.msra.mxu0 %v8634_v23  ;;  %7641 = vmatprep.mubr.msk.f32.mxu0 %vm8419_vm1, %v8418_v8 }
 0x404   :  { %7635 = vmatprep.subr.mxu0 %v8418_v8  ;;  %7645 = vmatpush3.msra.mxu1 %v8527_v6 }
 0x405   :  { %7636 = vmatpush3.msra.mxu0 %v8648_v24  ;;  %7646 = vmatprep.subr.mxu1 %v8418_v8 }
 0x406   :  { %7637 = vmatprep.subr.mxu0 %v8418_v8  ;;  %7647 = vmatpush3.msra.mxu1 %v8551_v11 }
 0x407   :  { %7638 = vmatpush3.msra.mxu0 %v8656_v25  ;;  %7648 = vmatprep.subr.mxu1 %v8418_v8 }
 0x408   :  { %7639 = vmatprep.subr.mxu0 %v8418_v8  ;;  %7649 = vmatpush3.msra.mxu1 %v8563_v13 }
 0x409   :  { %7640 = vmatpush3.msra.mxu0 %v8665_v26  ;;  %7650 = vmatprep.subr.mxu1 %v8418_v8 }
 0x40a   :  { %7642 = vmatmul.mubr.msk.f32.vlgmr.msra.gmra.mxu0 %vm197_vm2, %v8879_v49  ;;  %7655 = vmatprep.subr.mxu0 %v8418_v8 }
 0x40b   :  { %7656 = vmatpush3.msra.mxu0 %v8602_v19  ;;  %7651 = vmatpush3.msra.mxu1 %v8577_v16 }
 0x40c   :  { %7657 = vmatprep.subr.mxu0 %v8418_v8  ;;  %7652 = vmatprep.mubr.msk.f32.mxu1 %vm8419_vm1, %v8418_v8 }
 0x40d   :  { %7658 = vmatpush3.msra.mxu0 %v8610_v20  ;;  %7663 = vmatprep.mubr.msk.f32.mxu0 %vm8419_vm1, %v8418_v8 }
 0x40e   :  { %7659 = vmatprep.subr.mxu0 %v8418_v8  ;;  %7666 = vmatprep.subr.mxu1 %v8418_v8 }
 0x40f   :  { %7660 = vmatpush3.msra.mxu0 %v8619_v21 }
 0x410   :  { %7661 = vmatprep.subr.mxu0 %v8418_v8 }
 0x411   :  { %7662 = vmatpush3.msra.mxu0 %v8629_v22 }
 0x412   :  { %7677 = vmatprep.subr.mxu0 %v8418_v8 }
 0x4c2   :  { %v1515_v50 = vpop.f32.mrf.mxu0  ;;  %v1585_v51 = vpop.f32.mrf.mxu1 }
 0x4c3   :  { %v1516_v53 = vadd.f32 %v8714_v52, %v1515_v50  ;;  %v1586_v59 = vadd.f32 %v8729_v5, %v1585_v51 }
 0x4c4   :  { %v7621_v55 = vpop.f32.mrf.mxu0  ;;  %v7632_v56 = vpop.f32.mrf.mxu1 }
 0x4c5   :  { %v1659_v57 = vadd.f32 %v1516_v53, %v1443_v54  ;;  %v1666_v62 = vadd.f32 %v1586_v59, %v1444_v60  ;;  %v8399_v53 = vld [vmem:[%s10323_s2 + $0x18] sm:$0xff]  ;;  %v8401_v54 = vld [vmem:[%s10323_s2 + $0x8] sm:$0xff]  ;;  %v8406_v56 = vld [vmem:[%s10323_s2 + $0x20] sm:$0xff] }
 0x4c6   :  { %v8405_v55 = vld [vmem:[%s10323_s2 + $0x28] sm:$0xff] }
 0x4c7   :  { %v6832_v58 = vmul.f32 -1.442695, %v1659_v57  ;;  %v6833_v0 = vmul.f32 -1.442695, %v1666_v62  ;;  %v2406_v57 = vld [vmem:[%s10326_s5 + $0x18] sm:$0xff] }
 0x4c9   :  { %8271 = vpow2.f32 %v6832_v58 }
 0x4ca   :  { %v1655_v61 = vpop.f32.mrf.mxu0  ;;  %8273 = vpow2.f32 %v6833_v0 }
 0x4cb   :  { %v1656_v7 = vadd.f32 %v8744_v46, %v1655_v61  ;;  %v1919_v61 = vld [vmem:[#allocation2 + $0x30] sm:$0xff] }
 0x4cc   :  { %v7643_v63 = vpop.f32.mrf.mxu0 }
 0x4d6   :  { %v8272_v1 = vpop.eup %8271 }
 0x4d7   :  { %v1663_v2 = vadd.f32 1.0, %v8272_v1  ;;  %v8274_v3 = vpop.eup %8273 }
 0x4d8   :  { %v1670_v4 = vadd.f32 1.0, %v8274_v3  ;;  %v1920_v3 = vld [vmem:[#allocation3 + $0x30] sm:$0xff] }
 0x4d9   :  { %8275 = vrcp.f32 %v1663_v2 }
 0x4da   :  { %8277 = vrcp.f32 %v1670_v4 }
 0x4e6   :  { %v8276_v9 = vpop.eup %8275 }
 0x4e7   :  { %v1673_v10 = vmul.f32 %v8276_v9, %v1656_v7  ;;  %v8278_v15 = vpop.eup %8277 }
 0x4e8   :  { %v1676_v17 = vsub.f32 1.0, %v8278_v15  ;;  %v1678_v28 = vmul.f32 %v8278_v15, %v8879_v49 }
 0x4e9   :  { %v1674_v14 = vadd.f32 %v1673_v10, %v1445_v12 }
 0x4eb   :  { %8279 = vtanh.f32 %v1674_v14 }
 0x4f8   :  { %v8280_v18 = vpop.eup %8279 }
 0x4f9   :  { %v1677_v27 = vmul.f32 %v8280_v18, %v1676_v17 }
 0x4fb   :  { %v8923_v29 = vadd.f32 %v1678_v28, %v1677_v27  ;;  %v1921_v28 = vld [vmem:[#allocation4 + $0x30] sm:$0xff] }
 0x4fd   :  { %1680 = vst.msk [vmem:[#allocation5 + $0x20] sm:$0xff] %vm197_vm2, %v8923_v29  ;;  %7653 = vmatmul.mubr.msk.f32.vlgmr.msra.gmra.mxu1 %vm197_vm2, %v8923_v29  ;;  %7664 = vmatmul.mubr.msk.f32.vlgmr.msra.gmra.mxu0 %vm197_vm2, %v8923_v29 }
 0x4fe   :  { %7667 = vmatpush3.msra.mxu1 %v8634_v23  ;;  %7674 = vmatprep.mubr.msk.f32.mxu1 %vm8419_vm1, %v8418_v8 }
 0x4ff   :  { %7668 = vmatprep.subr.mxu1 %v8418_v8  ;;  %7678 = vmatpush3.msra.mxu0 %v8527_v6 }
 0x500   :  { %7669 = vmatpush3.msra.mxu1 %v8648_v24  ;;  %7679 = vmatprep.subr.mxu0 %v8418_v8 }
 0x501   :  { %7670 = vmatprep.subr.mxu1 %v8418_v8  ;;  %7680 = vmatpush3.msra.mxu0 %v8551_v11 }
 0x502   :  { %7671 = vmatpush3.msra.mxu1 %v8656_v25  ;;  %7681 = vmatprep.subr.mxu0 %v8418_v8 }
 0x503   :  { %7672 = vmatprep.subr.mxu1 %v8418_v8  ;;  %7682 = vmatpush3.msra.mxu0 %v8563_v13 }
 0x504   :  { %7673 = vmatpush3.msra.mxu1 %v8665_v26  ;;  %7683 = vmatprep.subr.mxu0 %v8418_v8 }
 0x505   :  { %7675 = vmatmul.mubr.msk.f32.vlgmr.msra.gmra.mxu1 %vm197_vm2, %v8923_v29  ;;  %7688 = vmatprep.subr.mxu1 %v8418_v8 }
 0x506   :  { %7689 = vmatpush3.msra.mxu1 %v8602_v19  ;;  %7684 = vmatpush3.msra.mxu0 %v8577_v16  ;;  %v1681_v16 = vld [vmem:[#allocation2 + $0x28] sm:$0xff] }
 0x507   :  { %7690 = vmatprep.subr.mxu1 %v8418_v8  ;;  %7685 = vmatprep.mubr.msk.f32.mxu0 %vm8419_vm1, %v8418_v8 }
 0x508   :  { %7691 = vmatpush3.msra.mxu1 %v8610_v20  ;;  %7696 = vmatprep.mubr.msk.f32.mxu1 %vm8419_vm1, %v8418_v8 }
 0x509   :  { %7692 = vmatprep.subr.mxu1 %v8418_v8  ;;  %7699 = vmatprep.subr.mxu0 %v8418_v8 }
 0x50a   :  { %7693 = vmatpush3.msra.mxu1 %v8619_v21 }
 0x50b   :  { %7694 = vmatprep.subr.mxu1 %v8418_v8 }
 0x50c   :  { %7695 = vmatpush3.msra.mxu1 %v8629_v22 }
 0x50d   :  { %7710 = vmatprep.subr.mxu1 %v8418_v8 }
 0x5bd   :  { %v1753_v6 = vpop.f32.mrf.mxu1  ;;  %v1823_v11 = vpop.f32.mrf.mxu0 }
 0x5be   :  { %v1754_v13 = vadd.f32 %v8714_v52, %v1753_v6  ;;  %v1824_v32 = vadd.f32 %v8729_v5, %v1823_v11 }
 0x5bf   :  { %v7654_v19 = vpop.f32.mrf.mxu1  ;;  %v7665_v20 = vpop.f32.mrf.mxu0 }
 0x5c0   :  { %v1897_v30 = vadd.f32 %v1754_v13, %v1681_v16  ;;  %v1904_v34 = vadd.f32 %v1824_v32, %v1682_v33  ;;  %v2405_v20 = vld [vmem:[%s10326_s5 + $0x10] sm:$0xff]  ;;  %v2403_v33 = vld [vmem:[%s10326_s5] sm:$0xff] }
 0x5c1   :  { %v8408_v32 = vld [vmem:[%s10323_s2 + $0x50] sm:$0xff] }
 0x5c2   :  { %v6837_v31 = vmul.f32 -1.442695, %v1897_v30  ;;  %v6838_v36 = vmul.f32 -1.442695, %v1904_v34  ;;  %v9044_v30 = vld [vmem:[#allocation5] sm:$0xff] }
 0x5c3   :  { %v8410_v34 = vld [vmem:[%s10323_s2 + $0x40] sm:$0xff] }
 0x5c4   :  { %8281 = vpow2.f32 %v6837_v31  ;;  %v2404_v31 = vld [vmem:[%s10326_s5 + $0x8] sm:$0xff] }
 0x5c5   :  { %v1893_v21 = vpop.f32.mrf.mxu1  ;;  %8283 = vpow2.f32 %v6838_v36  ;;  %v9070_v36 = vld [vmem:[#allocation5 + $0x8] sm:$0xff] }
 0x5c6   :  { %v1894_v40 = vadd.f32 %v8744_v46, %v1893_v21  ;;  %v8409_v21 = vld [vmem:[%s10323_s2 + $0x48] sm:$0xff] }
 0x5c7   :  { %v7676_v35 = vpop.f32.mrf.mxu1 }
 0x5c8   :  { %v6861_v35 = vld [vmem:[%s10326_s5 + $0x38] sm:$0xff] }
 0x5d1   :  { %v8282_v22 = vpop.eup %8281 }
 0x5d2   :  { %v1901_v37 = vadd.f32 1.0, %v8282_v22  ;;  %v8284_v38 = vpop.eup %8283  ;;  %v9076_v22 = vld [vmem:[#allocation5 + $0x10] sm:$0xff] }
 0x5d3   :  { %v1908_v39 = vadd.f32 1.0, %v8284_v38  ;;  %v6859_v38 = vld [vmem:[%s10326_s5 + $0x28] sm:$0xff] }
 0x5d4   :  { %8285 = vrcp.f32 %v1901_v37  ;;  %v6860_v37 = vld [vmem:[%s10326_s5 + $0x30] sm:$0xff] }
 0x5d5   :  { %8287 = vrcp.f32 %v1908_v39  ;;  %v9088_v39 = vld [vmem:[#allocation5 + $0x18] sm:$0xff] }
 0x5e1   :  { %v8286_v41 = vpop.eup %8285 }
 0x5e2   :  { %v1911_v42 = vmul.f32 %v8286_v41, %v1894_v40  ;;  %v8288_v45 = vpop.eup %8287  ;;  %v9092_v40 = vld [vmem:[#allocation5 + $0x20] sm:$0xff] }
 0x5e3   :  { %v1914_v47 = vsub.f32 1.0, %v8288_v45  ;;  %v1916_v50 = vmul.f32 %v8288_v45, %v8923_v29  ;;  %v6858_v41 = vld [vmem:[%s10326_s5 + $0x20] sm:$0xff]  ;;  %v6874_v45 = vld [vmem:[%s10326_s5 + $0x50] sm:$0xff] }
 0x5e4   :  { %v1912_v44 = vadd.f32 %v1911_v42, %v1683_v43 }
 0x5e6   :  { %8289 = vtanh.f32 %v1912_v44  ;;  %v6875_v44 = vld [vmem:[%s10326_s5 + $0x58] sm:$0xff] }
 0x5f3   :  { %v8290_v48 = vpop.eup %8289 }
 0x5f4   :  { %v1915_v49 = vmul.f32 %v8290_v48, %v1914_v47  ;;  %v9129_v47 = vld [vmem:[%s10327_s6 + $0x18] sm:$0xff]  ;;  %v9134_v48 = vld [vmem:[%s10327_s6 + $0x10] sm:$0xff] }
 0x5f6   :  { %v8967_v51 = vadd.f32 %v1916_v50, %v1915_v49  ;;  %v9141_v49 = vld [vmem:[%s10327_s6 + $0x8] sm:$0xff] }
 0x5f7   :  { %v6873_v50 = vld [vmem:[%s10326_s5 + $0x48] sm:$0xff] }
 0x5f8   :  { %1918 = vst.msk [vmem:[#allocation5 + $0x28] sm:$0xff] %vm197_vm2, %v8967_v51  ;;  %7686 = vmatmul.mubr.msk.f32.vlgmr.msra.gmra.mxu0 %vm197_vm2, %v8967_v51  ;;  %7697 = vmatmul.mubr.msk.f32.vlgmr.msra.gmra.mxu1 %vm197_vm2, %v8967_v51 }
 0x5f9   :  { %7700 = vmatpush3.msra.mxu0 %v8634_v23  ;;  %7707 = vmatprep.mubr.msk.f32.mxu0 %vm8419_vm1, %v8418_v8  ;;  %v8400_v23 = vld [vmem:[%s10323_s2 + $0x10] sm:$0xff] }
 0x5fa   :  { %7701 = vmatprep.subr.mxu0 %v8418_v8  ;;  %7711 = vmatpush3.msra.mxu1 %v8399_v53  ;;  %v6872_v53 = vld [vmem:[%s10326_s5 + $0x40] sm:$0xff] }
 0x5fb   :  { %7702 = vmatpush3.msra.mxu0 %v8648_v24  ;;  %7712 = vmatprep.subr.mxu1 %v8418_v8  ;;  %v8402_v24 = vld [vmem:[%s10323_s2 + $0x38] sm:$0xff] }
 0x5fc   :  { %7703 = vmatprep.subr.mxu0 %v8418_v8  ;;  %7713 = vmatpush3.msra.mxu1 %v8400_v23 }
 0x5fd   :  { %7704 = vmatpush3.msra.mxu0 %v8656_v25  ;;  %7714 = vmatprep.subr.mxu1 %v8418_v8  ;;  %v8403_v25 = vld [vmem:[%s10323_s2] sm:$0xff] }
 0x5fe   :  { %7705 = vmatprep.subr.mxu0 %v8418_v8  ;;  %7715 = vmatpush3.msra.mxu1 %v8401_v54 }
 0x5ff   :  { %7706 = vmatpush3.msra.mxu0 %v8665_v26  ;;  %7716 = vmatprep.subr.mxu1 %v8418_v8  ;;  %v8404_v26 = vld [vmem:[%s10323_s2 + $0x30] sm:$0xff]  ;;  %v9099_v42 = vld [vmem:[#allocation5 + $0x28] sm:$0xff] }
 0x600   :  { %7708 = vmatmul.mubr.msk.f32.vlgmr.msra.gmra.mxu0 %vm197_vm2, %v8967_v51  ;;  %7721 = vmatprep.subr.mxu0 %v8418_v8 }
 0x601   :  { %7722 = vmatpush3.msra.mxu0 %v8402_v24  ;;  %7717 = vmatpush3.msra.mxu1 %v8403_v25  ;;  %v8411_v24 = vld [vmem:[%s10325_s4] ss:$0 sm:$0xff] }
 0x602   :  { %7723 = vmatprep.subr.mxu0 %v8418_v8  ;;  %7718 = vmatprep.mubr.msk.f32.mxu1 %vm8419_vm1, %v8418_v8 }
 0x603   :  { %7724 = vmatpush3.msra.mxu0 %v8404_v26  ;;  %7729 = vmatprep.mubr.msk.f32.mxu0 %vm8419_vm1, %v8418_v8  ;;  %v2157_v26 = vld [vmem:[#allocation2 + $0x38] sm:$0xff] }
 0x604   :  { %7725 = vmatprep.subr.mxu0 %v8418_v8  ;;  %7732 = vmatprep.subr.mxu1 %v8418_v8 }
 0x605   :  { %7726 = vmatpush3.msra.mxu0 %v8405_v55 }
 0x606   :  { %7727 = vmatprep.subr.mxu0 %v8418_v8 }
 0x607   :  { %7728 = vmatpush3.msra.mxu0 %v8406_v56 }
 0x608   :  { %7743 = vmatprep.subr.mxu0 %v2406_v57 }
 0x6b8   :  { %v1991_v58 = vpop.f32.mrf.mxu0  ;;  %v2061_v59 = vpop.f32.mrf.mxu1 }
 0x6b9   :  { %v1992_v60 = vadd.f32 %v8714_v52, %v1991_v58  ;;  %v2062_v2 = vadd.f32 %v8729_v5, %v2061_v59  ;;  %v8412_v59 = vld [vmem:[%s10325_s4 + $0x1] ss:$0 sm:$0xff] }
 0x6ba   :  { %v7687_v62 = vpop.f32.mrf.mxu0  ;;  %v7698_v63 = vpop.f32.mrf.mxu1 }
 0x6bb   :  { %v2135_v0 = vadd.f32 %v1992_v60, %v1919_v61  ;;  %v2142_v7 = vadd.f32 %v2062_v2, %v1920_v3  ;;  %v9170_v61 = vld [vmem:[%s10328_s7] ss:$0 sm:$0xff]  ;;  %v2158_v62 = vld [vmem:[#allocation3 + $0x38] sm:$0xff] }
 0x6bd   :  { %v6842_v1 = vmul.f32 -1.442695, %v2135_v0  ;;  %v6843_v10 = vmul.f32 -1.442695, %v2142_v7 }
 0x6bf   :  { %8291 = vpow2.f32 %v6842_v1 }
 0x6c0   :  { %v2131_v4 = vpop.f32.mrf.mxu0  ;;  %8293 = vpow2.f32 %v6843_v10 }
 0x6c1   :  { %v2132_v52 = vadd.f32 %v8744_v46, %v2131_v4  ;;  %v8407_v46 = vld [vmem:[%s10323_s2 + $0x58] sm:$0xff] }
 0x6c2   :  { %v7709_v9 = vpop.f32.mrf.mxu0 }
 0x6cc   :  { %v8292_v12 = vpop.eup %8291 }
 0x6cd   :  { %v2139_v14 = vadd.f32 1.0, %v8292_v12  ;;  %v8294_v15 = vpop.eup %8293 }
 0x6ce   :  { %v2146_v17 = vadd.f32 1.0, %v8294_v15 }
 0x6cf   :  { %8295 = vrcp.f32 %v2139_v14 }
 0x6d0   :  { %8297 = vrcp.f32 %v2146_v17  ;;  %v9182_v17 = vld [vmem:[%s10328_s7 + $0x1] ss:$0 sm:$0xff] }
 0x6dc   :  { %v8296_v18 = vpop.eup %8295 }
 0x6dd   :  { %v2149_v27 = vmul.f32 %v8296_v18, %v2132_v52  ;;  %v8298_v5 = vpop.eup %8297 }
 0x6de   :  { %v2152_v6 = vsub.f32 1.0, %v8298_v5  ;;  %v2154_v16 = vmul.f32 %v8298_v5, %v8967_v51  ;;  %v9153_v51 = vld [vmem:[%s10327_s6] sm:$0xff] }
 0x6df   :  { %v2150_v29 = vadd.f32 %v2149_v27, %v1921_v28 }
 0x6e1   :  { %8299 = vtanh.f32 %v2150_v29 }
 0x6ee   :  { %v8300_v11 = vpop.eup %8299 }
 0x6ef   :  { %v2153_v13 = vmul.f32 %v8300_v11, %v2152_v6 }
 0x6f1   :  { %v9029_v19 = vadd.f32 %v2154_v16, %v2153_v13 }
 0x6f3   :  { %2156 = vst.msk [vmem:[#allocation5 + $0x30] sm:$0xff] %vm197_vm2, %v9029_v19  ;;  %7719 = vmatmul.mubr.msk.f32.vlgmr.msra.gmra.mxu1 %vm197_vm2, %v9029_v19  ;;  %7730 = vmatmul.mubr.msk.f32.vlgmr.msra.gmra.mxu0 %vm197_vm2, %v9029_v19 }
 0x6f4   :  { %7733 = vmatpush3.msra.mxu1 %v8407_v46  ;;  %7744 = vmatpush3.msra.mxu0 %v2406_v57 }
 0x6f5   :  { %7734 = vmatprep.subr.mxu1 %v8418_v8  ;;  %7745 = vmatprep.subr.mxu0 %v2405_v20 }
 0x6f6   :  { %7751 = vmatprep.mubr.msk.f32.mxu0 %vm197_vm2, %v9044_v30  ;;  %7735 = vmatpush3.msra.mxu1 %v8408_v32 }
 0x6f7   :  { %7746 = vmatpush3.msra.mxu0 %v2405_v20  ;;  %7736 = vmatprep.subr.mxu1 %v8418_v8 }
 0x6f8   :  { %7747 = vmatprep.subr.mxu0 %v2404_v31  ;;  %7737 = vmatpush3.msra.mxu1 %v8409_v21 }
 0x6f9   :  { %7748 = vmatpush3.msra.mxu0 %v2404_v31  ;;  %7738 = vmatprep.subr.mxu1 %v8418_v8 }
 0x6fa   :  { %7749 = vmatprep.subr.mxu0 %v2403_v33  ;;  %7739 = vmatpush3.msra.mxu1 %v8410_v34  ;;  %v9103_v43 = vld [vmem:[#allocation5 + $0x30] sm:$0xff] }
 0x6fb   :  { %7740 = vmatprep.mubr.msk.f32.mxu1 %vm8419_vm1, %v8418_v8  ;;  %7750 = vmatpush3.msra.mxu0 %v2403_v33 }
 0x6fc   :  { %7741 = vmatmul.mubr.msk.f32.vlgmr.msra.gmra.mxu1 %vm197_vm2, %v9029_v19  ;;  %7752 = vmatmul.mubr.msk.f32.vlgmr.msra.gmra.mxu0 %vm197_vm2, %v9070_v36 }
 0x6fd   :  { %7763 = vmatprep.subr.mxu1 %v6861_v35  ;;  %7754 = vmatprep.mubr.msk.f32.mxu0 %vm197_vm2, %v9076_v22 }
 0x6fe   :  { %7764 = vmatpush3.msra.mxu1 %v6861_v35  ;;  %7771 = vmatprep.mubr.msk.f32.mxu1 %vm197_vm2, %v9044_v30 }
 0x6ff   :  { %7765 = vmatprep.subr.mxu1 %v6860_v37  ;;  %7783 = vmatprep.subr.mxu0 %v6875_v44 }
 0x700   :  { %7766 = vmatpush3.msra.mxu1 %v6860_v37  ;;  %7755 = vmatmul.mubr.msk.f32.gmra.mxu0 %vm197_vm2, %v9088_v39 }
 0x701   :  { %7767 = vmatprep.subr.mxu1 %v6859_v38  ;;  %7757 = vmatprep.mubr.msk.f32.mxu0 %vm197_vm2, %v9092_v40 }
 0x702   :  { %7768 = vmatpush3.msra.mxu1 %v6859_v38  ;;  %7784 = vmatpush3.msra.mxu0 %v6875_v44 }
 0x703   :  { %7769 = vmatprep.subr.mxu1 %v6858_v41  ;;  %7785 = vmatprep.subr.mxu0 %v6874_v45 }
 0x704   :  { %7770 = vmatpush3.msra.mxu1 %v6858_v41  ;;  %7758 = vmatmul.mubr.msk.f32.gmra.mxu0 %vm197_vm2, %v9099_v42  ;;  %v8413_v41 = vld [vmem:[%s10325_s4 + $0x2] ss:$0 sm:$0xff] }
 0x705   :  { %7772 = vmatmul.mubr.msk.f32.vlgmr.msra.gmra.mxu1 %vm197_vm2, %v9070_v36  ;;  %7760 = vmatprep.mubr.msk.f32.mxu0 %vm197_vm2, %v9103_v43 }
 0x706   :  { %7774 = vmatprep.mubr.msk.f32.mxu1 %vm197_vm2, %v9076_v22  ;;  %7803 = vmatprep.subr.mxu1 %v8418_v8 }
 0x707   :  { %7804 = vmatpush3.msra.mxu1 %v9129_v47  ;;  %7786 = vmatpush3.msra.mxu0 %v6874_v45 }
 0x708   :  { %7805 = vmatprep.subr.mxu1 %v8418_v8  ;;  %7787 = vmatprep.subr.mxu0 %v6873_v50 }
 0x709   :  { %7775 = vmatmul.mubr.msk.f32.gmra.mxu1 %vm197_vm2, %v9088_v39  ;;  %7788 = vmatpush3.msra.mxu0 %v6873_v50 }
 0x70a   :  { %7777 = vmatprep.mubr.msk.f32.mxu1 %vm197_vm2, %v9092_v40  ;;  %7806 = vmatpush3.msra.mxu1 %v9134_v48 }
 0x70b   :  { %7807 = vmatprep.subr.mxu1 %v8418_v8  ;;  %7789 = vmatprep.subr.mxu0 %v6872_v53 }
 0x70c   :  { %7808 = vmatpush3.msra.mxu1 %v9141_v49  ;;  %7790 = vmatpush3.msra.mxu0 %v6872_v53  ;;  %v2159_v53 = vld [vmem:[#allocation4 + $0x38] sm:$0xff] }
 0x70d   :  { %7778 = vmatmul.mubr.msk.f32.gmra.mxu1 %vm197_vm2, %v9099_v42  ;;  %7809 = vmatprep.subr.mxu1 %v8418_v8 }
 0x70e   :  { %7780 = vmatprep.mubr.msk.f32.mxu1 %vm197_vm2, %v9103_v43  ;;  %7810 = vmatpush3.msra.mxu1 %v9153_v51 }
 0x70f   :  { %7814 = vmatprep.subr.mxu1 %v8418_v8  ;;  %7825 = vmatprep.subr.mxu0 %v8418_v8 }
 0x7b3   :  { %v2229_v23 = vpop.f32.mrf.mxu1  ;;  %v2299_v54 = vpop.f32.mrf.mxu0 }
 0x7b4   :  { %v2230_v25 = vadd.f32 %v8411_v24, %v2229_v23  ;;  %v2300_v60 = vadd.f32 %v8412_v59, %v2299_v54  ;;  %v9254_v59 = vld [vmem:[%s10327_s6 + $0x50] sm:$0xff] }
 0x7b5   :  { %v7720_v55 = vpop.f32.mrf.mxu1  ;;  %v7731_v56 = vpop.f32.mrf.mxu0 }
 0x7b6   :  { %v2373_v57 = vadd.f32 %v2230_v25, %v2157_v26  ;;  %v2380_v63 = vadd.f32 %v2300_v60, %v2158_v62 }
 0x7b8   :  { %v6847_v58 = vmul.f32 -1.442695, %v2373_v57  ;;  %v6848_v9 = vmul.f32 -1.442695, %v2380_v63 }
 0x7ba   :  { %8301 = vpow2.f32 %v6847_v58  ;;  %v9215_v58 = vld [vmem:[%s10327_s6 + $0x38] sm:$0xff] }
 0x7bb   :  { %8303 = vpow2.f32 %v6848_v9 }
 0x7bc   :  { %v2369_v0 = vpop.f32.mrf.mxu1  ;;  %v7753_v1 = vpop.f32.mrf.mxu0 }
 0x7bd   :  { %v2510_v2 = vadd.f32 %v7753_v1, %v9170_v61  ;;  %v2370_v44 = vadd.f32 %v8413_v41, %v2369_v0  ;;  %v6877_v1 = vld [vmem:[%s10328_s7 + $0x2] ss:$0 sm:$0xff] }
 0x7be   :  { %v7742_v3 = vpop.f32.mrf.mxu1  ;;  %v2504_v4 = vpop.f32.mrf.mxu0 }
 0x7bf   :  { %2544 = vst.msk [vmem:[#allocation2 + $0x8] sm:$0xff] %vm197_vm2, %v2510_v2  ;;  %v2505_v7 = vadd.f32 %v9170_v61, %v2504_v4  ;;  %v9316_v2 = vld [vmem:[%s10329_s8] ss:$0 sm:$0xff] }
 0x7c0   :  { %v7756_v10 = vpop.f32.mrf.mxu0 }
 0x7c1   :  { %2543 = vst.msk [vmem:[#allocation2] sm:$0xff] %vm197_vm2, %v2505_v7  ;;  %v2520_v12 = vadd.f32 %v7756_v10, %v9170_v61 }
 0x7c2   :  { %v2514_v14 = vpop.f32.mrf.mxu0 }
 0x7c3   :  { %2546 = vst.msk [vmem:[#allocation2 + $0x18] sm:$0xff] %vm197_vm2, %v2520_v12  ;;  %v2515_v15 = vadd.f32 %v9170_v61, %v2514_v14 }
 0x7c4   :  { %v7759_v52 = vpop.f32.mrf.mxu0 }
 0x7c5   :  { %2545 = vst.msk [vmem:[#allocation2 + $0x10] sm:$0xff] %vm197_vm2, %v2515_v15  ;;  %v2530_v18 = vadd.f32 %v7759_v52, %v9170_v61  ;;  %v7773_v27 = vpop.f32.mrf.mxu1 }
 0x7c6   :  { %v2636_v28 = vadd.f32 %v7773_v27, %v9182_v17  ;;  %v2524_v29 = vpop.f32.mrf.mxu0 }
 0x7c7   :  { %v8302_v5 = vpop.eup %8301  ;;  %2548 = vst.msk [vmem:[#allocation2 + $0x28] sm:$0xff] %vm197_vm2, %v2530_v18  ;;  %v2525_v6 = vadd.f32 %v9170_v61, %v2524_v29  ;;  %v2630_v11 = vpop.f32.mrf.mxu1 }
 0x7c8   :  { %v2377_v13 = vadd.f32 1.0, %v8302_v5  ;;  %2670 = vst.msk [vmem:[#allocation3 + $0x8] sm:$0xff] %vm197_vm2, %v2636_v28  ;;  %v2631_v16 = vadd.f32 %v9182_v17, %v2630_v11  ;;  %v8304_v37 = vpop.eup %8303  ;;  %v2822_v14 = vld [vmem:[#allocation2] sm:$0xff] }
 0x7c9   :  { %2547 = vst.msk [vmem:[#allocation2 + $0x20] sm:$0xff] %vm197_vm2, %v2525_v6  ;;  %v7776_v20 = vpop.f32.mrf.mxu1  ;;  %v2384_v38 = vadd.f32 1.0, %v8304_v37  ;;  %v9330_v5 = vld [vmem:[%s10329_s8 + $0x1] ss:$0 sm:$0xff] }
 0x7ca   :  { %8305 = vrcp.f32 %v2377_v13  ;;  %2669 = vst.msk [vmem:[#allocation3] sm:$0xff] %vm197_vm2, %v2631_v16  ;;  %v2646_v46 = vadd.f32 %v7776_v20, %v9182_v17 }
 0x7cb   :  { %v2640_v31 = vpop.f32.mrf.mxu1  ;;  %8307 = vrcp.f32 %v2384_v38 }
 0x7cc   :  { %2672 = vst.msk [vmem:[#allocation3 + $0x18] sm:$0xff] %vm197_vm2, %v2646_v46  ;;  %v2641_v32 = vadd.f32 %v9182_v17, %v2640_v31 }
 0x7cd   :  { %v7779_v33 = vpop.f32.mrf.mxu1 }
 0x7ce   :  { %2671 = vst.msk [vmem:[#allocation3 + $0x10] sm:$0xff] %vm197_vm2, %v2641_v32  ;;  %v2656_v21 = vadd.f32 %v7779_v33, %v9182_v17 }
 0x7cf   :  { %v2650_v34 = vpop.f32.mrf.mxu1 }
 0x7d0   :  { %2674 = vst.msk [vmem:[#allocation3 + $0x28] sm:$0xff] %vm197_vm2, %v2656_v21  ;;  %v2651_v35 = vadd.f32 %v9182_v17, %v2650_v34 }
 0x7d1   :  { %v2823_v46 = vld [vmem:[#allocation3] sm:$0xff] }
 0x7d2   :  { %2673 = vst.msk [vmem:[#allocation3 + $0x20] sm:$0xff] %vm197_vm2, %v2651_v35 }
 0x7d7   :  { %v8306_v45 = vpop.eup %8305 }
 0x7d8   :  { %v2387_v50 = vmul.f32 %v8306_v45, %v2370_v44  ;;  %v8308_v54 = vpop.eup %8307 }
 0x7d9   :  { %v2390_v24 = vsub.f32 1.0, %v8308_v54  ;;  %v2392_v26 = vmul.f32 %v8308_v54, %v9029_v19  ;;  %v9223_v19 = vld [vmem:[%s10327_s6 + $0x30] sm:$0xff]  ;;  %v9342_v54 = vld [vmem:[%s10329_s8 + $0x2] ss:$0 sm:$0xff] }
 0x7da   :  { %v2388_v23 = vadd.f32 %v2387_v50, %v2159_v53 }
 0x7dc   :  { %8309 = vtanh.f32 %v2388_v23 }
 0x7e9   :  { %v8310_v25 = vpop.eup %8309 }
 0x7ea   :  { %v2391_v55 = vmul.f32 %v8310_v25, %v2390_v24 }
 0x7ec   :  { %v2393_v56 = vadd.f32 %v2392_v26, %v2391_v55 }
 0x7ee   :  { %2394 = vst.msk [vmem:[#allocation5 + $0x38] sm:$0xff] %vm197_vm2, %v2393_v56 }
 0x7f5   :  { %v2402_v57 = vld [vmem:[#allocation5 + $0x38] sm:$0xff] }
 0x7f6   :  { %7761 = vmatmul.mubr.msk.f32.gmra.mxu0 %vm197_vm2, %v2402_v57  ;;  %7781 = vmatmul.mubr.msk.f32.gmra.mxu1 %vm197_vm2, %v2402_v57 }
 0x7f7   :  { %7791 = vmatprep.mubr.msk.f32.mxu0 %vm197_vm2, %v9044_v30  ;;  %7811 = vmatprep.mubr.msk.f32.mxu1 %vm8419_vm1, %v8418_v8  ;;  %v9228_v30 = vld [vmem:[%s10327_s6 + $0x58] sm:$0xff] }
 0x7fa   :  { %7792 = vmatmul.mubr.msk.f32.vlgmr.msra.gmra.mxu0 %vm197_vm2, %v9070_v36  ;;  %7812 = vmatmul.mubr.f32.vlgmr.msra.gmra.mxu1 %v8418_v8  ;;  %v9237_v36 = vld [vmem:[%s10327_s6 + $0x28] sm:$0xff] }
 0x7fb   :  { %7815 = vmatpush3.msra.mxu1 %v9215_v58  ;;  %7794 = vmatprep.mubr.msk.f32.mxu0 %vm197_vm2, %v9076_v22  ;;  %v9249_v22 = vld [vmem:[%s10327_s6 + $0x20] sm:$0xff] }
 0x7fc   :  { %7816 = vmatprep.subr.mxu1 %v8418_v8  ;;  %7822 = vmatprep.mubr.msk.f32.mxu1 %vm8419_vm1, %v8418_v8 }
 0x7fd   :  { %7817 = vmatpush3.msra.mxu1 %v9223_v19  ;;  %7826 = vmatpush3.msra.mxu0 %v9228_v30 }
 0x7fe   :  { %7818 = vmatprep.subr.mxu1 %v8418_v8  ;;  %7795 = vmatmul.mubr.msk.f32.gmra.mxu0 %vm197_vm2, %v9088_v39  ;;  %v9266_v39 = vld [vmem:[%s10327_s6 + $0x48] sm:$0xff] }
 0x7ff   :  { %7819 = vmatpush3.msra.mxu1 %v9237_v36  ;;  %7797 = vmatprep.mubr.msk.f32.mxu0 %vm197_vm2, %v9092_v40  ;;  %v9278_v40 = vld [vmem:[%s10327_s6 + $0x40] sm:$0xff] }
 0x800   :  { %7820 = vmatprep.subr.mxu1 %v8418_v8  ;;  %7827 = vmatprep.subr.mxu0 %v8418_v8 }
 0x801   :  { %7821 = vmatpush3.msra.mxu1 %v9249_v22  ;;  %7828 = vmatpush3.msra.mxu0 %v9254_v59 }
 0x802   :  { %7823 = vmatmul.mubr.f32.vlgmr.msra.gmra.mxu1 %v8418_v8  ;;  %7798 = vmatmul.mubr.msk.f32.gmra.mxu0 %vm197_vm2, %v9099_v42 }
 0x803   :  { %7800 = vmatprep.mubr.msk.f32.mxu0 %vm197_vm2, %v9103_v43  ;;  %7829 = vmatprep.subr.mxu0 %v8418_v8 }
 0x804   :  { %7830 = vmatpush3.msra.mxu0 %v9266_v39  ;;  %7836 = vmatprep.subr.mxu1 %v8418_v8 }
 0x805   :  { %7831 = vmatprep.subr.mxu0 %v8418_v8  ;;  %7837 = vmatpush3.msra.mxu1 %v9129_v47 }
 0x806   :  { %7801 = vmatmul.mubr.msk.f32.gmra.mxu0 %vm197_vm2, %v2402_v57  ;;  %7838 = vmatprep.subr.mxu1 %v8418_v8 }
 0x807   :  { %7832 = vmatpush3.msra.mxu0 %v9278_v40  ;;  %7833 = vmatprep.mubr.msk.f32.mxu0 %vm8419_vm1, %v8418_v8 }
 0x808   :  { %7847 = vmatprep.subr.mxu0 %v8418_v8  ;;  %7839 = vmatpush3.msra.mxu1 %v9134_v48 }
 0x809   :  { %7840 = vmatprep.subr.mxu1 %v8418_v8  ;;  %7844 = vmatprep.mubr.msk.f32.mxu1 %vm8419_vm1, %v8418_v8 }
 0x80a   :  { %7834 = vmatmul.mubr.f32.vlgmr.msra.gmra.mxu0 %v8418_v8  ;;  %7841 = vmatpush3.msra.mxu1 %v9141_v49 }
 0x80b   :  { %7848 = vmatpush3.msra.mxu0 %v9215_v58  ;;  %7842 = vmatprep.subr.mxu1 %v8418_v8 }
 0x80c   :  { %7849 = vmatprep.subr.mxu0 %v8418_v8  ;;  %7843 = vmatpush3.msra.mxu1 %v9153_v51 }
 0x80d   :  { %7850 = vmatpush3.msra.mxu0 %v9223_v19  ;;  %7855 = vmatprep.mubr.msk.f32.mxu0 %vm8419_vm1, %v8418_v8 }
 0x80e   :  { %7851 = vmatprep.subr.mxu0 %v8418_v8  ;;  %7858 = vmatprep.subr.mxu1 %v8418_v8 }
 0x80f   :  { %7852 = vmatpush3.msra.mxu0 %v9237_v36 }
 0x810   :  { %7853 = vmatprep.subr.mxu0 %v8418_v8 }
 0x811   :  { %7854 = vmatpush3.msra.mxu0 %v9249_v22 }
 0x812   :  { %7869 = vmatprep.subr.mxu0 %v8418_v8 }
 0x8b6   :  { %v7762_v42 = vpop.f32.mrf.mxu0  ;;  %v7782_v43 = vpop.f32.mrf.mxu1 }
 0x8b7   :  { %v2540_v60 = vadd.f32 %v7762_v42, %v9170_v61  ;;  %v2666_v62 = vadd.f32 %v7782_v43, %v9182_v17 }
 0x8b8   :  { %v2534_v63 = vpop.f32.mrf.mxu0  ;;  %v2660_v0 = vpop.f32.mrf.mxu1 }
 0x8b9   :  { %2550 = vst.msk [vmem:[#allocation2 + $0x38] sm:$0xff] %vm197_vm2, %v2540_v60  ;;  %2676 = vst.msk [vmem:[#allocation3 + $0x38] sm:$0xff] %vm197_vm2, %v2666_v62  ;;  %v2535_v3 = vadd.f32 %v9170_v61, %v2534_v63  ;;  %v2661_v4 = vadd.f32 %v9182_v17, %v2660_v0 }
 0x8ba   :  { %v7793_v7 = vpop.f32.mrf.mxu0  ;;  %v2897_v9 = vpop.f32.mrf.mxu1 }
 0x8bb   :  { %2549 = vst.msk [vmem:[#allocation2 + $0x30] sm:$0xff] %vm197_vm2, %v2535_v3  ;;  %2675 = vst.msk [vmem:[#allocation3 + $0x30] sm:$0xff] %vm197_vm2, %v2661_v4  ;;  %v2762_v10 = vadd.f32 %v7793_v7, %v6877_v1  ;;  %v2898_v12 = vadd.f32 %v9316_v2, %v2897_v9  ;;  %v3074_v7 = vld [vmem:[#allocation2 + $0x8] sm:$0xff] }
 0x8bc   :  { %v2756_v15 = vpop.f32.mrf.mxu0  ;;  %v7813_v52 = vpop.f32.mrf.mxu1 }
 0x8bd   :  { %2796 = vst.msk [vmem:[#allocation4 + $0x8] sm:$0xff] %vm197_vm2, %v2762_v10  ;;  %v3053_v18 = vadd.f32 %v2898_v12, %v2822_v14  ;;  %v2757_v27 = vadd.f32 %v6877_v1, %v2756_v15  ;;  %v3075_v52 = vld [vmem:[#allocation3 + $0x8] sm:$0xff] }
 0x8be   :  { %v7796_v28 = vpop.f32.mrf.mxu0 }
 0x8bf   :  { %v6899_v61 = vmul.f32 -1.442695, %v3053_v18  ;;  %2795 = vst.msk [vmem:[#allocation4] sm:$0xff] %vm197_vm2, %v2757_v27  ;;  %v2772_v17 = vadd.f32 %v7796_v28, %v6877_v1 }
 0x8c0   :  { %v2766_v29 = vpop.f32.mrf.mxu0 }
 0x8c1   :  { %8311 = vpow2.f32 %v6899_v61  ;;  %2798 = vst.msk [vmem:[#allocation4 + $0x18] sm:$0xff] %vm197_vm2, %v2772_v17  ;;  %v2767_v6 = vadd.f32 %v6877_v1, %v2766_v29 }
 0x8c2   :  { %v2973_v11 = vpop.f32.mrf.mxu1  ;;  %v7799_v13 = vpop.f32.mrf.mxu0 }
 0x8c3   :  { %2797 = vst.msk [vmem:[#allocation4 + $0x10] sm:$0xff] %vm197_vm2, %v2767_v6  ;;  %v2974_v16 = vadd.f32 %v9330_v5, %v2973_v11  ;;  %v2782_v20 = vadd.f32 %v7799_v13, %v6877_v1 }
 0x8c4   :  { %v2776_v31 = vpop.f32.mrf.mxu0  ;;  %v7824_v32 = vpop.f32.mrf.mxu1 }
 0x8c5   :  { %v3060_v33 = vadd.f32 %v2974_v16, %v2823_v46  ;;  %2800 = vst.msk [vmem:[#allocation4 + $0x28] sm:$0xff] %vm197_vm2, %v2782_v20  ;;  %v2777_v21 = vadd.f32 %v6877_v1, %v2776_v31  ;;  %v3076_v46 = vld [vmem:[#allocation4 + $0x8] sm:$0xff] }
 0x8c6   :  { %v7802_v34 = vpop.f32.mrf.mxu0  ;;  %v2824_v56 = vld [vmem:[#allocation4] sm:$0xff] }
 0x8c7   :  { %v6900_v35 = vmul.f32 -1.442695, %v3060_v33  ;;  %2799 = vst.msk [vmem:[#allocation4 + $0x20] sm:$0xff] %vm197_vm2, %v2777_v21  ;;  %v2792_v37 = vadd.f32 %v7802_v34, %v6877_v1 }
 0x8c8   :  { %v2786_v38 = vpop.f32.mrf.mxu0 }
 0x8c9   :  { %2802 = vst.msk [vmem:[#allocation4 + $0x38] sm:$0xff] %vm197_vm2, %v2792_v37  ;;  %v2787_v41 = vadd.f32 %v6877_v1, %v2786_v38  ;;  %8313 = vpow2.f32 %v6900_v35 }
 0x8ca   :  { %v3049_v44 = vpop.f32.mrf.mxu0 }
 0x8cb   :  { %2801 = vst.msk [vmem:[#allocation4 + $0x30] sm:$0xff] %vm197_vm2, %v2787_v41  ;;  %v3050_v25 = vadd.f32 %v9342_v54, %v3049_v44 }
 0x8cc   :  { %v7835_v45 = vpop.f32.mrf.mxu0 }
 0x8cd   :  { %v3311_v45 = vld [vmem:[#allocation2 + $0x10] sm:$0xff] }
 0x8ce   :  { %v8312_v50 = vpop.eup %8311 }
 0x8cf   :  { %v3057_v53 = vadd.f32 1.0, %v8312_v50 }
 0x8d1   :  { %8315 = vrcp.f32 %v3057_v53 }
 0x8d6   :  { %v8314_v23 = vpop.eup %8313 }
 0x8d7   :  { %v3064_v24 = vadd.f32 1.0, %v8314_v23 }
 0x8d9   :  { %8317 = vrcp.f32 %v3064_v24 }
 0x8de   :  { %v8316_v26 = vpop.eup %8315 }
 0x8df   :  { %v3067_v55 = vmul.f32 %v8316_v26, %v3050_v25  ;;  %v3312_v26 = vld [vmem:[#allocation3 + $0x10] sm:$0xff] }
 0x8e1   :  { %v3068_v57 = vadd.f32 %v3067_v55, %v2824_v56 }
 0x8e3   :  { %8319 = vtanh.f32 %v3068_v57 }
 0x8e6   :  { %v8318_v42 = vpop.eup %8317 }
 0x8e7   :  { %v3070_v43 = vsub.f32 1.0, %v8318_v42  ;;  %v3072_v63 = vmul.f32 0.0, %v8318_v42 }
 0x8f0   :  { %v8320_v60 = vpop.eup %8319 }
 0x8f1   :  { %v3071_v62 = vmul.f32 %v8320_v60, %v3070_v43 }
 0x8f3   :  { %v9345_v0 = vadd.f32 %v3072_v63, %v3071_v62 }
 0x8f5   :  { %7845 = vmatmul.mubr.msk.f32.vlgmr.msra.gmra.mxu1 %vm197_vm2, %v9345_v0  ;;  %7856 = vmatmul.mubr.msk.f32.vlgmr.msra.gmra.mxu0 %vm197_vm2, %v9345_v0 }
 0x8f6   :  { %7859 = vmatpush3.msra.mxu1 %v9228_v30  ;;  %7866 = vmatprep.mubr.msk.f32.mxu1 %vm8419_vm1, %v8418_v8 }
 0x8f7   :  { %7860 = vmatprep.subr.mxu1 %v8418_v8  ;;  %7870 = vmatpush3.msra.mxu0 %v9129_v47 }
 0x8f8   :  { %7861 = vmatpush3.msra.mxu1 %v9254_v59  ;;  %7871 = vmatprep.subr.mxu0 %v8418_v8 }
 0x8f9   :  { %7862 = vmatprep.subr.mxu1 %v8418_v8  ;;  %7872 = vmatpush3.msra.mxu0 %v9134_v48 }
 0x8fa   :  { %7863 = vmatpush3.msra.mxu1 %v9266_v39  ;;  %7873 = vmatprep.subr.mxu0 %v8418_v8 }
 0x8fb   :  { %7864 = vmatprep.subr.mxu1 %v8418_v8  ;;  %7874 = vmatpush3.msra.mxu0 %v9141_v49 }
 0x8fc   :  { %7865 = vmatpush3.msra.mxu1 %v9278_v40  ;;  %7875 = vmatprep.subr.mxu0 %v8418_v8 }
 0x8fd   :  { %7867 = vmatmul.mubr.msk.f32.vlgmr.msra.gmra.mxu1 %vm197_vm2, %v9345_v0  ;;  %7880 = vmatprep.subr.mxu1 %v8418_v8 }
 0x8fe   :  { %7881 = vmatpush3.msra.mxu1 %v9215_v58  ;;  %7876 = vmatpush3.msra.mxu0 %v9153_v51 }
 0x8ff   :  { %7882 = vmatprep.subr.mxu1 %v8418_v8  ;;  %7877 = vmatprep.mubr.msk.f32.mxu0 %vm8419_vm1, %v8418_v8 }
 0x900   :  { %7883 = vmatpush3.msra.mxu1 %v9223_v19  ;;  %7888 = vmatprep.mubr.msk.f32.mxu1 %vm8419_vm1, %v8418_v8 }
 0x901   :  { %7884 = vmatprep.subr.mxu1 %v8418_v8  ;;  %7891 = vmatprep.subr.mxu0 %v8418_v8 }
 0x902   :  { %7885 = vmatpush3.msra.mxu1 %v9237_v36 }
 0x903   :  { %7886 = vmatprep.subr.mxu1 %v8418_v8 }
 0x904   :  { %7887 = vmatpush3.msra.mxu1 %v9249_v22 }
 0x905   :  { %7902 = vmatprep.subr.mxu1 %v8418_v8 }
 0x9b5   :  { %v3146_v1 = vpop.f32.mrf.mxu1  ;;  %v3216_v3 = vpop.f32.mrf.mxu0 }
 0x9b6   :  { %v3147_v4 = vadd.f32 %v9316_v2, %v3146_v1  ;;  %v3217_v15 = vadd.f32 %v9330_v5, %v3216_v3 }
 0x9b7   :  { %v7846_v9 = vpop.f32.mrf.mxu1  ;;  %v7857_v10 = vpop.f32.mrf.mxu0 }
 0x9b8   :  { %v3290_v12 = vadd.f32 %v3147_v4, %v3074_v7  ;;  %v3297_v27 = vadd.f32 %v3217_v15, %v3075_v52  ;;  %v3313_v4 = vld [vmem:[#allocation4 + $0x10] sm:$0xff] }
 0x9ba   :  { %v6904_v14 = vmul.f32 -1.442695, %v3290_v12  ;;  %v6905_v61 = vmul.f32 -1.442695, %v3297_v27 }
 0x9bc   :  { %8321 = vpow2.f32 %v6904_v14 }
 0x9bd   :  { %v3286_v18 = vpop.f32.mrf.mxu1  ;;  %8323 = vpow2.f32 %v6905_v61  ;;  %v3548_v61 = vld [vmem:[#allocation2 + $0x18] sm:$0xff] }
 0x9be   :  { %v3287_v13 = vadd.f32 %v9342_v54, %v3286_v18 }
 0x9bf   :  { %v7868_v28 = vpop.f32.mrf.mxu1 }
 0x9c9   :  { %v8322_v17 = vpop.eup %8321 }
 0x9ca   :  { %v3294_v29 = vadd.f32 1.0, %v8322_v17  ;;  %v8324_v6 = vpop.eup %8323 }
 0x9cb   :  { %v3301_v11 = vadd.f32 1.0, %v8324_v6 }
 0x9cc   :  { %8325 = vrcp.f32 %v3294_v29 }
 0x9cd   :  { %8327 = vrcp.f32 %v3301_v11 }
 0x9d9   :  { %v8326_v16 = vpop.eup %8325 }
 0x9da   :  { %v3304_v20 = vmul.f32 %v8326_v16, %v3287_v13  ;;  %v8328_v32 = vpop.eup %8327  ;;  %v3549_v16 = vld [vmem:[#allocation3 + $0x18] sm:$0xff] }
 0x9db   :  { %v3307_v33 = vsub.f32 1.0, %v8328_v32  ;;  %v3309_v35 = vmul.f32 %v8328_v32, %v9345_v0 }
 0x9dc   :  { %v3305_v31 = vadd.f32 %v3304_v20, %v3076_v46 }
 0x9de   :  { %8329 = vtanh.f32 %v3305_v31 }
 0x9eb   :  { %v8330_v21 = vpop.eup %8329 }
 0x9ec   :  { %v3308_v34 = vmul.f32 %v8330_v21, %v3307_v33 }
 0x9ee   :  { %v9387_v37 = vadd.f32 %v3309_v35, %v3308_v34 }
 0x9f0   :  { %7878 = vmatmul.mubr.msk.f32.vlgmr.msra.gmra.mxu0 %vm197_vm2, %v9387_v37  ;;  %7889 = vmatmul.mubr.msk.f32.vlgmr.msra.gmra.mxu1 %vm197_vm2, %v9387_v37 }
 0x9f1   :  { %7892 = vmatpush3.msra.mxu0 %v9228_v30  ;;  %7899 = vmatprep.mubr.msk.f32.mxu0 %vm8419_vm1, %v8418_v8 }
 0x9f2   :  { %7893 = vmatprep.subr.mxu0 %v8418_v8  ;;  %7903 = vmatpush3.msra.mxu1 %v9129_v47 }
 0x9f3   :  { %7894 = vmatpush3.msra.mxu0 %v9254_v59  ;;  %7904 = vmatprep.subr.mxu1 %v8418_v8 }
 0x9f4   :  { %7895 = vmatprep.subr.mxu0 %v8418_v8  ;;  %7905 = vmatpush3.msra.mxu1 %v9134_v48 }
 0x9f5   :  { %7896 = vmatpush3.msra.mxu0 %v9266_v39  ;;  %7906 = vmatprep.subr.mxu1 %v8418_v8 }
 0x9f6   :  { %7897 = vmatprep.subr.mxu0 %v8418_v8  ;;  %7907 = vmatpush3.msra.mxu1 %v9141_v49 }
 0x9f7   :  { %7898 = vmatpush3.msra.mxu0 %v9278_v40  ;;  %7908 = vmatprep.subr.mxu1 %v8418_v8 }
 0x9f8   :  { %7900 = vmatmul.mubr.msk.f32.vlgmr.msra.gmra.mxu0 %vm197_vm2, %v9387_v37  ;;  %7913 = vmatprep.subr.mxu0 %v8418_v8 }
 0x9f9   :  { %7914 = vmatpush3.msra.mxu0 %v9215_v58  ;;  %7909 = vmatpush3.msra.mxu1 %v9153_v51 }
 0x9fa   :  { %7915 = vmatprep.subr.mxu0 %v8418_v8  ;;  %7910 = vmatprep.mubr.msk.f32.mxu1 %vm8419_vm1, %v8418_v8 }
 0x9fb   :  { %7916 = vmatpush3.msra.mxu0 %v9223_v19  ;;  %7921 = vmatprep.mubr.msk.f32.mxu0 %vm8419_vm1, %v8418_v8 }
 0x9fc   :  { %7917 = vmatprep.subr.mxu0 %v8418_v8  ;;  %7924 = vmatprep.subr.mxu1 %v8418_v8 }
 0x9fd   :  { %7918 = vmatpush3.msra.mxu0 %v9237_v36 }
 0x9fe   :  { %7919 = vmatprep.subr.mxu0 %v8418_v8 }
 0x9ff   :  { %7920 = vmatpush3.msra.mxu0 %v9249_v22 }
 0xa00   :  { %7935 = vmatprep.subr.mxu0 %v8418_v8 }
 0xab0   :  { %v3383_v38 = vpop.f32.mrf.mxu0  ;;  %v3453_v41 = vpop.f32.mrf.mxu1 }
 0xab1   :  { %v3384_v44 = vadd.f32 %v9316_v2, %v3383_v38  ;;  %v3454_v25 = vadd.f32 %v9330_v5, %v3453_v41 }
 0xab2   :  { %v7879_v50 = vpop.f32.mrf.mxu0  ;;  %v7890_v53 = vpop.f32.mrf.mxu1 }
 0xab3   :  { %v3527_v23 = vadd.f32 %v3384_v44, %v3311_v45  ;;  %v3534_v56 = vadd.f32 %v3454_v25, %v3312_v26  ;;  %v3550_v44 = vld [vmem:[#allocation4 + $0x18] sm:$0xff] }
 0xab5   :  { %v6909_v24 = vmul.f32 -1.442695, %v3527_v23  ;;  %v6910_v42 = vmul.f32 -1.442695, %v3534_v56 }
 0xab7   :  { %8331 = vpow2.f32 %v6909_v24 }
 0xab8   :  { %v3523_v55 = vpop.f32.mrf.mxu0  ;;  %8333 = vpow2.f32 %v6910_v42  ;;  %v3785_v42 = vld [vmem:[#allocation2 + $0x20] sm:$0xff] }
 0xab9   :  { %v3524_v0 = vadd.f32 %v9342_v54, %v3523_v55 }
 0xaba   :  { %v7901_v57 = vpop.f32.mrf.mxu0 }
 0xac4   :  { %v8332_v43 = vpop.eup %8331 }
 0xac5   :  { %v3531_v60 = vadd.f32 1.0, %v8332_v43  ;;  %v8334_v62 = vpop.eup %8333 }
 0xac6   :  { %v3538_v63 = vadd.f32 1.0, %v8334_v62 }
 0xac7   :  { %8335 = vrcp.f32 %v3531_v60 }
 0xac8   :  { %8337 = vrcp.f32 %v3538_v63 }
 0xad4   :  { %v8336_v1 = vpop.eup %8335 }
 0xad5   :  { %v3541_v3 = vmul.f32 %v8336_v1, %v3524_v0  ;;  %v8338_v9 = vpop.eup %8337  ;;  %v3786_v1 = vld [vmem:[#allocation3 + $0x20] sm:$0xff] }
 0xad6   :  { %v3544_v10 = vsub.f32 1.0, %v8338_v9  ;;  %v3546_v15 = vmul.f32 %v8338_v9, %v9387_v37 }
 0xad7   :  { %v3542_v7 = vadd.f32 %v3541_v3, %v3313_v4 }
 0xad9   :  { %8339 = vtanh.f32 %v3542_v7 }
 0xae6   :  { %v8340_v12 = vpop.eup %8339 }
 0xae7   :  { %v3545_v14 = vmul.f32 %v8340_v12, %v3544_v10 }
 0xae9   :  { %v9429_v52 = vadd.f32 %v3546_v15, %v3545_v14 }
 0xaeb   :  { %7911 = vmatmul.mubr.msk.f32.vlgmr.msra.gmra.mxu1 %vm197_vm2, %v9429_v52  ;;  %7922 = vmatmul.mubr.msk.f32.vlgmr.msra.gmra.mxu0 %vm197_vm2, %v9429_v52 }
 0xaec   :  { %7925 = vmatpush3.msra.mxu1 %v9228_v30  ;;  %7932 = vmatprep.mubr.msk.f32.mxu1 %vm8419_vm1, %v8418_v8 }
 0xaed   :  { %7926 = vmatprep.subr.mxu1 %v8418_v8  ;;  %7936 = vmatpush3.msra.mxu0 %v9129_v47 }
 0xaee   :  { %7927 = vmatpush3.msra.mxu1 %v9254_v59  ;;  %7937 = vmatprep.subr.mxu0 %v8418_v8 }
 0xaef   :  { %7928 = vmatprep.subr.mxu1 %v8418_v8  ;;  %7938 = vmatpush3.msra.mxu0 %v9134_v48 }
 0xaf0   :  { %7929 = vmatpush3.msra.mxu1 %v9266_v39  ;;  %7939 = vmatprep.subr.mxu0 %v8418_v8 }
 0xaf1   :  { %7930 = vmatprep.subr.mxu1 %v8418_v8  ;;  %7940 = vmatpush3.msra.mxu0 %v9141_v49 }
 0xaf2   :  { %7931 = vmatpush3.msra.mxu1 %v9278_v40  ;;  %7941 = vmatprep.subr.mxu0 %v8418_v8 }
 0xaf3   :  { %7933 = vmatmul.mubr.msk.f32.vlgmr.msra.gmra.mxu1 %vm197_vm2, %v9429_v52  ;;  %7946 = vmatprep.subr.mxu1 %v8418_v8 }
 0xaf4   :  { %7947 = vmatpush3.msra.mxu1 %v9215_v58  ;;  %7942 = vmatpush3.msra.mxu0 %v9153_v51 }
 0xaf5   :  { %7948 = vmatprep.subr.mxu1 %v8418_v8  ;;  %7943 = vmatprep.mubr.msk.f32.mxu0 %vm8419_vm1, %v8418_v8 }
 0xaf6   :  { %7949 = vmatpush3.msra.mxu1 %v9223_v19  ;;  %7954 = vmatprep.mubr.msk.f32.mxu1 %vm8419_vm1, %v8418_v8 }
 0xaf7   :  { %7950 = vmatprep.subr.mxu1 %v8418_v8  ;;  %7957 = vmatprep.subr.mxu0 %v8418_v8 }
 0xaf8   :  { %7951 = vmatpush3.msra.mxu1 %v9237_v36 }
 0xaf9   :  { %7952 = vmatprep.subr.mxu1 %v8418_v8 }
 0xafa   :  { %7953 = vmatpush3.msra.mxu1 %v9249_v22 }
 0xafb   :  { %7968 = vmatprep.subr.mxu1 %v8418_v8 }
 0xbab   :  { %v3620_v18 = vpop.f32.mrf.mxu1  ;;  %v3690_v27 = vpop.f32.mrf.mxu0 }
 0xbac   :  { %v3621_v28 = vadd.f32 %v9316_v2, %v3620_v18  ;;  %v3691_v13 = vadd.f32 %v9330_v5, %v3690_v27 }
 0xbad   :  { %v7912_v17 = vpop.f32.mrf.mxu1  ;;  %v7923_v29 = vpop.f32.mrf.mxu0 }
 0xbae   :  { %v3764_v6 = vadd.f32 %v3621_v28, %v3548_v61  ;;  %v3771_v46 = vadd.f32 %v3691_v13, %v3549_v16  ;;  %v3787_v28 = vld [vmem:[#allocation4 + $0x20] sm:$0xff] }
 0xbb0   :  { %v6914_v11 = vmul.f32 -1.442695, %v3764_v6  ;;  %v6915_v32 = vmul.f32 -1.442695, %v3771_v46 }
 0xbb2   :  { %8341 = vpow2.f32 %v6914_v11 }
 0xbb3   :  { %v3760_v20 = vpop.f32.mrf.mxu1  ;;  %8343 = vpow2.f32 %v6915_v32 }
 0xbb4   :  { %v3761_v37 = vadd.f32 %v9342_v54, %v3760_v20 }
 0xbb5   :  { %v7934_v31 = vpop.f32.mrf.mxu1 }
 0xbbf   :  { %v8342_v33 = vpop.eup %8341 }
 0xbc0   :  { %v3768_v21 = vadd.f32 1.0, %v8342_v33  ;;  %v8344_v34 = vpop.eup %8343 }
 0xbc1   :  { %v3775_v35 = vadd.f32 1.0, %v8344_v34 }
 0xbc2   :  { %8345 = vrcp.f32 %v3768_v21  ;;  %v4023_v21 = vld [vmem:[#allocation3 + $0x28] sm:$0xff] }
 0xbc3   :  { %8347 = vrcp.f32 %v3775_v35 }
 0xbcf   :  { %v8346_v38 = vpop.eup %8345 }
 0xbd0   :  { %v3778_v41 = vmul.f32 %v8346_v38, %v3761_v37  ;;  %v8348_v50 = vpop.eup %8347 }
 0xbd1   :  { %v3781_v53 = vsub.f32 1.0, %v8348_v50  ;;  %v3783_v25 = vmul.f32 %v8348_v50, %v9429_v52 }
 0xbd2   :  { %v3779_v45 = vadd.f32 %v3778_v41, %v3550_v44 }
 0xbd4   :  { %8349 = vtanh.f32 %v3779_v45 }
 0xbe1   :  { %v8350_v23 = vpop.eup %8349 }
 0xbe2   :  { %v3782_v24 = vmul.f32 %v8350_v23, %v3781_v53 }
 0xbe4   :  { %v9471_v26 = vadd.f32 %v3783_v25, %v3782_v24  ;;  %v4024_v25 = vld [vmem:[#allocation4 + $0x28] sm:$0xff] }
 0xbe6   :  { %7944 = vmatmul.mubr.msk.f32.vlgmr.msra.gmra.mxu0 %vm197_vm2, %v9471_v26  ;;  %7955 = vmatmul.mubr.msk.f32.vlgmr.msra.gmra.mxu1 %vm197_vm2, %v9471_v26 }
 0xbe7   :  { %7958 = vmatpush3.msra.mxu0 %v9228_v30  ;;  %7965 = vmatprep.mubr.msk.f32.mxu0 %vm8419_vm1, %v8418_v8 }
 0xbe8   :  { %7959 = vmatprep.subr.mxu0 %v8418_v8  ;;  %7969 = vmatpush3.msra.mxu1 %v9129_v47 }
 0xbe9   :  { %7960 = vmatpush3.msra.mxu0 %v9254_v59  ;;  %7970 = vmatprep.subr.mxu1 %v8418_v8 }
 0xbea   :  { %7961 = vmatprep.subr.mxu0 %v8418_v8  ;;  %7971 = vmatpush3.msra.mxu1 %v9134_v48 }
 0xbeb   :  { %7962 = vmatpush3.msra.mxu0 %v9266_v39  ;;  %7972 = vmatprep.subr.mxu1 %v8418_v8 }
 0xbec   :  { %7963 = vmatprep.subr.mxu0 %v8418_v8  ;;  %7973 = vmatpush3.msra.mxu1 %v9141_v49 }
 0xbed   :  { %7964 = vmatpush3.msra.mxu0 %v9278_v40  ;;  %7974 = vmatprep.subr.mxu1 %v8418_v8 }
 0xbee   :  { %7966 = vmatmul.mubr.msk.f32.vlgmr.msra.gmra.mxu0 %vm197_vm2, %v9471_v26  ;;  %7979 = vmatprep.subr.mxu0 %v8418_v8 }
 0xbef   :  { %7980 = vmatpush3.msra.mxu0 %v9215_v58  ;;  %7975 = vmatpush3.msra.mxu1 %v9153_v51 }
 0xbf0   :  { %7981 = vmatprep.subr.mxu0 %v8418_v8  ;;  %7976 = vmatprep.mubr.msk.f32.mxu1 %vm8419_vm1, %v8418_v8 }
 0xbf1   :  { %7982 = vmatpush3.msra.mxu0 %v9223_v19  ;;  %7987 = vmatprep.mubr.msk.f32.mxu0 %vm8419_vm1, %v8418_v8 }
 0xbf2   :  { %7983 = vmatprep.subr.mxu0 %v8418_v8  ;;  %7990 = vmatprep.subr.mxu1 %v8418_v8 }
 0xbf3   :  { %7984 = vmatpush3.msra.mxu0 %v9237_v36 }
 0xbf4   :  { %7985 = vmatprep.subr.mxu0 %v8418_v8 }
 0xbf5   :  { %7986 = vmatpush3.msra.mxu0 %v9249_v22 }
 0xbf6   :  { %8001 = vmatprep.subr.mxu0 %v8418_v8 }
 0xca6   :  { %v3857_v55 = vpop.f32.mrf.mxu0  ;;  %v3927_v56 = vpop.f32.mrf.mxu1 }
 0xca7   :  { %v3858_v57 = vadd.f32 %v9316_v2, %v3857_v55  ;;  %v3928_v0 = vadd.f32 %v9330_v5, %v3927_v56 }
 0xca8   :  { %v7945_v43 = vpop.f32.mrf.mxu0  ;;  %v7956_v60 = vpop.f32.mrf.mxu1 }
 0xca9   :  { %v4001_v62 = vadd.f32 %v3858_v57, %v3785_v42  ;;  %v4008_v4 = vadd.f32 %v3928_v0, %v3786_v1  ;;  %v8416_v0 = vld [vmem:[%s10327_s6 + $0x8] sm:$0xff]  ;;  %v8417_v1 = vld [vmem:[%s10327_s6] sm:$0xff] }
 0xcab   :  { %v6919_v63 = vmul.f32 -1.442695, %v4001_v62  ;;  %v6920_v9 = vmul.f32 -1.442695, %v4008_v4  ;;  %v8414_v62 = vld [vmem:[%s10327_s6 + $0x18] sm:$0xff] }
 0xcad   :  { %8351 = vpow2.f32 %v6919_v63  ;;  %v8415_v63 = vld [vmem:[%s10327_s6 + $0x10] sm:$0xff] }
 0xcae   :  { %v3997_v3 = vpop.f32.mrf.mxu0  ;;  %8353 = vpow2.f32 %v6920_v9 }
 0xcaf   :  { %v3998_v52 = vadd.f32 %v9342_v54, %v3997_v3 }
 0xcb0   :  { %v7967_v7 = vpop.f32.mrf.mxu0 }
 0xcba   :  { %v8352_v10 = vpop.eup %8351 }
 0xcbb   :  { %v4005_v12 = vadd.f32 1.0, %v8352_v10  ;;  %v8354_v14 = vpop.eup %8353 }
 0xcbc   :  { %v4012_v15 = vadd.f32 1.0, %v8354_v14 }
 0xcbd   :  { %8355 = vrcp.f32 %v4005_v12 }
 0xcbe   :  { %8357 = vrcp.f32 %v4012_v15  ;;  %v4260_v15 = vld [vmem:[#allocation3 + $0x30] sm:$0xff] }
 0xcca   :  { %v8356_v18 = vpop.eup %8355 }
 0xccb   :  { %v4015_v27 = vmul.f32 %v8356_v18, %v3998_v52  ;;  %v8358_v17 = vpop.eup %8357 }
 0xccc   :  { %v4018_v29 = vsub.f32 1.0, %v8358_v17  ;;  %v4020_v13 = vmul.f32 %v8358_v17, %v9471_v26 }
 0xccd   :  { %v4016_v61 = vadd.f32 %v4015_v27, %v3787_v28 }
 0xccf   :  { %8359 = vtanh.f32 %v4016_v61 }
 0xcdc   :  { %v8360_v6 = vpop.eup %8359 }
 0xcdd   :  { %v4019_v11 = vmul.f32 %v8360_v6, %v4018_v29 }
 0xcdf   :  { %v9513_v16 = vadd.f32 %v4020_v13, %v4019_v11  ;;  %v4261_v13 = vld [vmem:[#allocation4 + $0x30] sm:$0xff] }
 0xce1   :  { %7977 = vmatmul.mubr.msk.f32.vlgmr.msra.gmra.mxu1 %vm197_vm2, %v9513_v16  ;;  %7988 = vmatmul.mubr.msk.f32.vlgmr.msra.gmra.mxu0 %vm197_vm2, %v9513_v16 }
 0xce2   :  { %7991 = vmatpush3.msra.mxu1 %v9228_v30  ;;  %7998 = vmatprep.mubr.msk.f32.mxu1 %vm8419_vm1, %v8418_v8 }
 0xce3   :  { %7992 = vmatprep.subr.mxu1 %v8418_v8  ;;  %8002 = vmatpush3.msra.mxu0 %v9129_v47 }
 0xce4   :  { %7993 = vmatpush3.msra.mxu1 %v9254_v59  ;;  %8003 = vmatprep.subr.mxu0 %v8418_v8 }
 0xce5   :  { %7994 = vmatprep.subr.mxu1 %v8418_v8  ;;  %8004 = vmatpush3.msra.mxu0 %v9134_v48 }
 0xce6   :  { %7995 = vmatpush3.msra.mxu1 %v9266_v39  ;;  %8005 = vmatprep.subr.mxu0 %v8418_v8 }
 0xce7   :  { %7996 = vmatprep.subr.mxu1 %v8418_v8  ;;  %8006 = vmatpush3.msra.mxu0 %v9141_v49 }
 0xce8   :  { %7997 = vmatpush3.msra.mxu1 %v9278_v40  ;;  %8007 = vmatprep.subr.mxu0 %v8418_v8 }
 0xce9   :  { %7999 = vmatmul.mubr.msk.f32.vlgmr.msra.gmra.mxu1 %vm197_vm2, %v9513_v16  ;;  %8012 = vmatprep.subr.mxu1 %v8418_v8 }
 0xcea   :  { %8013 = vmatpush3.msra.mxu1 %v9215_v58  ;;  %8008 = vmatpush3.msra.mxu0 %v9153_v51  ;;  %v4022_v51 = vld [vmem:[#allocation2 + $0x28] sm:$0xff] }
 0xceb   :  { %8014 = vmatprep.subr.mxu1 %v8418_v8  ;;  %8009 = vmatprep.mubr.msk.f32.mxu0 %vm8419_vm1, %v8418_v8 }
 0xcec   :  { %8015 = vmatpush3.msra.mxu1 %v9223_v19  ;;  %8020 = vmatprep.mubr.msk.f32.mxu1 %vm8419_vm1, %v8418_v8 }
 0xced   :  { %8016 = vmatprep.subr.mxu1 %v8418_v8  ;;  %8023 = vmatprep.subr.mxu0 %v8418_v8 }
 0xcee   :  { %8017 = vmatpush3.msra.mxu1 %v9237_v36 }
 0xcef   :  { %8018 = vmatprep.subr.mxu1 %v8418_v8 }
 0xcf0   :  { %8019 = vmatpush3.msra.mxu1 %v9249_v22 }
 0xcf1   :  { %8034 = vmatprep.subr.mxu1 %v8418_v8 }
 0xda1   :  { %v4094_v47 = vpop.f32.mrf.mxu1  ;;  %v4164_v48 = vpop.f32.mrf.mxu0 }
 0xda2   :  { %v4095_v49 = vadd.f32 %v9316_v2, %v4094_v47  ;;  %v4165_v33 = vadd.f32 %v9330_v5, %v4164_v48 }
 0xda3   :  { %v7978_v20 = vpop.f32.mrf.mxu1  ;;  %v7989_v46 = vpop.f32.mrf.mxu0 }
 0xda4   :  { %v4238_v31 = vadd.f32 %v4095_v49, %v4022_v51  ;;  %v4245_v35 = vadd.f32 %v4165_v33, %v4023_v21  ;;  %v4753_v33 = vld [vmem:[%s10331_s10 + $0x8] sm:$0xff]  ;;  %v4752_v21 = vld [vmem:[%s10331_s10] sm:$0xff] }
 0xda6   :  { %v6924_v32 = vmul.f32 -1.442695, %v4238_v31  ;;  %v6925_v38 = vmul.f32 -1.442695, %v4245_v35  ;;  %v4755_v31 = vld [vmem:[%s10331_s10 + $0x18] sm:$0xff] }
 0xda8   :  { %8361 = vpow2.f32 %v6924_v32  ;;  %v4754_v32 = vld [vmem:[%s10331_s10 + $0x10] sm:$0xff] }
 0xda9   :  { %v4234_v34 = vpop.f32.mrf.mxu1  ;;  %8363 = vpow2.f32 %v6925_v38  ;;  %v4496_v38 = vld [vmem:[#allocation2 + $0x38] sm:$0xff] }
 0xdaa   :  { %v4235_v53 = vadd.f32 %v9342_v54, %v4234_v34 }
 0xdab   :  { %v8000_v37 = vpop.f32.mrf.mxu1 }
 0xdb5   :  { %v8362_v41 = vpop.eup %8361 }
 0xdb6   :  { %v4242_v44 = vadd.f32 1.0, %v8362_v41  ;;  %v8364_v45 = vpop.eup %8363 }
 0xdb7   :  { %v4249_v50 = vadd.f32 1.0, %v8364_v45 }
 0xdb8   :  { %8365 = vrcp.f32 %v4242_v44 }
 0xdb9   :  { %8367 = vrcp.f32 %v4249_v50 }
 0xdc5   :  { %v8366_v23 = vpop.eup %8365 }
 0xdc6   :  { %v4252_v24 = vmul.f32 %v8366_v23, %v4235_v53  ;;  %v8368_v55 = vpop.eup %8367  ;;  %v4497_v23 = vld [vmem:[#allocation3 + $0x38] sm:$0xff] }
 0xdc7   :  { %v4255_v56 = vsub.f32 1.0, %v8368_v55  ;;  %v4257_v43 = vmul.f32 %v8368_v55, %v9513_v16 }
 0xdc8   :  { %v4253_v26 = vadd.f32 %v4252_v24, %v4024_v25 }
 0xdca   :  { %8369 = vtanh.f32 %v4253_v26 }
 0xdd7   :  { %v8370_v57 = vpop.eup %8369 }
 0xdd8   :  { %v4256_v42 = vmul.f32 %v8370_v57, %v4255_v56 }
 0xdda   :  { %v9555_v60 = vadd.f32 %v4257_v43, %v4256_v42 }
 0xddc   :  { %8010 = vmatmul.mubr.msk.f32.vlgmr.msra.gmra.mxu0 %vm197_vm2, %v9555_v60  ;;  %8021 = vmatmul.mubr.msk.f32.vlgmr.msra.gmra.mxu1 %vm197_vm2, %v9555_v60 }
 0xddd   :  { %8024 = vmatpush3.msra.mxu0 %v9228_v30  ;;  %8031 = vmatprep.mubr.msk.f32.mxu0 %vm8419_vm1, %v8418_v8 }
 0xdde   :  { %8025 = vmatprep.subr.mxu0 %v8418_v8  ;;  %8035 = vmatpush3.msra.mxu1 %v8414_v62 }
 0xddf   :  { %8026 = vmatpush3.msra.mxu0 %v9254_v59  ;;  %8036 = vmatprep.subr.mxu1 %v8418_v8 }
 0xde0   :  { %8027 = vmatprep.subr.mxu0 %v8418_v8  ;;  %8037 = vmatpush3.msra.mxu1 %v8415_v63  ;;  %v4498_v63 = vld [vmem:[#allocation4 + $0x38] sm:$0xff] }
 0xde1   :  { %8028 = vmatpush3.msra.mxu0 %v9266_v39  ;;  %8038 = vmatprep.subr.mxu1 %v8418_v8 }
 0xde2   :  { %8029 = vmatprep.subr.mxu0 %v8418_v8  ;;  %8039 = vmatpush3.msra.mxu1 %v8416_v0 }
 0xde3   :  { %8030 = vmatpush3.msra.mxu0 %v9278_v40  ;;  %8040 = vmatprep.subr.mxu1 %v8418_v8 }
 0xde4   :  { %8032 = vmatmul.mubr.msk.f32.vlgmr.msra.gmra.mxu0 %vm197_vm2, %v9555_v60  ;;  %8045 = vmatprep.subr.mxu0 %v8418_v8 }
 0xde5   :  { %8046 = vmatpush3.msra.mxu0 %v9215_v58  ;;  %8041 = vmatpush3.msra.mxu1 %v8417_v1 }
 0xde6   :  { %8047 = vmatprep.subr.mxu0 %v8418_v8  ;;  %8042 = vmatprep.mubr.msk.f32.mxu1 %vm8419_vm1, %v8418_v8 }
 0xde7   :  { %8048 = vmatpush3.msra.mxu0 %v9223_v19  ;;  %8053 = vmatprep.mubr.msk.f32.mxu0 %vm8419_vm1, %v8418_v8  ;;  %v4259_v19 = vld [vmem:[#allocation2 + $0x30] sm:$0xff] }
 0xde8   :  { %8049 = vmatprep.subr.mxu0 %v8418_v8  ;;  %8056 = vmatprep.subr.mxu1 %v8418_v8 }
 0xde9   :  { %8050 = vmatpush3.msra.mxu0 %v9237_v36 }
 0xdea   :  { %8051 = vmatprep.subr.mxu0 %v8418_v8 }
 0xdeb   :  { %8052 = vmatpush3.msra.mxu0 %v9249_v22 }
 0xdec   :  { %8067 = vmatprep.subr.mxu0 %v8418_v8 }
 0xe9c   :  { %v4331_v58 = vpop.f32.mrf.mxu0  ;;  %v4401_v3 = vpop.f32.mrf.mxu1 }
 0xe9d   :  { %v4332_v4 = vadd.f32 %v9316_v2, %v4331_v58  ;;  %v4402_v14 = vadd.f32 %v9330_v5, %v4401_v3 }
 0xe9e   :  { %v8011_v7 = vpop.f32.mrf.mxu0  ;;  %v8022_v9 = vpop.f32.mrf.mxu1 }
 0xe9f   :  { %v4475_v10 = vadd.f32 %v4332_v4, %v4259_v19  ;;  %v4482_v52 = vadd.f32 %v4402_v14, %v4260_v15  ;;  %v6937_v19 = vld [vmem:[%s10332_s9] ss:$0 sm:$0xff]  ;;  %v6939_v7 = vld [vmem:[%s10332_s9 + $0x2] ss:$0 sm:$0xff]  ;;  %v6940_v9 = vld [vmem:[%s10332_s9 + $0x3] ss:$0 sm:$0xff] }
 0xea1   :  { %v6929_v12 = vmul.f32 -1.442695, %v4475_v10  ;;  %v6930_v27 = vmul.f32 -1.442695, %v4482_v52 }
 0xea3   :  { %8371 = vpow2.f32 %v6929_v12  ;;  %v9680_v12 = vld [vmem:[%s10332_s9 + $0x4] ss:$0 sm:$0xff] }
 0xea4   :  { %v4471_v36 = vpop.f32.mrf.mxu0  ;;  %8373 = vpow2.f32 %v6930_v27 }
 0xea5   :  { %v4472_v29 = vadd.f32 %v9342_v54, %v4471_v36 }
 0xea6   :  { %v8033_v18 = vpop.f32.mrf.mxu0 }
 0xeb0   :  { %v8372_v22 = vpop.eup %8371 }
 0xeb1   :  { %v4479_v28 = vadd.f32 1.0, %v8372_v22  ;;  %v8374_v61 = vpop.eup %8373 }
 0xeb2   :  { %v4486_v17 = vadd.f32 1.0, %v8374_v61 }
 0xeb3   :  { %8375 = vrcp.f32 %v4479_v28 }
 0xeb4   :  { %8377 = vrcp.f32 %v4486_v17 }
 0xec0   :  { %v8376_v6 = vpop.eup %8375 }
 0xec1   :  { %v4489_v11 = vmul.f32 %v8376_v6, %v4472_v29  ;;  %v8378_v47 = vpop.eup %8377 }
 0xec2   :  { %v4492_v48 = vsub.f32 1.0, %v8378_v47  ;;  %v4494_v20 = vmul.f32 %v8378_v47, %v9555_v60 }
 0xec3   :  { %v4490_v16 = vadd.f32 %v4489_v11, %v4261_v13 }
 0xec5   :  { %8379 = vtanh.f32 %v4490_v16 }
 0xed2   :  { %v8380_v49 = vpop.eup %8379 }
 0xed3   :  { %v4493_v51 = vmul.f32 %v8380_v49, %v4492_v48 }
 0xed5   :  { %v9605_v46 = vadd.f32 %v4494_v20, %v4493_v51 }
 0xed7   :  { %8043 = vmatmul.mubr.msk.f32.vlgmr.msra.gmra.mxu1 %vm197_vm2, %v9605_v46  ;;  %8054 = vmatmul.mubr.msk.f32.vlgmr.msra.gmra.mxu0 %vm197_vm2, %v9605_v46 }
 0xed8   :  { %8057 = vmatpush3.msra.mxu1 %v9228_v30  ;;  %8064 = vmatprep.mubr.msk.f32.mxu1 %vm8419_vm1, %v8418_v8  ;;  %v5041_v30 = vld [vmem:[%s10330_s11 + $0x18] sm:$0xff] }
 0xed9   :  { %8058 = vmatprep.subr.mxu1 %v8418_v8  ;;  %8075 = vmatprep.mubr.msk.f32.mxu0 %vm8419_vm1, %v8418_v8 }
 0xeda   :  { %8059 = vmatpush3.msra.mxu1 %v9254_v59  ;;  %v5040_v59 = vld [vmem:[%s10330_s11 + $0x10] sm:$0xff]  ;;  %8068 = vmatpush3.msra.mxu0 %v5041_v30 }
 0xedb   :  { %8060 = vmatprep.subr.mxu1 %v8418_v8  ;;  %8069 = vmatprep.subr.mxu0 %v8418_v8 }
 0xedc   :  { %8061 = vmatpush3.msra.mxu1 %v9266_v39  ;;  %v5039_v39 = vld [vmem:[%s10330_s11 + $0x8] sm:$0xff]  ;;  %8070 = vmatpush3.msra.mxu0 %v5040_v59  ;;  %v6942_v59 = vld [vmem:[%s10332_s9 + $0x5] ss:$0 sm:$0xff] }
 0xedd   :  { %8062 = vmatprep.subr.mxu1 %v8418_v8  ;;  %8071 = vmatprep.subr.mxu0 %v8418_v8 }
 0xede   :  { %8063 = vmatpush3.msra.mxu1 %v9278_v40  ;;  %v5038_v40 = vld [vmem:[%s10330_s11] sm:$0xff]  ;;  %8072 = vmatpush3.msra.mxu0 %v5039_v39 }
 0xedf   :  { %8065 = vmatmul.mubr.msk.f32.vlgmr.msra.gmra.mxu1 %vm197_vm2, %v9605_v46  ;;  %8078 = vmatprep.subr.mxu1 %v8418_v8 }
 0xee0   :  { %8086 = vmatprep.mubr.msk.f32.mxu1 %vm8419_vm1, %v8418_v8  ;;  %8073 = vmatprep.subr.mxu0 %v8418_v8 }
 0xee1   :  { %8074 = vmatpush3.msra.mxu0 %v5038_v40  ;;  %8079 = vmatpush3.msra.mxu1 %v4755_v31 }
 0xee2   :  { %8089 = vmatprep.subr.mxu0 %v8418_v8  ;;  %8080 = vmatprep.subr.mxu1 %v8418_v8 }
 0xee3   :  { %8081 = vmatpush3.msra.mxu1 %v4754_v32 }
 0xee4   :  { %8082 = vmatprep.subr.mxu1 %v8418_v8 }
 0xee5   :  { %8083 = vmatpush3.msra.mxu1 %v4753_v33 }
 0xee6   :  { %8084 = vmatprep.subr.mxu1 %v8418_v8 }
 0xee7   :  { %8085 = vmatpush3.msra.mxu1 %v4752_v21 }
 0xee8   :  { %8100 = vmatprep.subr.mxu1 %v8418_v8 }
 0xf97   :  { %v4568_v34 = vpop.f32.mrf.mxu1  ;;  %v4638_v35 = vpop.f32.mrf.mxu0 }
 0xf98   :  { %v4569_v37 = vadd.f32 %v9316_v2, %v4568_v34  ;;  %v4639_v53 = vadd.f32 %v9330_v5, %v4638_v35 }
 0xf99   :  { %v8044_v41 = vpop.f32.mrf.mxu1  ;;  %v8055_v44 = vpop.f32.mrf.mxu0 }
 0xf9a   :  { %v4712_v45 = vadd.f32 %v4569_v37, %v4496_v38  ;;  %v4719_v25 = vadd.f32 %v4639_v53, %v4497_v23  ;;  %v9729_v23 = vld [vmem:[%s10332_s9 + $0x6] ss:$0 sm:$0xff] }
 0xf9c   :  { %v6934_v50 = vmul.f32 -1.442695, %v4712_v45  ;;  %v6935_v55 = vmul.f32 -1.442695, %v4719_v25 }
 0xf9e   :  { %8381 = vpow2.f32 %v6934_v50 }
 0xf9f   :  { %v4708_v24 = vpop.f32.mrf.mxu1  ;;  %8383 = vpow2.f32 %v6935_v55 }
 0xfa0   :  { %v4709_v2 = vadd.f32 %v9342_v54, %v4708_v24  ;;  %v6938_v54 = vld [vmem:[%s10332_s9 + $0x1] ss:$0 sm:$0xff] }
 0xfa1   :  { %v8066_v26 = vpop.f32.mrf.mxu1 }
 0xfab   :  { %v8382_v56 = vpop.eup %8381 }
 0xfac   :  { %v4716_v57 = vadd.f32 1.0, %v8382_v56  ;;  %v8384_v42 = vpop.eup %8383 }
 0xfad   :  { %v4723_v43 = vadd.f32 1.0, %v8384_v42 }
 0xfae   :  { %8385 = vrcp.f32 %v4716_v57 }
 0xfaf   :  { %8387 = vrcp.f32 %v4723_v43 }
 0xfbb   :  { %v8386_v60 = vpop.eup %8385 }
 0xfbc   :  { %v4726_v62 = vmul.f32 %v8386_v60, %v4709_v2  ;;  %v8388_v5 = vpop.eup %8387  ;;  %v9736_v2 = vld [vmem:[%s10332_s9 + $0x7] ss:$0 sm:$0xff] }
 0xfbd   :  { %v4729_v1 = vsub.f32 1.0, %v8388_v5  ;;  %v4731_v3 = vmul.f32 %v8388_v5, %v9605_v46 }
 0xfbe   :  { %v4727_v0 = vadd.f32 %v4726_v62, %v4498_v63 }
 0xfc0   :  { %8389 = vtanh.f32 %v4727_v0 }
 0xfcd   :  { %v8390_v58 = vpop.eup %8389 }
 0xfce   :  { %v4730_v4 = vmul.f32 %v8390_v58, %v4729_v1 }
 0xfd0   :  { %v9675_v10 = vadd.f32 %v4731_v3, %v4730_v4 }
 0xfd2   :  { %vm4822_vm3 = vcmp.ge.f32.partialorder %v9675_v10, %v6937_v19  ;;  %vm4823_vm4 = vcmp.ge.f32.partialorder %v9675_v10, %v6938_v54  ;;  %vm4824_vm5 = vcmp.ge.f32.partialorder %v9675_v10, %v6939_v7  ;;  %vm4825_vm6 = vcmp.ge.f32.partialorder %v9675_v10, %v6940_v9 }
 0xfd3   :  { %vm4839_vm7 = vcmp.lt.f32.partialorder %v9675_v10, %v6938_v54  ;;  %vm4840_vm8 = vcmp.lt.f32.partialorder %v9675_v10, %v6939_v7  ;;  %vm4841_vm9 = vcmp.lt.f32.partialorder %v9675_v10, %v6940_v9  ;;  %vm4842_vm10 = vcmp.lt.f32.partialorder %v9675_v10, %v9680_v12 }
 0xfd4   :  { %vm4850_vm11 = vmand %vm4822_vm3, %vm4839_vm7  ;;  %v4883_v14 = vsub.f32 %v9675_v10, %v6937_v19  ;;  %v4884_v15 = vsub.f32 %v9675_v10, %v6938_v54  ;;  %v9694_v36 = vsub.f32 %v9675_v10, %v6939_v7  ;;  %v4903_v52 = vsub.f32 %v6939_v7, %v9675_v10  ;;  %v6965_v19 = vld [vmem:[%s10330_s11 + $0x38] sm:$0xff] }
 0xfd5   :  { %vm4851_vm12 = vmand %vm4823_vm4, %vm4840_vm8  ;;  %v6949_v18 = vsel %vm4850_vm11, 1.0, %v8418_v8  ;;  %v4904_v27 = vsub.f32 %v6940_v9, %v9675_v10  ;;  %v4905_v22 = vsub.f32 %v9680_v12, %v9675_v10  ;;  %vm4826_vm15 = vcmp.ge.f32.partialorder %v9675_v10, %v9680_v12 }
 0xfd6   :  { %vm4852_vm13 = vmand %vm4824_vm5, %vm4841_vm9  ;;  %v6950_v28 = vsel %vm4851_vm12, 1.0, %v8418_v8  ;;  %v4893_v61 = vmul.f32 2.5, %v4883_v14  ;;  %v4894_v17 = vmul.f32 2.5, %v4884_v15  ;;  %v4895_v29 = vmul.f32 2.5, %v9694_v36 }
 0xfd7   :  { %vm4853_vm14 = vmand %vm4825_vm6, %vm4842_vm10  ;;  %v6951_v6 = vsel %vm4852_vm13, 1.0, %v8418_v8  ;;  %v4913_v11 = vmul.f32 2.5, %v4903_v52  ;;  %v4914_v13 = vmul.f32 2.5, %v4904_v27  ;;  %v4915_v16 = vmul.f32 2.5, %v4905_v22 }
 0xfd8   :  { %v6952_v47 = vsel %vm4853_vm14, 1.0, %v8418_v8  ;;  %v4923_v48 = vmul.f32 %v6949_v18, %v4893_v61  ;;  %v4924_v49 = vmul.f32 %v6950_v28, %v4894_v17  ;;  %v4925_v51 = vmul.f32 %v6951_v6, %v4895_v29  ;;  %v6964_v18 = vld [vmem:[%s10330_s11 + $0x30] sm:$0xff] }
 0xfd9   :  { %v4933_v20 = vmul.f32 %v6950_v28, %v4913_v11  ;;  %v4934_v46 = vmul.f32 %v6951_v6, %v4914_v13  ;;  %v4935_v30 = vmul.f32 %v6952_v47, %v4915_v16  ;;  %v4953_v39 = vmul.f32 1.25, %v4883_v14  ;;  %v6963_v13 = vld [vmem:[%s10330_s11 + $0x28] sm:$0xff] }
 0xfda   :  { %v4954_v40 = vmul.f32 1.25, %v4884_v15  ;;  %v4962_v31 = vmul.f32 1.25, %v4904_v27  ;;  %v4963_v32 = vmul.f32 1.25, %v4905_v22  ;;  %v4998_v35 = vmul.f32 0.8333333, %v4883_v14 }
 0xfdb   :  { %v4943_v33 = vadd.f32 %v4933_v20, %v4923_v48  ;;  %v4944_v21 = vadd.f32 %v4934_v46, %v4924_v49  ;;  %v4945_v34 = vadd.f32 %v4935_v30, %v4925_v51  ;;  %vm4843_vm0 = vcmp.lt.f32.partialorder %v9675_v10, %v6942_v59  ;;  %v9787_v51 = vld [vmem:[%s10332_s9 + $0x8] ss:$0 sm:$0xff]  ;;  %v9792_v20 = vld [vmem:[%s10332_s9 + $0x9] ss:$0 sm:$0xff] }
 0xfdc   :  { %v9719_v37 = vsub.f32 %v9675_v10, %v6940_v9  ;;  %v4906_v38 = vsub.f32 %v6942_v59, %v9675_v10  ;;  %v4955_v41 = vmul.f32 1.25, %v9694_v36  ;;  %vm4854_vm3 = vmand %vm4826_vm15, %vm4843_vm0  ;;  %v5006_v24 = vmul.f32 0.8333333, %v4905_v22 }
 0xfdd   :  { %v4971_v44 = vmul.f32 %v4953_v39, %v4943_v33  ;;  %v4972_v45 = vmul.f32 %v4954_v40, %v4944_v21  ;;  %v4980_v50 = vmul.f32 %v4962_v31, %v4944_v21  ;;  %v4981_v53 = vmul.f32 %v4963_v32, %v4945_v34  ;;  %v6962_v40 = vld [vmem:[%s10330_s11 + $0x20] sm:$0xff] }
 0xfde   :  { %v6953_v25 = vsel %vm4854_vm3, 1.0, %v8418_v8  ;;  %v4896_v26 = vmul.f32 2.5, %v9719_v37  ;;  %v4916_v55 = vmul.f32 2.5, %v4906_v38  ;;  %v4964_v42 = vmul.f32 1.25, %v4906_v38 }
 0xfdf   :  { %v4989_v56 = vadd.f32 %v4980_v50, %v4971_v44  ;;  %v4990_v57 = vadd.f32 %v4981_v53, %v4972_v45  ;;  %v4973_v43 = vmul.f32 %v4955_v41, %v4945_v34  ;;  %v4999_v63 = vmul.f32 0.8333333, %v4884_v15  ;;  %v6975_v34 = vld [vmem:[%s10330_s11 + $0x78] sm:$0xff]  ;;  %v6974_v53 = vld [vmem:[%s10330_s11 + $0x70] sm:$0xff] }
 0xfe0   :  { %v4926_v60 = vmul.f32 %v6952_v47, %v4896_v26  ;;  %v4936_v62 = vmul.f32 %v6953_v25, %v4916_v55  ;;  %vm4827_vm4 = vcmp.ge.f32.partialorder %v9675_v10, %v6942_v59  ;;  %v5007_v1 = vmul.f32 0.8333333, %v4906_v38 }
 0xfe1   :  { %v5014_v0 = vmul.f32 %v4998_v35, %v4989_v56  ;;  %v5022_v5 = vmul.f32 %v5006_v24, %v4990_v57  ;;  %vm4828_vm5 = vcmp.ge.f32.partialorder %v9675_v10, %v9729_v23  ;;  %vm4844_vm6 = vcmp.lt.f32.partialorder %v9675_v10, %v9729_v23 }
 0xfe2   :  { %v4946_v58 = vadd.f32 %v4936_v62, %v4926_v60  ;;  %vm4845_vm7 = vcmp.lt.f32.partialorder %v9675_v10, %v9736_v2  ;;  %v9747_v3 = vsub.f32 %v9675_v10, %v9680_v12  ;;  %vm4855_vm8 = vmand %vm4827_vm4, %vm4844_vm6  ;;  %v9753_v54 = vsub.f32 %v9675_v10, %v6942_v59 }
 0xfe3   :  { %v5030_v4 = vadd.f32 %v5022_v5, %v5014_v0  ;;  %v9757_v7 = vsub.f32 %v9729_v23, %v9675_v10  ;;  %v4908_v9 = vsub.f32 %v9736_v2, %v9675_v10  ;;  %v5015_v15 = vmul.f32 %v4999_v63, %v4990_v57  ;;  %vm4856_vm9 = vmand %vm4828_vm5, %vm4845_vm7 }
 0xfe4   :  { %v4982_v14 = vmul.f32 %v4964_v42, %v4946_v58  ;;  %v6954_v12 = vsel %vm4855_vm8, 1.0, %v8418_v8  ;;  %v4897_v52 = vmul.f32 2.5, %v9747_v3  ;;  %v9768_v27 = vsel %vm4856_vm9, 1.0, %v8418_v8 }
 0xfe5   :  { %8076 = vmatmul.mubr.msk.f32.vlgmr.msra.gmra.mxu0 %vm197_vm2, %v5030_v4  ;;  %v4898_v22 = vmul.f32 2.5, %v9753_v54  ;;  %v4917_v28 = vmul.f32 2.5, %v9757_v7  ;;  %v4918_v61 = vmul.f32 2.5, %v4908_v9  ;;  %v4956_v6 = vmul.f32 1.25, %v9719_v37  ;;  %v6972_v4 = vld [vmem:[%s10330_s11 + $0x60] sm:$0xff] }
 0xfe6   :  { %8090 = vmatpush3.msra.mxu0 %v6965_v19  ;;  %8097 = vmatprep.mubr.msk.f32.mxu0 %vm8419_vm1, %v8418_v8  ;;  %v9774_v17 = vadd.f32 %v4982_v14, %v4973_v43  ;;  %v4927_v29 = vmul.f32 %v6953_v25, %v4897_v52  ;;  %v4957_v11 = vmul.f32 1.25, %v9747_v3  ;;  %v4965_v49 = vmul.f32 1.25, %v9757_v7  ;;  %v6973_v43 = vld [vmem:[%s10330_s11 + $0x68] sm:$0xff] }
 0xfe7   :  { %8091 = vmatprep.subr.mxu0 %v8418_v8  ;;  %v4928_v16 = vmul.f32 %v6954_v12, %v4898_v22  ;;  %v4937_v47 = vmul.f32 %v6954_v12, %v4917_v28  ;;  %v4938_v48 = vmul.f32 %v9768_v27, %v4918_v61  ;;  %v4966_v30 = vmul.f32 1.25, %v4908_v9 }
 0xfe8   :  { %8092 = vmatpush3.msra.mxu0 %v6964_v18  ;;  %v5023_v46 = vmul.f32 %v5007_v1, %v9774_v17  ;;  %v4974_v59 = vmul.f32 %v4956_v6, %v4946_v58  ;;  %v5001_v39 = vmul.f32 0.8333333, %v9719_v37  ;;  %v6936_v33 = vmul.f32 -1.442695, %v9675_v10  ;;  %v6947_v58 = vld [vmem:[%s10332_s9 + $0xa] ss:$0 sm:$0xff] }
 0xfe9   :  { %8093 = vmatprep.subr.mxu0 %v8418_v8  ;;  %v4947_v31 = vadd.f32 %v4937_v47, %v4927_v29  ;;  %v4948_v32 = vadd.f32 %v4938_v48, %v4928_v16  ;;  %vm4829_vm10 = vcmp.ge.f32.partialorder %v9675_v10, %v9736_v2  ;;  %vm4830_vm11 = vcmp.ge.f32.partialorder %v9675_v10, %v9787_v51  ;;  %v6948_v18 = vld [vmem:[%s10332_s9 + $0xb] ss:$0 sm:$0xff]  ;;  %v6984_v6 = vld [vmem:[%s10330_s11 + $0xb0] sm:$0xff]  ;;  %v6980_v47 = vld [vmem:[%s10330_s11 + $0x98] sm:$0xff] }
 0xfea   :  { %8094 = vmatpush3.msra.mxu0 %v6963_v13  ;;  %v5031_v21 = vadd.f32 %v5023_v46, %v5015_v15  ;;  %vm4846_vm12 = vcmp.lt.f32.partialorder %v9675_v10, %v9787_v51  ;;  %vm4847_vm13 = vcmp.lt.f32.partialorder %v9675_v10, %v9792_v20  ;;  %8391 = vpow2.f32 %v6936_v33  ;;  %v6983_v46 = vld [vmem:[%s10330_s11 + $0xa8] sm:$0xff] }
 0xfeb   :  { %8095 = vmatprep.subr.mxu0 %v8418_v8  ;;  %v4975_v35 = vmul.f32 %v4957_v11, %v4947_v31  ;;  %v4983_v37 = vmul.f32 %v4965_v49, %v4947_v31  ;;  %v4984_v38 = vmul.f32 %v4966_v30, %v4948_v32  ;;  %vm4857_vm14 = vmand %vm4829_vm10, %vm4846_vm12  ;;  %v5009_v41 = vmul.f32 0.8333333, %v4908_v9 }
 0xfec   :  { %8096 = vmatpush3.msra.mxu0 %v6962_v40  ;;  %vm4858_vm15 = vmand %vm4830_vm11, %vm4847_vm13  ;;  %v9815_v44 = vsub.f32 %v9675_v10, %v9729_v23  ;;  %v9819_v45 = vsub.f32 %v9675_v10, %v9736_v2  ;;  %v9823_v50 = vsub.f32 %v9787_v51, %v9675_v10  ;;  %v6956_v25 = vsel %vm4857_vm14, 1.0, %v8418_v8 }
 0xfed   :  { %8098 = vmatmul.mubr.msk.f32.vlgmr.msra.gmra.mxu0 %vm197_vm2, %v5031_v21  ;;  %8111 = vmatprep.subr.mxu0 %v8418_v8  ;;  %v9830_v24 = vadd.f32 %v4983_v37, %v4974_v59  ;;  %v9832_v23 = vadd.f32 %v4984_v38, %v4975_v35  ;;  %v4910_v26 = vsub.f32 %v9792_v20, %v9675_v10  ;;  %v9840_v55 = vsel %vm4858_vm15, 1.0, %v8418_v8  ;;  %v6982_v21 = vld [vmem:[%s10330_s11 + $0xa0] sm:$0xff] }
 0xfee   :  { %8112 = vmatpush3.msra.mxu0 %v6975_v34  ;;  %8119 = vmatprep.mubr.msk.f32.mxu0 %vm8419_vm1, %v8418_v8  ;;  %v4899_v56 = vmul.f32 2.5, %v9815_v44  ;;  %v4900_v57 = vmul.f32 2.5, %v9819_v45  ;;  %v4919_v42 = vmul.f32 2.5, %v9823_v50  ;;  %v4958_v1 = vmul.f32 1.25, %v9753_v54 }
 0xfef   :  { %8113 = vmatprep.subr.mxu0 %v8418_v8  ;;  %v5017_v2 = vmul.f32 %v5001_v39, %v9830_v24  ;;  %v5025_v60 = vmul.f32 %v5009_v41, %v9832_v23  ;;  %v4920_v62 = vmul.f32 2.5, %v4910_v26  ;;  %v4959_v9 = vmul.f32 1.25, %v9815_v44 }
 0xff0   :  { %8114 = vmatpush3.msra.mxu0 %v6974_v53  ;;  %v4929_v63 = vmul.f32 %v9768_v27, %v4899_v56  ;;  %v4930_v0 = vmul.f32 %v6956_v25, %v4900_v57  ;;  %v4939_v5 = vmul.f32 %v6956_v25, %v4919_v42  ;;  %v4967_v12 = vmul.f32 1.25, %v9823_v50  ;;  %v6985_v27 = vld [vmem:[%s10330_s11 + $0xb8] sm:$0xff] }
 0xff1   :  { %8115 = vmatprep.subr.mxu0 %v8418_v8  ;;  %v4940_v19 = vmul.f32 %v9840_v55, %v4920_v62  ;;  %v5033_v14 = vadd.f32 %v5025_v60, %v5017_v2  ;;  %v4976_v52 = vmul.f32 %v4958_v1, %v4948_v32  ;;  %v4968_v28 = vmul.f32 1.25, %v4910_v26 }
 0xff2   :  { %8116 = vmatpush3.msra.mxu0 %v6973_v43  ;;  %v4949_v15 = vadd.f32 %v4939_v5, %v4929_v63  ;;  %vm4831_vm0 = vcmp.ge.f32.partialorder %v9675_v10, %v9792_v20  ;;  %vm4832_vm3 = vcmp.ge.f32.partialorder %v9675_v10, %v6947_v58  ;;  %vm4848_vm4 = vcmp.lt.f32.partialorder %v9675_v10, %v6947_v58  ;;  %v6993_v5 = vld [vmem:[%s10330_s11 + $0xe8] sm:$0xff] }
 0xff3   :  { %8117 = vmatprep.subr.mxu0 %v8418_v8  ;;  %v4950_v22 = vadd.f32 %v4940_v19, %v4930_v0  ;;  %vm4849_vm5 = vcmp.lt.f32.partialorder %v9675_v10, %v6948_v18  ;;  %vm4859_vm6 = vmand %vm4831_vm0, %vm4848_vm4  ;;  %v5003_v16 = vmul.f32 0.8333333, %v9753_v54  ;;  %v4891_v48 = vsub.f32 %v9675_v10, %v9787_v51  ;;  %v6992_v19 = vld [vmem:[%s10330_s11 + $0xe0] sm:$0xff] }
 0xff4   :  { %8118 = vmatpush3.msra.mxu0 %v6972_v4  ;;  %v4977_v61 = vmul.f32 %v4959_v9, %v4949_v15  ;;  %v4985_v29 = vmul.f32 %v4967_v12, %v4949_v15  ;;  %vm9887_vm7 = vmand %vm4832_vm3, %vm4849_vm5  ;;  %v4892_v49 = vsub.f32 %v9675_v10, %v9792_v20  ;;  %v5011_v54 = vmul.f32 0.8333333, %v4910_v26  ;;  %v6995_v26 = vld [vmem:[%s10330_s11 + $0xf8] sm:$0xff] }
 0xff5   :  { %8120 = vmatmul.mubr.msk.f32.vlgmr.msra.gmra.mxu0 %vm197_vm2, %v5033_v14  ;;  %8133 = vmatprep.subr.mxu0 %v8418_v8  ;;  %v4986_v11 = vmul.f32 %v4968_v28, %v4950_v22  ;;  %v6958_v59 = vsel %vm4859_vm6, 1.0, %v8418_v8  ;;  %v9903_v39 = vsub.f32 %v6947_v58, %v9675_v10  ;;  %v4901_v31 = vmul.f32 2.5, %v4891_v48 }
 0xff6   :  { %8134 = vmatpush3.msra.mxu0 %v6985_v27  ;;  %8141 = vmatprep.mubr.msk.f32.mxu0 %vm8419_vm1, %v8418_v8  ;;  %v9882_v13 = vadd.f32 %v4985_v29, %v4976_v52  ;;  %v4902_v20 = vmul.f32 2.5, %v4892_v49  ;;  %v4912_v32 = vsub.f32 %v6948_v18, %v9675_v10  ;;  %v6959_v35 = vsel %vm9887_vm7, 1.0, %v8418_v8  ;;  %v6978_v49 = vld [vmem:[%s10330_s11 + $0x88] sm:$0xff] }
 0xff7   :  { %8135 = vmatprep.subr.mxu0 %v8418_v8  ;;  %v9899_v30 = vadd.f32 %v4986_v11, %v4977_v61  ;;  %v8392_v40 = vpop.eup %8391  ;;  %v4921_v37 = vmul.f32 2.5, %v9903_v39  ;;  %v4931_v41 = vmul.f32 %v9840_v55, %v4901_v31  ;;  %v4960_v57 = vmul.f32 1.25, %v9819_v45  ;;  %v6994_v55 = vld [vmem:[%s10330_s11 + $0xf0] sm:$0xff] }
 0xff8   :  { %8136 = vmatpush3.msra.mxu0 %v6984_v6  ;;  %v5019_v51 = vmul.f32 %v5003_v16, %v9882_v13  ;;  %v4748_v33 = vadd.f32 1.0, %v8392_v40  ;;  %v4922_v38 = vmul.f32 2.5, %v4912_v32  ;;  %v4932_v53 = vmul.f32 %v6958_v59, %v4902_v20  ;;  %v6969_v61 = vld [vmem:[%s10330_s11 + $0x50] sm:$0xff] }
 0xff9   :  { %8137 = vmatprep.subr.mxu0 %v8418_v8  ;;  %v5027_v34 = vmul.f32 %v5011_v54, %v9899_v30  ;;  %v4941_v56 = vmul.f32 %v6958_v59, %v4921_v37  ;;  %v4961_v2 = vmul.f32 1.25, %v4891_v48  ;;  %v4969_v60 = vmul.f32 1.25, %v9903_v39  ;;  %v6990_v59 = vld [vmem:[%s10330_s11 + $0xd8] sm:$0xff] }
 0xffa   :  { %8138 = vmatpush3.msra.mxu0 %v6983_v46  ;;  %8393 = vrcp.f32 %v4748_v33  ;;  %v4942_v42 = vmul.f32 %v6959_v35, %v4922_v38  ;;  %v4978_v62 = vmul.f32 %v4960_v57, %v4950_v22  ;;  %v4970_v0 = vmul.f32 1.25, %v4912_v32  ;;  %v6044_v33 = vld [vmem:[%s10333_s14] sm:$0xff] }
 0xffb   :  { %8139 = vmatprep.subr.mxu0 %v8418_v8  ;;  %v5035_v25 = vadd.f32 %v5027_v34, %v5019_v51  ;;  %v4951_v43 = vadd.f32 %v4941_v56, %v4931_v41  ;;  %v5005_v14 = vmul.f32 0.8333333, %v9819_v45  ;;  %v5013_v12 = vmul.f32 0.8333333, %v4912_v32  ;;  %v6970_v45 = vld [vmem:[%s10330_s11 + $0x58] sm:$0xff]  ;;  %v6988_v51 = vld [vmem:[%s10330_s11 + $0xc8] sm:$0xff] }
 0xffc   :  { %8140 = vmatpush3.msra.mxu0 %v6982_v21  ;;  %v4952_v63 = vadd.f32 %v4942_v42, %v4932_v53  ;;  %v5000_v29 = vmul.f32 0.8333333, %v9694_v36  ;;  %v5008_v6 = vmul.f32 0.8333333, %v9757_v7  ;;  %v6967_v36 = vld [vmem:[%s10330_s11 + $0x40] sm:$0xff]  ;;  %vm6050_vm8 = vcmask 1041408  }
 0xffd   :  { %8142 = vmatmul.mubr.msk.f32.vlgmr.msra.gmra.mxu0 %vm197_vm2, %v5035_v25  ;;  %8155 = vmatprep.subr.mxu0 %v8418_v8  ;;  %v4979_v1 = vmul.f32 %v4961_v2, %v4951_v43  ;;  %v4987_v58 = vmul.f32 %v4969_v60, %v4951_v43  ;;  %v5010_v48 = vmul.f32 0.8333333, %v9823_v50  ;;  %v5012_v40 = vmul.f32 0.8333333, %v9903_v39  ;;  %v7026_v32 = vld [vmem:[%s10333_s14 + $0x18] sm:$0x3] }
 0xffe   :  { %8156 = vmatpush3.msra.mxu0 %v6995_v26  ;;  %8163 = vmatprep.mubr.msk.f32.mxu0 %vm8419_vm1, %v8418_v8  ;;  %v4988_v4 = vmul.f32 %v4970_v0, %v4952_v63  ;;  %v5016_v11 = vmul.f32 %v5000_v29, %v9774_v17  ;;  %v5024_v16 = vmul.f32 %v5008_v6, %v9830_v24  ;;  %v6979_v17 = vld [vmem:[%s10330_s11 + $0x90] sm:$0xff]  ;;  %v5002_v24 = vmul.f32 0.8333333, %v9747_v3  ;;  %v6977_v3 = vld [vmem:[%s10330_s11 + $0x80] sm:$0xff] }
 0xfff   :  { %8157 = vmatprep.subr.mxu0 %v8418_v8  ;;  %v9938_v9 = vadd.f32 %v4987_v58, %v4978_v62  ;;  %v5026_v54 = vmul.f32 %v5010_v48, %v9882_v13  ;;  %v5004_v13 = vmul.f32 0.8333333, %v9815_v44  ;;  %v6987_v44 = vld [vmem:[%s10330_s11 + $0xc0] sm:$0xff]  ;;  %v7025_v21 = vld [vmem:[%s10333_s14 + $0x10] sm:$0xff]  ;;  %vm6046_vm7 = vcmask 80896  }
0x1000   :  { %8158 = vmatpush3.msra.mxu0 %v6994_v55  ;;  %v4997_v15 = vadd.f32 %v4988_v4, %v4979_v1  ;;  %v5032_v7 = vadd.f32 %v5024_v16, %v5016_v11  ;;  %v5018_v46 = vmul.f32 %v5002_v24, %v9832_v23  ;;  %v6989_v23 = vld [vmem:[%s10330_s11 + $0xd0] sm:$0xff] }
0x1001   :  { %8159 = vmatprep.subr.mxu0 %v8418_v8  ;;  %v5021_v52 = vmul.f32 %v5005_v14, %v9938_v9  ;;  %v5020_v31 = vmul.f32 %v5004_v13, %v9899_v30  ;;  %v5028_v20 = vmul.f32 %v5012_v40, %v9938_v9  ;;  %v6045_v30 = vld [vmem:[%s10333_s14 + $0x8] sm:$0x3]  ;;  %v6998_v14 = vld [vmem:[%s10334_s12] ss:$0 sm:$0xff] }
0x1002   :  { %8160 = vmatpush3.msra.mxu0 %v6993_v5  ;;  %v5029_v18 = vmul.f32 %v5013_v12, %v4997_v15  ;;  %v5034_v50 = vadd.f32 %v5026_v54, %v5018_v46  ;;  %v6999_v12 = vld [vmem:[%s10334_s12 + $0x1] ss:$0 sm:$0xff] }
0x1003   :  { %8161 = vmatprep.subr.mxu0 %v8418_v8  ;;  %v5036_v39 = vadd.f32 %v5028_v20, %v5020_v31 }
0x1004   :  { %8162 = vmatpush3.msra.mxu0 %v6992_v19  ;;  %v5037_v27 = vadd.f32 %v5029_v18, %v5021_v52  ;;  %v7000_v52 = vld [vmem:[%s10334_s12 + $0x2] ss:$0 sm:$0xff]  ;;  %v7001_v18 = vld [vmem:[%s10334_s12 + $0x3] ss:$0 sm:$0xff] }
0x1005   :  { %8180 = vmatprep.subr.mxu0 %v8418_v8 }
0x1006   :  { %8164 = vmatmul.mubr.msk.f32.vlgmr.msra.gmra.mxu0 %vm197_vm2, %v5037_v27 }
0x1007   :  { %v8394_v22 = vpop.eup %8393  ;;  %8184 = vmatprep.mubr.msk.f32.mxu0 %vm8419_vm1, %v8418_v8  ;;  %8181 = vmatpush3.msk.msra.mxu0 %vm6050_vm8, %v7026_v32 }
0x1008   :  { %v4751_v28 = vmul.f32 %v8394_v22, %v9675_v10  ;;  %v6968_v10 = vld [vmem:[%s10330_s11 + $0x48] sm:$0xff]  ;;  %8182 = vmatprep.subr.mxu0 %v8418_v8  ;;  %v10055_v22 = vld [vmem:[%s10334_s12 + $0x4] ss:$0 sm:$0xff] }
0x1009   :  { %8183 = vmatpush3.msra.mxu0 %v7025_v21 }
0x100a   :  { %8087 = vmatmul.mubr.msk.f32.vlgmr.msra.gmra.mxu1 %vm197_vm2, %v4751_v28  ;;  %8194 = vmatprep.subr.mxu0 %v8418_v8 }
0x100b   :  { %8101 = vmatpush3.msra.mxu1 %v6970_v45  ;;  %8108 = vmatprep.mubr.msk.f32.mxu1 %vm8419_vm1, %v8418_v8 }
0x100c   :  { %8102 = vmatprep.subr.mxu1 %v8418_v8 }
0x100d   :  { %8103 = vmatpush3.msra.mxu1 %v6969_v61 }
0x100e   :  { %8104 = vmatprep.subr.mxu1 %v8418_v8 }
0x100f   :  { %8105 = vmatpush3.msra.mxu1 %v6968_v10 }
0x1010   :  { %8106 = vmatprep.subr.mxu1 %v8418_v8 }
0x1011   :  { %8107 = vmatpush3.msra.mxu1 %v6967_v36 }
0x1012   :  { %8109 = vmatmul.mubr.msk.f32.vlgmr.msra.gmra.mxu1 %vm197_vm2, %v5032_v7  ;;  %8122 = vmatprep.subr.mxu1 %v8418_v8 }
0x1013   :  { %8123 = vmatpush3.msra.mxu1 %v6980_v47  ;;  %8130 = vmatprep.mubr.msk.f32.mxu1 %vm8419_vm1, %v8418_v8 }
0x1014   :  { %8124 = vmatprep.subr.mxu1 %v8418_v8 }
0x1015   :  { %8125 = vmatpush3.msra.mxu1 %v6979_v17 }
0x1016   :  { %8126 = vmatprep.subr.mxu1 %v8418_v8 }
0x1017   :  { %8127 = vmatpush3.msra.mxu1 %v6978_v49 }
0x1018   :  { %8128 = vmatprep.subr.mxu1 %v8418_v8 }
0x1019   :  { %8129 = vmatpush3.msra.mxu1 %v6977_v3 }
0x101a   :  { %8131 = vmatmul.mubr.msk.f32.vlgmr.msra.gmra.mxu1 %vm197_vm2, %v5034_v50  ;;  %8144 = vmatprep.subr.mxu1 %v8418_v8 }
0x101b   :  { %8145 = vmatpush3.msra.mxu1 %v6990_v59  ;;  %8152 = vmatprep.mubr.msk.f32.mxu1 %vm8419_vm1, %v8418_v8 }
0x101c   :  { %8146 = vmatprep.subr.mxu1 %v8418_v8 }
0x101d   :  { %8147 = vmatpush3.msra.mxu1 %v6989_v23 }
0x101e   :  { %8148 = vmatprep.subr.mxu1 %v8418_v8 }
0x101f   :  { %8149 = vmatpush3.msra.mxu1 %v6988_v51  ;;  %v7003_v51 = vld [vmem:[%s10334_s12 + $0x5] ss:$0 sm:$0xff] }
0x1020   :  { %8150 = vmatprep.subr.mxu1 %v8418_v8 }
0x1021   :  { %8151 = vmatpush3.msra.mxu1 %v6987_v44 }
0x1022   :  { %8153 = vmatmul.mubr.msk.f32.vlgmr.msra.gmra.mxu1 %vm197_vm2, %v5036_v39  ;;  %8166 = vmatprep.subr.mxu1 %v8418_v8 }
0x1023   :  { %8170 = vmatprep.mubr.msk.f32.mxu1 %vm8419_vm1, %v8418_v8  ;;  %8167 = vmatpush3.msk.msra.mxu1 %vm6050_vm8, %v6045_v30 }
0x1024   :  { %8168 = vmatprep.subr.mxu1 %v8418_v8 }
0x1025   :  { %8169 = vmatpush3.msra.mxu1 %v6044_v33 }
0x1026   :  { %8173 = vmatprep.subr.mxu1 %v8418_v8 }
0x10a5   :  { %v5111_v34 = vpop.f32.mrf.mxu0 }
0x10a7   :  { %v8077_v35 = vpop.f32.mrf.mxu0 }
0x10ad   :  { %v5262_v37 = vpop.f32.mrf.mxu0 }
0x10af   :  { %v8099_v38 = vpop.f32.mrf.mxu0 }
0x10b5   :  { %v5420_v41 = vpop.f32.mrf.mxu0 }
0x10b7   :  { %v8121_v53 = vpop.f32.mrf.mxu0 }
0x10bd   :  { %v5578_v25 = vpop.f32.mrf.mxu0 }
0x10bf   :  { %v8143_v26 = vpop.f32.mrf.mxu0 }
0x10c6   :  { %v5736_v56 = vpop.f32.mrf.mxu0 }
0x10c8   :  { %v8165_v57 = vpop.f32.mrf.mxu0 }
0x10ca   :  { %v5184_v42 = vpop.f32.mrf.mxu1 }
0x10cb   :  { %v5185_v43 = vadd.f32 %v5184_v42, %v5111_v34 }
0x10cc   :  { %v8088_v55 = vpop.f32.mrf.mxu1 }
0x10cd   :  { %v5266_v62 = vadd.f32 %v5262_v37, %v5185_v43  ;;  %v10106_v55 = vld [vmem:[%s10334_s12 + $0x6] ss:$0 sm:$0xff] }
0x10d2   :  { %v5341_v2 = vpop.f32.mrf.mxu1 }
0x10d3   :  { %v5345_v63 = vadd.f32 %v5341_v2, %v5266_v62 }
0x10d4   :  { %v8110_v60 = vpop.f32.mrf.mxu1 }
0x10d5   :  { %v5424_v5 = vadd.f32 %v5420_v41, %v5345_v63  ;;  %v10111_v63 = vld [vmem:[%s10334_s12 + $0x7] ss:$0 sm:$0xff] }
0x10da   :  { %v5499_v0 = vpop.f32.mrf.mxu1 }
0x10db   :  { %v5503_v58 = vadd.f32 %v5499_v0, %v5424_v5 }
0x10dc   :  { %v8132_v1 = vpop.f32.mrf.mxu1 }
0x10dd   :  { %v5582_v4 = vadd.f32 %v5578_v25, %v5503_v58 }
0x10e2   :  { %v5657_v19 = vpop.f32.mrf.mxu1 }
0x10e3   :  { %v5661_v9 = vadd.f32 %v5657_v19, %v5582_v4 }
0x10e4   :  { %v8154_v15 = vpop.f32.mrf.mxu1 }
0x10e5   :  { %v10050_v27 = vadd.f32 %v5736_v56, %v5661_v9 }
0x10e7   :  { %vm5828_vm2 = vcmp.ge.f32.partialorder %v10050_v27, %v6998_v14  ;;  %vm5829_vm9 = vcmp.ge.f32.partialorder %v10050_v27, %v6999_v12  ;;  %vm5830_vm10 = vcmp.ge.f32.partialorder %v10050_v27, %v7000_v52  ;;  %vm5831_vm11 = vcmp.ge.f32.partialorder %v10050_v27, %v7001_v18 }
0x10e8   :  { %vm5845_vm12 = vcmp.lt.f32.partialorder %v10050_v27, %v6999_v12  ;;  %vm5846_vm13 = vcmp.lt.f32.partialorder %v10050_v27, %v7000_v52  ;;  %vm5847_vm14 = vcmp.lt.f32.partialorder %v10050_v27, %v7001_v18  ;;  %vm5848_vm15 = vcmp.lt.f32.partialorder %v10050_v27, %v10055_v22 }
0x10e9   :  { %vm5856_vm0 = vmand %vm5828_vm2, %vm5845_vm12  ;;  %v5889_v28 = vsub.f32 %v10050_v27, %v6998_v14  ;;  %v5890_v45 = vsub.f32 %v10050_v27, %v6999_v12  ;;  %v10069_v61 = vsub.f32 %v10050_v27, %v7000_v52  ;;  %v5909_v29 = vsub.f32 %v7000_v52, %v10050_v27 }
0x10ea   :  { %vm5857_vm3 = vmand %vm5829_vm9, %vm5846_vm13  ;;  %v7010_v6 = vsel %vm5856_vm0, 1.0, %v8418_v8  ;;  %v5910_v10 = vsub.f32 %v7001_v18, %v10050_v27  ;;  %v5911_v11 = vsub.f32 %v10055_v22, %v10050_v27  ;;  %vm5832_vm4 = vcmp.ge.f32.partialorder %v10050_v27, %v10055_v22 }
0x10eb   :  { %vm5858_vm5 = vmand %vm5830_vm10, %vm5847_vm14  ;;  %v7011_v16 = vsel %vm5857_vm3, 1.0, %v8418_v8  ;;  %v5899_v36 = vmul.f32 2.5, %v5889_v28  ;;  %v5900_v7 = vmul.f32 2.5, %v5890_v45  ;;  %v5901_v47 = vmul.f32 2.5, %v10069_v61 }
0x10ec   :  { %vm5859_vm6 = vmand %vm5831_vm11, %vm5848_vm15  ;;  %v7012_v17 = vsel %vm5858_vm5, 1.0, %v8418_v8  ;;  %v5919_v24 = vmul.f32 2.5, %v5909_v29  ;;  %v5920_v48 = vmul.f32 2.5, %v5910_v10  ;;  %v5921_v49 = vmul.f32 2.5, %v5911_v11 }
0x10ed   :  { %v7013_v46 = vsel %vm5859_vm6, 1.0, %v8418_v8  ;;  %v5929_v54 = vmul.f32 %v7010_v6, %v5899_v36  ;;  %v5930_v3 = vmul.f32 %v7011_v16, %v5900_v7  ;;  %v5931_v50 = vmul.f32 %v7012_v17, %v5901_v47  ;;  %v5760_v7 = vld [vmem:[%s10335_s13] sm:$0xff] }
0x10ee   :  { %v5939_v59 = vmul.f32 %v7011_v16, %v5919_v24  ;;  %v5940_v23 = vmul.f32 %v7012_v17, %v5920_v48  ;;  %v5941_v13 = vmul.f32 %v7013_v46, %v5921_v49  ;;  %v5959_v40 = vmul.f32 1.25, %v5889_v28  ;;  %v10153_v49 = vld [vmem:[%s10334_s12 + $0x8] ss:$0 sm:$0xff] }
0x10ef   :  { %v5960_v31 = vmul.f32 1.25, %v5890_v45  ;;  %v5968_v20 = vmul.f32 1.25, %v5910_v10  ;;  %v5969_v44 = vmul.f32 1.25, %v5911_v11  ;;  %v6004_v39 = vmul.f32 0.8333333, %v5889_v28 }
0x10f0   :  { %v5949_v30 = vadd.f32 %v5939_v59, %v5929_v54  ;;  %v5950_v32 = vadd.f32 %v5940_v23, %v5930_v3  ;;  %v5951_v33 = vadd.f32 %v5941_v13, %v5931_v50  ;;  %v6012_v21 = vmul.f32 0.8333333, %v5911_v11  ;;  %v5761_v28 = vld [vmem:[%s10335_s13 + $0x8] sm:$0x3] }
0x10f1   :  { %vm5849_vm2 = vcmp.lt.f32.partialorder %v10050_v27, %v7003_v51  ;;  %v10094_v34 = vsub.f32 %v10050_v27, %v7001_v18  ;;  %v5912_v35 = vsub.f32 %v7003_v51, %v10050_v27  ;;  %v5961_v37 = vmul.f32 1.25, %v10069_v61  ;;  %v10161_v59 = vld [vmem:[%s10334_s12 + $0x9] ss:$0 sm:$0xff] }
0x10f2   :  { %v5977_v38 = vmul.f32 %v5959_v40, %v5949_v30  ;;  %v5978_v41 = vmul.f32 %v5960_v31, %v5950_v32  ;;  %v5986_v53 = vmul.f32 %v5968_v20, %v5950_v32  ;;  %v5987_v25 = vmul.f32 %v5969_v44, %v5951_v33  ;;  %vm5860_vm9 = vmand %vm5832_vm4, %vm5849_vm2 }
0x10f3   :  { %v7014_v26 = vsel %vm5860_vm9, 1.0, %v8418_v8  ;;  %v5902_v56 = vmul.f32 2.5, %v10094_v34  ;;  %v5922_v57 = vmul.f32 2.5, %v5912_v35  ;;  %v5970_v42 = vmul.f32 1.25, %v5912_v35 }
0x10f4   :  { %v5995_v43 = vadd.f32 %v5986_v53, %v5977_v38  ;;  %v5996_v2 = vadd.f32 %v5987_v25, %v5978_v41  ;;  %v5979_v60 = vmul.f32 %v5961_v37, %v5951_v33  ;;  %v6005_v62 = vmul.f32 0.8333333, %v5890_v45 }
0x10f5   :  { %v5932_v0 = vmul.f32 %v7013_v46, %v5902_v56  ;;  %v5942_v5 = vmul.f32 %v7014_v26, %v5922_v57  ;;  %v6013_v1 = vmul.f32 0.8333333, %v5912_v35  ;;  %vm5833_vm10 = vcmp.ge.f32.partialorder %v10050_v27, %v7003_v51  ;;  %v7033_v35 = vld [vmem:[%s10333_s14 + $0x30] sm:$0xff] }
0x10f6   :  { %v6020_v58 = vmul.f32 %v6004_v39, %v5995_v43  ;;  %v6028_v4 = vmul.f32 %v6012_v21, %v5996_v2  ;;  %v6021_v19 = vmul.f32 %v6005_v62, %v5996_v2  ;;  %vm5834_vm11 = vcmp.ge.f32.partialorder %v10050_v27, %v10106_v55  ;;  %v7034_v39 = vld [vmem:[%s10333_s14 + $0x38] sm:$0x3] }
0x10f7   :  { %v5952_v9 = vadd.f32 %v5942_v5, %v5932_v0  ;;  %vm5850_vm12 = vcmp.lt.f32.partialorder %v10050_v27, %v10106_v55  ;;  %vm5851_vm13 = vcmp.lt.f32.partialorder %v10050_v27, %v10111_v63  ;;  %v10122_v14 = vsub.f32 %v10050_v27, %v10055_v22  ;;  %v7008_v0 = vld [vmem:[%s10334_s12 + $0xa] ss:$0 sm:$0xff] }
0x10f8   :  { %v6036_v15 = vadd.f32 %v6028_v4, %v6020_v58  ;;  %vm5861_vm14 = vmand %vm5833_vm10, %vm5850_vm12  ;;  %v10125_v12 = vsub.f32 %v10050_v27, %v7003_v51  ;;  %v10129_v52 = vsub.f32 %v10106_v55, %v10050_v27  ;;  %v5914_v18 = vsub.f32 %v10111_v63, %v10050_v27  ;;  %v7009_v4 = vld [vmem:[%s10334_s12 + $0xb] ss:$0 sm:$0xff] }
0x10f9   :  { %v5988_v45 = vmul.f32 %v5970_v42, %v5952_v9  ;;  %vm5862_vm15 = vmand %vm5834_vm11, %vm5851_vm13  ;;  %v7015_v22 = vsel %vm5861_vm14, 1.0, %v8418_v8  ;;  %v5903_v29 = vmul.f32 2.5, %v10122_v14  ;;  %v5962_v6 = vmul.f32 1.25, %v10094_v34 }
0x10fa   :  { %8171 = vmatmul.mubr.msk.f32.vlgmr.msra.gmra.mxu1 %vm6046_vm7, %v6036_v15  ;;  %v7016_v10 = vsel %vm5862_vm15, 1.0, %v8418_v8  ;;  %v5904_v11 = vmul.f32 2.5, %v10125_v12  ;;  %v5923_v16 = vmul.f32 2.5, %v10129_v52  ;;  %v5924_v36 = vmul.f32 2.5, %v5914_v18 }
0x10fb   :  { %v10146_v47 = vadd.f32 %v5988_v45, %v5979_v60  ;;  %v5933_v17 = vmul.f32 %v7014_v26, %v5903_v29  ;;  %v5963_v24 = vmul.f32 1.25, %v10122_v14  ;;  %v5971_v48 = vmul.f32 1.25, %v10129_v52  ;;  %8174 = vmatpush3.msk.msra.mxu1 %vm6050_vm8, %v5761_v28  ;;  %8177 = vmatprep.mubr.msk.f32.mxu1 %vm8419_vm1, %v8418_v8  ;;  %v7041_v29 = vld [vmem:[%s10333_s14 + $0x50] sm:$0xff] }
0x10fc   :  { %v5934_v46 = vmul.f32 %v7015_v22, %v5904_v11  ;;  %v5943_v54 = vmul.f32 %v7015_v22, %v5923_v16  ;;  %v5944_v3 = vmul.f32 %v7016_v10, %v5924_v36  ;;  %v5972_v50 = vmul.f32 1.25, %v5914_v18  ;;  %8175 = vmatprep.subr.mxu1 %v8418_v8 }
0x10fd   :  { %v6029_v23 = vmul.f32 %v6013_v1, %v10146_v47  ;;  %v5980_v13 = vmul.f32 %v5962_v6, %v5952_v9  ;;  %v6007_v40 = vmul.f32 0.8333333, %v10094_v34  ;;  %v6015_v51 = vmul.f32 0.8333333, %v5914_v18  ;;  %8176 = vmatpush3.msra.mxu1 %v5760_v7  ;;  %v7042_v9 = vld [vmem:[%s10333_s14 + $0x58] sm:$0x3] }
0x10fe   :  { %v5953_v31 = vadd.f32 %v5943_v54, %v5933_v17  ;;  %v5954_v20 = vadd.f32 %v5944_v3, %v5934_v46  ;;  %vm5835_vm0 = vcmp.ge.f32.partialorder %v10050_v27, %v10111_v63  ;;  %vm5836_vm3 = vcmp.ge.f32.partialorder %v10050_v27, %v10153_v49  ;;  %8187 = vmatprep.subr.mxu1 %v8418_v8 }
0x10ff   :  { %v6037_v44 = vadd.f32 %v6029_v23, %v6021_v19  ;;  %vm5852_vm4 = vcmp.lt.f32.partialorder %v10050_v27, %v10153_v49  ;;  %vm5853_vm5 = vcmp.lt.f32.partialorder %v10050_v27, %v10161_v59  ;;  %v10180_v30 = vsub.f32 %v10050_v27, %v10106_v55 }
0x1100   :  { %v5981_v32 = vmul.f32 %v5963_v24, %v5953_v31  ;;  %v5989_v33 = vmul.f32 %v5971_v48, %v5953_v31  ;;  %v5990_v21 = vmul.f32 %v5972_v50, %v5954_v20  ;;  %vm5863_vm6 = vmand %vm5835_vm0, %vm5852_vm4  ;;  %v10184_v34 = vsub.f32 %v10050_v27, %v10111_v63 }
0x1101   :  { %8185 = vmatmul.mubr.msk.f32.vlgmr.msra.gmra.mxu0 %vm6046_vm7, %v6037_v44  ;;  %vm5864_vm2 = vmand %vm5836_vm3, %vm5853_vm5  ;;  %v7017_v37 = vsel %vm5863_vm6, 1.0, %v8418_v8  ;;  %v5905_v38 = vmul.f32 2.5, %v10180_v30  ;;  %v10194_v41 = vsub.f32 %v10153_v49, %v10050_v27  ;;  %v5916_v53 = vsub.f32 %v10161_v59, %v10050_v27 }
0x1102   :  { %8195 = vmatpush3.msk.msra.mxu0 %vm6050_vm8, %v7034_v39  ;;  %8198 = vmatprep.mubr.msk.f32.mxu0 %vm8419_vm1, %v8418_v8  ;;  %v10201_v25 = vadd.f32 %v5989_v33, %v5980_v13  ;;  %v10203_v26 = vadd.f32 %v5990_v21, %v5981_v32  ;;  %v7018_v56 = vsel %vm5864_vm2, 1.0, %v8418_v8  ;;  %v5906_v57 = vmul.f32 2.5, %v10184_v34  ;;  %v7050_v32 = vld [vmem:[%s10333_s14 + $0x78] sm:$0x3] }
0x1103   :  { %8196 = vmatprep.subr.mxu0 %v8418_v8  ;;  %v5925_v42 = vmul.f32 2.5, %v10194_v41  ;;  %v5926_v55 = vmul.f32 2.5, %v5916_v53  ;;  %v5935_v43 = vmul.f32 %v7016_v10, %v5905_v38  ;;  %v5964_v63 = vmul.f32 1.25, %v10125_v12 }
0x1104   :  { %8197 = vmatpush3.msra.mxu0 %v7033_v35  ;;  %v6023_v2 = vmul.f32 %v6007_v40, %v10201_v25  ;;  %v6031_v60 = vmul.f32 %v6015_v51, %v10203_v26  ;;  %v5936_v62 = vmul.f32 %v7017_v37, %v5906_v57  ;;  %v5965_v58 = vmul.f32 1.25, %v10180_v30 }
0x1105   :  { %8208 = vmatprep.subr.mxu0 %v8418_v8  ;;  %v5945_v5 = vmul.f32 %v7017_v37, %v5925_v42  ;;  %v5946_v1 = vmul.f32 %v7018_v56, %v5926_v55  ;;  %v5973_v15 = vmul.f32 1.25, %v10194_v41  ;;  %v5974_v18 = vmul.f32 1.25, %v5916_v53 }
0x1106   :  { %v6039_v19 = vadd.f32 %v6031_v60, %v6023_v2  ;;  %v5982_v28 = vmul.f32 %v5964_v63, %v5954_v20  ;;  %vm5837_vm9 = vcmp.ge.f32.partialorder %v10050_v27, %v10161_v59  ;;  %vm5838_vm10 = vcmp.ge.f32.partialorder %v10050_v27, %v7008_v0 }
0x1107   :  { %v5955_v45 = vadd.f32 %v5945_v5, %v5935_v43  ;;  %v5956_v22 = vadd.f32 %v5946_v1, %v5936_v62  ;;  %vm5854_vm11 = vcmp.lt.f32.partialorder %v10050_v27, %v7008_v0  ;;  %vm5855_vm12 = vcmp.lt.f32.partialorder %v10050_v27, %v7009_v4 }
0x1108   :  { %8199 = vmatmul.mubr.msk.f32.vlgmr.msra.gmra.mxu0 %vm6046_vm7, %v6039_v19  ;;  %v5897_v6 = vsub.f32 %v10050_v27, %v10153_v49  ;;  %v5898_v10 = vsub.f32 %v10050_v27, %v10161_v59  ;;  %v6009_v7 = vmul.f32 0.8333333, %v10125_v12  ;;  %vm5865_vm13 = vmand %vm5837_vm9, %vm5854_vm11  ;;  %v10246_v49 = vsub.f32 %v7008_v0, %v10050_v27 }
0x1109   :  { %8209 = vmatpush3.msk.msra.mxu0 %vm6050_vm8, %v7042_v9  ;;  %8212 = vmatprep.mubr.msk.f32.mxu0 %vm8419_vm1, %v8418_v8  ;;  %v5983_v11 = vmul.f32 %v5965_v58, %v5955_v45  ;;  %v5991_v16 = vmul.f32 %v5973_v15, %v5955_v45  ;;  %v5992_v36 = vmul.f32 %v5974_v18, %v5956_v22  ;;  %vm5866_vm14 = vmand %vm5838_vm10, %vm5855_vm12  ;;  %v7019_v17 = vsel %vm5865_vm13, 1.0, %v8418_v8 }
0x110a   :  { %8210 = vmatprep.subr.mxu0 %v8418_v8  ;;  %v5907_v24 = vmul.f32 2.5, %v5897_v6  ;;  %v5908_v48 = vmul.f32 2.5, %v5898_v10  ;;  %v6017_v3 = vmul.f32 0.8333333, %v5916_v53  ;;  %v5918_v12 = vsub.f32 %v7009_v4, %v10050_v27 }
0x110b   :  { %8211 = vmatpush3.msra.mxu0 %v7041_v29  ;;  %v6000_v46 = vadd.f32 %v5991_v16, %v5982_v28  ;;  %v10248_v54 = vadd.f32 %v5992_v36, %v5983_v11  ;;  %v7020_v50 = vsel %vm5866_vm14, 1.0, %v8418_v8  ;;  %v5927_v59 = vmul.f32 2.5, %v10246_v49  ;;  %v7029_v29 = vld [vmem:[%s10333_s14 + $0x20] sm:$0xff]  ;;  %v7046_v11 = vld [vmem:[%s10333_s14 + $0x68] sm:$0x3] }
0x110c   :  { %8222 = vmatprep.subr.mxu0 %v8418_v8  ;;  %v5937_v23 = vmul.f32 %v7018_v56, %v5907_v24  ;;  %v5928_v51 = vmul.f32 2.5, %v5918_v12  ;;  %v5938_v31 = vmul.f32 %v7019_v17, %v5908_v48  ;;  %v5966_v44 = vmul.f32 1.25, %v10184_v34  ;;  %v7049_v56 = vld [vmem:[%s10333_s14 + $0x70] sm:$0xff] }
0x110d   :  { %v6025_v13 = vmul.f32 %v6009_v7, %v6000_v46  ;;  %v6033_v40 = vmul.f32 %v6017_v3, %v10248_v54  ;;  %v5947_v20 = vmul.f32 %v7019_v17, %v5927_v59  ;;  %v6997_v21 = vmul.f32 -1.442695, %v10050_v27 }
0x110e   :  { %v5948_v33 = vmul.f32 %v7020_v50, %v5928_v51  ;;  %v5967_v37 = vmul.f32 1.25, %v5897_v6  ;;  %v5975_v38 = vmul.f32 1.25, %v10246_v49  ;;  %v5984_v53 = vmul.f32 %v5966_v44, %v5956_v22 }
0x110f   :  { %v6041_v39 = vadd.f32 %v6033_v40, %v6025_v13  ;;  %v5957_v35 = vadd.f32 %v5947_v20, %v5937_v23  ;;  %v5976_v42 = vmul.f32 1.25, %v5918_v12  ;;  %8395 = vpow2.f32 %v6997_v21 }
0x1110   :  { %v5958_v57 = vadd.f32 %v5948_v33, %v5938_v31  ;;  %v6011_v62 = vmul.f32 0.8333333, %v10184_v34  ;;  %v6019_v0 = vmul.f32 0.8333333, %v5918_v12  ;;  %v6006_v9 = vmul.f32 0.8333333, %v10069_v61 }
0x1111   :  { %8213 = vmatmul.mubr.msk.f32.vlgmr.msra.gmra.mxu0 %vm6046_vm7, %v6041_v39  ;;  %v5985_v55 = vmul.f32 %v5967_v37, %v5957_v35  ;;  %v5993_v43 = vmul.f32 %v5975_v38, %v5957_v35  ;;  %v6014_v15 = vmul.f32 0.8333333, %v10129_v52  ;;  %v7030_v34 = vld [vmem:[%s10333_s14 + $0x28] sm:$0x3]  ;;  %v6008_v61 = vmul.f32 0.8333333, %v10122_v14 }
0x1112   :  { %8223 = vmatpush3.msk.msra.mxu0 %vm6050_vm8, %v7050_v32  ;;  %8226 = vmatprep.mubr.msk.f32.mxu0 %vm8419_vm1, %v8418_v8  ;;  %v5994_v2 = vmul.f32 %v5976_v42, %v5958_v57  ;;  %v6022_v45 = vmul.f32 %v6006_v9, %v10146_v47  ;;  %v6016_v52 = vmul.f32 0.8333333, %v10194_v41  ;;  %v7038_v47 = vld [vmem:[%s10333_s14 + $0x48] sm:$0x3]  ;;  %v7037_v14 = vld [vmem:[%s10333_s14 + $0x40] sm:$0xff] }
0x1113   :  { %8224 = vmatprep.subr.mxu0 %v8418_v8  ;;  %v6002_v60 = vadd.f32 %v5993_v43, %v5984_v53  ;;  %v6030_v22 = vmul.f32 %v6014_v15, %v10201_v25  ;;  %v6024_v25 = vmul.f32 %v6008_v61, %v10203_v26  ;;  %v6010_v41 = vmul.f32 0.8333333, %v10180_v30  ;;  %v7045_v30 = vld [vmem:[%s10333_s14 + $0x60] sm:$0xff] }
0x1114   :  { %8225 = vmatpush3.msra.mxu0 %v7049_v56  ;;  %v6003_v63 = vadd.f32 %v5994_v2, %v5985_v55  ;;  %v6032_v6 = vmul.f32 %v6016_v52, %v6000_v46  ;;  %v6018_v10 = vmul.f32 0.8333333, %v10246_v49 }
0x1115   :  { %v6027_v5 = vmul.f32 %v6011_v62, %v6002_v60  ;;  %v6026_v16 = vmul.f32 %v6010_v41, %v10248_v54 }
0x1116   :  { %v6035_v1 = vmul.f32 %v6019_v0, %v6003_v63  ;;  %v6040_v26 = vadd.f32 %v6032_v6, %v6024_v25  ;;  %v6034_v36 = vmul.f32 %v6018_v10, %v6002_v60 }
0x1118   :  { %v6043_v58 = vadd.f32 %v6035_v1, %v6027_v5  ;;  %v6042_v7 = vadd.f32 %v6034_v36, %v6026_v16 }
0x111a   :  { %8227 = vmatmul.mubr.msk.f32.vlgmr.msra.gmra.mxu0 %vm6046_vm7, %v6043_v58 }
0x111c   :  { %v8396_v4 = vpop.eup %8395 }
0x111d   :  { %v5756_v19 = vadd.f32 1.0, %v8396_v4 }
0x111f   :  { %8397 = vrcp.f32 %v5756_v19 }
0x112c   :  { %v8398_v18 = vpop.eup %8397 }
0x112d   :  { %v5759_v28 = vmul.f32 %v8398_v18, %v10050_v27  ;;  %v6038_v27 = vadd.f32 %v6030_v22, %v6022_v45 }
0x112f   :  { %8178 = vmatmul.mubr.msk.f32.vlgmr.msra.gmra.mxu1 %vm6046_vm7, %v5759_v28 }
0x1130   :  { %8188 = vmatpush3.msk.msra.mxu1 %vm6050_vm8, %v7030_v34  ;;  %8191 = vmatprep.mubr.msk.f32.mxu1 %vm8419_vm1, %v8418_v8 }
0x1131   :  { %8189 = vmatprep.subr.mxu1 %v8418_v8 }
0x1132   :  { %8190 = vmatpush3.msra.mxu1 %v7029_v29 }
0x1133   :  { %8192 = vmatmul.mubr.msk.f32.vlgmr.msra.gmra.mxu1 %vm6046_vm7, %v6038_v27  ;;  %8201 = vmatprep.subr.mxu1 %v8418_v8 }
0x1134   :  { %8202 = vmatpush3.msk.msra.mxu1 %vm6050_vm8, %v7038_v47  ;;  %8205 = vmatprep.mubr.msk.f32.mxu1 %vm8419_vm1, %v8418_v8 }
0x1135   :  { %8203 = vmatprep.subr.mxu1 %v8418_v8 }
0x1136   :  { %8204 = vmatpush3.msra.mxu1 %v7037_v14 }
0x1137   :  { %8206 = vmatmul.mubr.msk.f32.vlgmr.msra.gmra.mxu1 %vm6046_vm7, %v6040_v26  ;;  %8215 = vmatprep.subr.mxu1 %v8418_v8 }
0x1138   :  { %8216 = vmatpush3.msk.msra.mxu1 %vm6050_vm8, %v7046_v11  ;;  %8219 = vmatprep.mubr.msk.f32.mxu1 %vm8419_vm1, %v8418_v8  ;;  %vm6760_vm1 = vcmask 31744  }
0x1139   :  { %8217 = vmatprep.subr.mxu1 %v8418_v8 }
0x113a   :  { %8218 = vmatpush3.msra.mxu1 %v7045_v30 }
0x113b   :  { %8220 = vmatmul.mubr.msk.f32.vlgmr.msra.gmra.mxu1 %vm6046_vm7, %v6042_v7 }
0x11ba   :  { %v6120_v17 = vpop.f32.mrf.mxu1 }
0x11bc   :  { %v8172_v24 = vpop.f32.mrf.mxu1 }
0x11c1   :  { %v6275_v48 = vpop.f32.mrf.mxu0 }
0x11c3   :  { %v8186_v49 = vpop.f32.mrf.mxu0 }
0x11c8   :  { %v6435_v46 = vpop.f32.mrf.mxu0 }
0x11ca   :  { %v8200_v54 = vpop.f32.mrf.mxu0 }
0x11d1   :  { %v6595_v3 = vpop.f32.mrf.mxu0 }
0x11d3   :  { %v8214_v12 = vpop.f32.mrf.mxu0 }
0x11da   :  { %v6755_v50 = vpop.f32.mrf.mxu0 }
0x11dc   :  { %v8228_v59 = vpop.f32.mrf.mxu0 }
0x11ef   :  { %v6196_v23 = vpop.f32.mrf.mxu1 }
0x11f0   :  { %v6197_v13 = vadd.f32 %v6196_v23, %v6120_v17 }
0x11f1   :  { %v8179_v40 = vpop.f32.mrf.mxu1 }
0x11f2   :  { %v6279_v51 = vadd.f32 %v6275_v48, %v6197_v13 }
0x11f3   :  { %v6355_v31 = vpop.f32.mrf.mxu1 }
0x11f4   :  { %v6359_v8 = vadd.f32 %v6355_v31, %v6279_v51 }
0x11f5   :  { %v8193_v20 = vpop.f32.mrf.mxu1 }
0x11f6   :  { %v6439_v44 = vadd.f32 %v6435_v46, %v6359_v8 }
0x11f7   :  { %v6515_v39 = vpop.f32.mrf.mxu1 }
0x11f8   :  { %v6519_v32 = vadd.f32 %v6515_v39, %v6439_v44 }
0x11f9   :  { %v8207_v33 = vpop.f32.mrf.mxu1 }
0x11fa   :  { %v6599_v21 = vadd.f32 %v6595_v3, %v6519_v32 }
0x11fb   :  { %v6675_v35 = vpop.f32.mrf.mxu1 }
0x11fc   :  { %v6679_v37 = vadd.f32 %v6675_v35, %v6599_v21 }
0x11fd   :  { %v8221_v38 = vpop.f32.mrf.mxu1 }
0x11fe   :  { %v6759_v53 = vadd.f32 %v6755_v50, %v6679_v37 }
0x1200   :  { %6761 = vst.msk [vmem:[%s10336_s15] sm:$0xff] %vm6760_vm1, %v6759_v53 }

</bundles_post_ra>
